<compile_context>
chip_gen: v7x
topology: tpu7x:2x2x1
jax: 0.10.0
libtpu: 0.0.40
codegen_flags: <defaults>
</compile_context>

<pallas_src>
import jax
import jax.numpy as jnp
from jax.experimental import pallas as pl
from jax.experimental.pallas import tpu as pltpu

_LANE = 128
_INV_SQRT2 = 0.7071067811865475
_SQRT_2_OVER_PI = 0.7978845608028654


def _gelu_exact(x):
    # nn.GELU() default = exact erf formulation (multiply, not divide).
    return 0.5 * x * (1.0 + jax.lax.erf(x * _INV_SQRT2))


def _gelu_tanh(x):
    # tanh approximation -> lands on the EUP slot (nearly free vs. VALU).
    return 0.5 * x * (1.0 + jnp.tanh(_SQRT_2_OVER_PI * (x + 0.044715 * x * x * x)))


def _make_kernel(approximate_gelu):
    gelu = _gelu_tanh if approximate_gelu else _gelu_exact

    def kernel(text_ref, image_ref,
               wt_ref, bt_ref,
               wi_ref, bi_ref,
               wo_ref, bo_ref,
               out_ref, acc_ref):
        h = pl.program_id(1)

        @pl.when(h == 0)
        def _():
            acc_ref[...] = jnp.zeros_like(acc_ref)

        # text branch for this hidden chunk: Linear + GELU
        # (LayerNorm = identity, BatchNorm off, Dropout = identity in eval mode)
        t = jnp.dot(text_ref[...].astype(jnp.bfloat16), wt_ref[...],
                    preferred_element_type=jnp.float32) + bt_ref[...]
        t = gelu(t)

        # image branch; fold into `t` immediately to shorten f32 live ranges.
        im = jnp.dot(image_ref[...].astype(jnp.bfloat16), wi_ref[...],
                     preferred_element_type=jnp.float32) + bi_ref[...]
        t = (t + gelu(im)).astype(jnp.bfloat16)

        # partial output projection for this hidden chunk, f32 accumulation.
        acc_ref[...] += jnp.dot(t, wo_ref[...], preferred_element_type=jnp.float32)

        @pl.when(h == pl.num_programs(1) - 1)
        def _():
            out_ref[...] = (acc_ref[...] + bo_ref[...]).astype(out_ref.dtype)

    return kernel


def _pad_axis(x, axis, multiple):
    pad = (-x.shape[axis]) % multiple
    if pad == 0:
        return x
    widths = [(0, 0)] * x.ndim
    widths[axis] = (0, pad)
    return jnp.pad(x, widths)


def _round_up(n, m):
    return ((n + m - 1) // m) * m


def linear_forward(text, image, params, *, block_b=256, block_h=2048,
                   approximate_gelu=False, out_dtype=jnp.float32):
    """text: [B, text_input_size], image: [B, image_size] -> [B, image_size]."""
    wt, bt = params["wt"], params["bt"].reshape(1, -1)
    wi, bi = params["wi"], params["bi"].reshape(1, -1)
    wo, bo = params["wo"], params["bo"].reshape(1, -1)

    B = text.shape[0]
    N = wo.shape[1]

    # ---- lane-dense padding: every feature dim -> multiple of 128 -----------
    # Zero padding is exact: padded contraction rows are zero, padded hidden
    # columns produce GELU(0)=0 and hit zero rows of Wo, padded output columns
    # are sliced off below.  Activations stay f32 (bf16 cast happens in-kernel);
    # weights are expected to already live in bf16 (no per-call cast pass).
    text_p = _pad_axis(text.astype(jnp.float32), 1, _LANE)
    image_p = _pad_axis(image.astype(jnp.float32), 1, _LANE)
    wt_p = _pad_axis(_pad_axis(wt.astype(jnp.bfloat16), 0, _LANE), 1, _LANE)
    wi_p = _pad_axis(_pad_axis(wi.astype(jnp.bfloat16), 0, _LANE), 1, _LANE)
    wo_p = _pad_axis(_pad_axis(wo.astype(jnp.bfloat16), 0, _LANE), 1, _LANE)
    bt_p = _pad_axis(bt.astype(jnp.float32), 1, _LANE)
    bi_p = _pad_axis(bi.astype(jnp.float32), 1, _LANE)
    bo_p = _pad_axis(bo.astype(jnp.float32), 1, _LANE)

    Kt_p, H_p = wt_p.shape
    Ki_p = wi_p.shape[0]
    N_p = wo_p.shape[1]

    # ---- hidden tiling: resident weights if they fit, streamed otherwise ----
    if H_p <= block_h:
        th = H_p
    else:
        th = max(_LANE, (block_h // _LANE) * _LANE)
        wt_p = _pad_axis(wt_p, 1, th)
        wi_p = _pad_axis(wi_p, 1, th)
        wo_p = _pad_axis(wo_p, 0, th)
        bt_p = _pad_axis(bt_p, 1, th)
        bi_p = _pad_axis(bi_p, 1, th)
        H_p = wt_p.shape[1]
    nh = H_p // th

    # ---- batch tiling: multiple of 16 (bf16 sublane pack), big tiles --------
    tb = min(_round_up(block_b, 16), _round_up(B, 16))
    text_p = _pad_axis(text_p, 0, tb)
    image_p = _pad_axis(image_p, 0, tb)
    B_p = text_p.shape[0]
    nb = B_p // tb

    # Single-buffer the weights/biases when they are grid-resident (nh == 1);
    # when streaming over hidden chunks keep the default double buffering.
    w_mode = pl.Buffered(1) if nh == 1 else None

    # ---- explicit scoped-VMEM budget (buffers actually requested, +25%) -----
    out_isz = jnp.dtype(out_dtype).itemsize
    w_bufs = 1 if nh == 1 else 2
    vmem_needed = (
        w_bufs * 2 * (Kt_p * th + Ki_p * th + th * N_p)   # bf16 weight buffers
        + w_bufs * 4 * 2 * th                              # bt, bi (f32)
        + 4 * N_p                                          # bo (f32)
        + 2 * 4 * tb * (Kt_p + Ki_p)                       # f32 activation tiles (x2 bufs)
        + 2 * out_isz * tb * N_p                           # output tile buffers
        + 4 * tb * N_p                                     # f32 accumulator scratch
        + 2 * 4 * tb * th                                  # live f32 intermediates slack
    )
    vmem_limit = max(32 * 1024 * 1024,
                     min(int(vmem_needed * 1.25), 100 * 1024 * 1024))

    flops = 2 * B_p * (Kt_p + Ki_p) * H_p + 2 * B_p * H_p * N_p
    bytes_accessed = (
        4 * B_p * (Kt_p + Ki_p)                 # f32 activations
        + 2 * (Kt_p * H_p + Ki_p * H_p + H_p * N_p)   # bf16 weights
        + 4 * (2 * H_p + N_p)                   # biases
        + out_isz * B_p * N_p                   # output writeback
    )

    out_p = pl.pallas_call(
        _make_kernel(approximate_gelu),
        out_shape=jax.ShapeDtypeStruct((B_p, N_p), out_dtype),
        grid=(nb, nh),
        in_specs=[
            pl.BlockSpec((tb, Kt_p), lambda i, h: (i, 0)),    # text tile (f32)
            pl.BlockSpec((tb, Ki_p), lambda i, h: (i, 0)),    # image tile (f32)
            pl.BlockSpec((Kt_p, th), lambda i, h: (0, h), pipeline_mode=w_mode),  # Wt
            pl.BlockSpec((1, th),    lambda i, h: (0, h), pipeline_mode=w_mode),  # bt
            pl.BlockSpec((Ki_p, th), lambda i, h: (0, h), pipeline_mode=w_mode),  # Wi
            pl.BlockSpec((1, th),    lambda i, h: (0, h), pipeline_mode=w_mode),  # bi
            pl.BlockSpec((th, N_p),  lambda i, h: (h, 0), pipeline_mode=w_mode),  # Wo
            pl.BlockSpec((1, N_p),   lambda i, h: (0, 0), pipeline_mode=w_mode),  # bo
        ],
        out_specs=pl.BlockSpec((tb, N_p), lambda i, h: (i, 0)),
        scratch_shapes=[pltpu.VMEM((tb, N_p), jnp.float32)],
        compiler_params=pltpu.CompilerParams(
            dimension_semantics=("parallel", "arbitrary"),
            vmem_limit_bytes=vmem_limit),
        cost_estimate=pl.CostEstimate(
            flops=flops,
            transcendentals=(2 * B_p * H_p) if approximate_gelu else 0,
            bytes_accessed=bytes_accessed),
    )(text_p, image_p, wt_p, bt_p, wi_p, bi_p, wo_p, bo_p)

    return out_p[:B, :N]


def init_params(key, image_size, text_input_size, hidden):
    ks = jax.random.split(key, 6)
    scale = 0.02
    # Weights stored once in bf16 (MXU-native); biases stay f32.
    return {
        "wt": (scale * jax.random.normal(ks[0], (text_input_size, hidden),
                                         jnp.float32)).astype(jnp.bfloat16),
        "bt": scale * jax.random.normal(ks[1], (hidden,), jnp.float32),
        "wi": (scale * jax.random.normal(ks[2], (image_size, hidden),
                                         jnp.float32)).astype(jnp.bfloat16),
        "bi": scale * jax.random.normal(ks[3], (hidden,), jnp.float32),
        "wo": (scale * jax.random.normal(ks[4], (hidden, image_size),
                                         jnp.float32)).astype(jnp.bfloat16),
        "bo": scale * jax.random.normal(ks[5], (image_size,), jnp.float32),
    }


if __name__ == "__main__":
    # Small, lane-dense config consistent with the module defaults (scaled down).
    image_size = 128          # -> embed_dim = image_size
    text_input_size = 128
    expansion_ratio = 4
    hidden = max(1, int(image_size * expansion_ratio))    # 512
    B = 256

    key = jax.random.PRNGKey(0)
    k_text, k_img, k_params = jax.random.split(key, 3)
    text = jax.random.normal(k_text, (B, text_input_size), jnp.float32)
    image = jax.random.normal(k_img, (B, image_size), jnp.float32)
    params = init_params(k_params, image_size, text_input_size, hidden)

    # Path 1: hidden fits one tile -> VMEM-resident, single-buffered weights.
    out_resident = linear_forward(text, image, params, block_b=256, block_h=2048)
    # Path 2: hidden streamed in 256-wide chunks -> accumulator/pl.when path
    # (the v7x fallback for weight sets that do not fit 64 MiB VMEM).
    out_streamed = linear_forward(text, image, params, block_b=256, block_h=256)
    out_resident, out_streamed = jax.block_until_ready((out_resident, out_streamed))
    assert out_resident.shape == (B, image_size)
    assert out_streamed.shape == (B, image_size)

    # Reference mirroring the kernel's bf16-operand / f32-accumulate numerics.
    bf16 = jnp.bfloat16
    wt_b, wi_b, wo_b = params["wt"], params["wi"], params["wo"]
    ref_t = jax.nn.gelu(
        jnp.dot(text.astype(bf16), wt_b, preferred_element_type=jnp.float32)
        + params["bt"], approximate=False)
    ref_i = jax.nn.gelu(
        jnp.dot(image.astype(bf16), wi_b, preferred_element_type=jnp.float32)
        + params["bi"], approximate=False)
    ref = jnp.dot((ref_t + ref_i).astype(bf16), wo_b,
                  preferred_element_type=jnp.float32) + params["bo"]
    assert jnp.allclose(out_resident, ref, atol=2e-3, rtol=2e-3)
    assert jnp.allclose(out_streamed, ref, atol=2e-3, rtol=2e-3)

    # Sanity check against the f32 module math (relaxed: bf16 matmul operands).
    ref32_t = jax.nn.gelu(text @ params["wt"].astype(jnp.float32) + params["bt"],
                          approximate=False)
    ref32_i = jax.nn.gelu(image @ params["wi"].astype(jnp.float32) + params["bi"],
                          approximate=False)
    ref32 = (ref32_t + ref32_i) @ params["wo"].astype(jnp.float32) + params["bo"]
    assert jnp.allclose(out_resident, ref32, atol=5e-2, rtol=5e-2)

    # TODO(synk): Dropout(0.1) modeled as identity (eval mode); training-mode
    # dropout would require pltpu.prng_seed + pltpu.prng_random_bits masking.
    print("KERNEL_OK")
</pallas_src>

<mosaic_0001>
module attributes {stable_mosaic.version = 11 : i64} {
  func.func @kernel(%arg0: i32, %arg1: i32, %arg2: memref<256x128xf32, #tpu.memory_space<vmem>>, %arg3: memref<256x128xf32, #tpu.memory_space<vmem>>, %arg4: memref<128x512xbf16, #tpu.memory_space<vmem>>, %arg5: memref<1x512xf32, #tpu.memory_space<vmem>>, %arg6: memref<128x512xbf16, #tpu.memory_space<vmem>>, %arg7: memref<1x512xf32, #tpu.memory_space<vmem>>, %arg8: memref<512x128xbf16, #tpu.memory_space<vmem>>, %arg9: memref<1x128xf32, #tpu.memory_space<vmem>>, %arg10: memref<256x128xf32, #tpu.memory_space<vmem>>, %arg11: memref<256x128xf32, #tpu.memory_space<vmem>>) attributes {dimension_semantics = [#tpu.dimension_semantics<parallel>, #tpu.dimension_semantics<arbitrary>], iteration_bounds = array<i64: 1, 1>, scalar_prefetch = 0 : i64, scratch_operands = 1 : i64, tpu.core_type = #tpu.core_type<tc>, window_params = [{transform_indices = @transform_0, window_bounds = array<i64: 256, 128>}, {transform_indices = @transform_1, window_bounds = array<i64: 256, 128>}, {pipeline_mode = #tpu.pipeline_mode<synchronous>, transform_indices = @transform_2, window_bounds = array<i64: 128, 512>}, {pipeline_mode = #tpu.pipeline_mode<synchronous>, transform_indices = @transform_3, window_bounds = array<i64: 1, 512>}, {pipeline_mode = #tpu.pipeline_mode<synchronous>, transform_indices = @transform_4, window_bounds = array<i64: 128, 512>}, {pipeline_mode = #tpu.pipeline_mode<synchronous>, transform_indices = @transform_5, window_bounds = array<i64: 1, 512>}, {pipeline_mode = #tpu.pipeline_mode<synchronous>, transform_indices = @transform_6, window_bounds = array<i64: 512, 128>}, {pipeline_mode = #tpu.pipeline_mode<synchronous>, transform_indices = @transform_7, window_bounds = array<i64: 1, 128>}, {transform_indices = @transform_8, window_bounds = array<i64: 256, 128>}]} {
    %c0_i32 = arith.constant 0 : i32
    %0 = arith.cmpi eq, %arg1, %c0_i32 : i32
    %1 = arith.extui %0 : i1 to i32
    %c0_i32_0 = arith.constant 0 : i32
    %2 = arith.cmpi ne, %1, %c0_i32_0 : i32
    scf.if %2 {
      %cst_28 = arith.constant 0.000000e+00 : f32
      %43 = vector.broadcast %cst_28 : f32 to vector<256x128xf32>
      %c0_29 = arith.constant 0 : index
      %c0_30 = arith.constant 0 : index
      %44 = vector.load %arg11[%c0_29, %c0_30] : memref<256x128xf32, #tpu.memory_space<vmem>>, vector<256x128xf32>
      tpu.vector_store %arg11[%c0_29, %c0_30], %43 {strides = array<i32>} : memref<256x128xf32, #tpu.memory_space<vmem>>, vector<256x128xf32>,
    } else {
    }
    %c0 = arith.constant 0 : index
    %c0_1 = arith.constant 0 : index
    %3 = vector.load %arg2[%c0, %c0_1] : memref<256x128xf32, #tpu.memory_space<vmem>>, vector<256x128xf32>
    %4 = arith.truncf %3 : vector<256x128xf32> to vector<256x128xbf16>
    %c0_2 = arith.constant 0 : index
    %c0_3 = arith.constant 0 : index
    %5 = vector.load %arg4[%c0_2, %c0_3] : memref<128x512xbf16, #tpu.memory_space<vmem>>, vector<128x512xbf16>
    %cst = arith.constant dense<0.000000e+00> : vector<256x512xf32>
    %6 = tpu.matmul %4, %5, %cst {dimension_numbers = #tpu.dot_dimension_numbers<[1], [0], [0], [1], [0, 0, 1, 1], [], []>} : vector<256x128xbf16>, vector<128x512xbf16>, vector<256x512xf32> -> vector<256x512xf32>
    %c0_4 = arith.constant 0 : index
    %c0_5 = arith.constant 0 : index
    %7 = vector.load %arg5[%c0_4, %c0_5] : memref<1x512xf32, #tpu.memory_space<vmem>>, vector<1x512xf32>
    %8 = vector.broadcast %7 : vector<1x512xf32> to vector<256x512xf32>
    %9 = arith.addf %6, %8 : vector<256x512xf32>
    %cst_6 = arith.constant 5.000000e-01 : f32
    %10 = vector.broadcast %cst_6 : f32 to vector<256x512xf32>
    %11 = arith.mulf %10, %9 : vector<256x512xf32>
    %cst_7 = arith.constant 0.707106769 : f32
    %12 = vector.broadcast %cst_7 : f32 to vector<256x512xf32>
    %13 = arith.mulf %9, %12 : vector<256x512xf32>
    %14 = math.erf %13 : vector<256x512xf32>
    %cst_8 = arith.constant 1.000000e+00 : f32
    %15 = vector.broadcast %cst_8 : f32 to vector<256x512xf32>
    %16 = arith.addf %15, %14 : vector<256x512xf32>
    %17 = arith.mulf %11, %16 : vector<256x512xf32>
    %c0_9 = arith.constant 0 : index
    %c0_10 = arith.constant 0 : index
    %18 = vector.load %arg3[%c0_9, %c0_10] : memref<256x128xf32, #tpu.memory_space<vmem>>, vector<256x128xf32>
    %19 = arith.truncf %18 : vector<256x128xf32> to vector<256x128xbf16>
    %c0_11 = arith.constant 0 : index
    %c0_12 = arith.constant 0 : index
    %20 = vector.load %arg6[%c0_11, %c0_12] : memref<128x512xbf16, #tpu.memory_space<vmem>>, vector<128x512xbf16>
    %cst_13 = arith.constant dense<0.000000e+00> : vector<256x512xf32>
    %21 = tpu.matmul %19, %20, %cst_13 {dimension_numbers = #tpu.dot_dimension_numbers<[1], [0], [0], [1], [0, 0, 1, 1], [], []>} : vector<256x128xbf16>, vector<128x512xbf16>, vector<256x512xf32> -> vector<256x512xf32>
    %c0_14 = arith.constant 0 : index
    %c0_15 = arith.constant 0 : index
    %22 = vector.load %arg7[%c0_14, %c0_15] : memref<1x512xf32, #tpu.memory_space<vmem>>, vector<1x512xf32>
    %23 = vector.broadcast %22 : vector<1x512xf32> to vector<256x512xf32>
    %24 = arith.addf %21, %23 : vector<256x512xf32>
    %cst_16 = arith.constant 5.000000e-01 : f32
    %25 = vector.broadcast %cst_16 : f32 to vector<256x512xf32>
    %26 = arith.mulf %25, %24 : vector<256x512xf32>
    %cst_17 = arith.constant 0.707106769 : f32
    %27 = vector.broadcast %cst_17 : f32 to vector<256x512xf32>
    %28 = arith.mulf %24, %27 : vector<256x512xf32>
    %29 = math.erf %28 : vector<256x512xf32>
    %cst_18 = arith.constant 1.000000e+00 : f32
    %30 = vector.broadcast %cst_18 : f32 to vector<256x512xf32>
    %31 = arith.addf %30, %29 : vector<256x512xf32>
    %32 = arith.mulf %26, %31 : vector<256x512xf32>
    %33 = arith.addf %17, %32 : vector<256x512xf32>
    %34 = arith.truncf %33 : vector<256x512xf32> to vector<256x512xbf16>
    %c0_19 = arith.constant 0 : index
    %c0_20 = arith.constant 0 : index
    %35 = vector.load %arg11[%c0_19, %c0_20] : memref<256x128xf32, #tpu.memory_space<vmem>>, vector<256x128xf32>
    %c0_21 = arith.constant 0 : index
    %c0_22 = arith.constant 0 : index
    %36 = vector.load %arg8[%c0_21, %c0_22] : memref<512x128xbf16, #tpu.memory_space<vmem>>, vector<512x128xbf16>
    %cst_23 = arith.constant dense<0.000000e+00> : vector<256x128xf32>
    %37 = tpu.matmul %34, %36, %cst_23 {dimension_numbers = #tpu.dot_dimension_numbers<[1], [0], [0], [1], [0, 0, 1, 1], [], []>} : vector<256x512xbf16>, vector<512x128xbf16>, vector<256x128xf32> -> vector<256x128xf32>
    %38 = arith.addf %35, %37 : vector<256x128xf32>
    %c0_24 = arith.constant 0 : index
    %c0_25 = arith.constant 0 : index
    %39 = vector.load %arg11[%c0_24, %c0_25] : memref<256x128xf32, #tpu.memory_space<vmem>>, vector<256x128xf32>
    tpu.vector_store %arg11[%c0_24, %c0_25], %38 {strides = array<i32>} : memref<256x128xf32, #tpu.memory_space<vmem>>, vector<256x128xf32>,
    %c0_i32_26 = arith.constant 0 : i32
    %40 = arith.cmpi eq, %arg1, %c0_i32_26 : i32
    %41 = arith.extui %40 : i1 to i32
    %c0_i32_27 = arith.constant 0 : i32
    %42 = arith.cmpi ne, %41, %c0_i32_27 : i32
    scf.if %42 {
      %c0_28 = arith.constant 0 : index
      %c0_29 = arith.constant 0 : index
      %43 = vector.load %arg11[%c0_28, %c0_29] : memref<256x128xf32, #tpu.memory_space<vmem>>, vector<256x128xf32>
      %c0_30 = arith.constant 0 : index
      %c0_31 = arith.constant 0 : index
      %44 = vector.load %arg9[%c0_30, %c0_31] : memref<1x128xf32, #tpu.memory_space<vmem>>, vector<1x128xf32>
      %45 = vector.broadcast %44 : vector<1x128xf32> to vector<256x128xf32>
      %46 = arith.addf %43, %45 : vector<256x128xf32>
      %c0_32 = arith.constant 0 : index
      %c0_33 = arith.constant 0 : index
      %47 = vector.load %arg10[%c0_32, %c0_33] : memref<256x128xf32, #tpu.memory_space<vmem>>, vector<256x128xf32>
      tpu.vector_store %arg10[%c0_32, %c0_33], %46 {strides = array<i32>} : memref<256x128xf32, #tpu.memory_space<vmem>>, vector<256x128xf32>,
    } else {
    }
    return
  }
  func.func @transform_0(%arg0: i32, %arg1: i32) -> (i32, i32) {
    %c0_i32 = arith.constant 0 : i32
    %c0_i32_0 = arith.constant 0 : i32
    return %arg0, %c0_i32 : i32, i32
  }
  func.func @transform_1(%arg0: i32, %arg1: i32) -> (i32, i32) {
    %c0_i32 = arith.constant 0 : i32
    %c0_i32_0 = arith.constant 0 : i32
    return %arg0, %c0_i32 : i32, i32
  }
  func.func @transform_2(%arg0: i32, %arg1: i32) -> (i32, i32) {
    %c0_i32 = arith.constant 0 : i32
    %c0_i32_0 = arith.constant 0 : i32
    return %c0_i32, %arg1 : i32, i32
  }
  func.func @transform_3(%arg0: i32, %arg1: i32) -> (i32, i32) {
    %c0_i32 = arith.constant 0 : i32
    %c0_i32_0 = arith.constant 0 : i32
    return %c0_i32, %arg1 : i32, i32
  }
  func.func @transform_4(%arg0: i32, %arg1: i32) -> (i32, i32) {
    %c0_i32 = arith.constant 0 : i32
    %c0_i32_0 = arith.constant 0 : i32
    return %c0_i32, %arg1 : i32, i32
  }
  func.func @transform_5(%arg0: i32, %arg1: i32) -> (i32, i32) {
    %c0_i32 = arith.constant 0 : i32
    %c0_i32_0 = arith.constant 0 : i32
    return %c0_i32, %arg1 : i32, i32
  }
  func.func @transform_6(%arg0: i32, %arg1: i32) -> (i32, i32) {
    %c0_i32 = arith.constant 0 : i32
    %c0_i32_0 = arith.constant 0 : i32
    return %arg1, %c0_i32 : i32, i32
  }
  func.func @transform_7(%arg0: i32, %arg1: i32) -> (i32, i32) {
    %c0_i32 = arith.constant 0 : i32
    %c0_i32_0 = arith.constant 0 : i32
    %c0_i32_1 = arith.constant 0 : i32
    return %c0_i32, %c0_i32_0 : i32, i32
  }
  func.func @transform_8(%arg0: i32, %arg1: i32) -> (i32, i32) {
    %c0_i32 = arith.constant 0 : i32
    %c0_i32_0 = arith.constant 0 : i32
    return %arg0, %c0_i32 : i32, i32
  }
}

</mosaic_0001>

<bundles_post_ra>
// kernel: tpu_custom_call.1
= control target key start
LH: loop header
LB: loop body
LE: loop exit
PB: predicated region body
PF: predicated region fallthrough
CT: control target
= control target key end

     0   :  { %13 = vsyncpa [#allocation4], 0  ;;  %s7579_s0 = inlined_call_operand.hbm [shape: f32[256,128], index: 0, kind: input, shape index: {}]   ;;  %s7580_s1 = inlined_call_operand.hbm [shape: f32[256,128], index: 1, kind: input, shape index: {}]   ;;  %s7581_s2 = inlined_call_operand.hbm [shape: bf16[128,512], index: 2, kind: input, shape index: {}]   ;;  %s7582_s3 = inlined_call_operand.vmem [shape: f32[1,512], index: 3, kind: input, shape index: {}]   ;;  %s7583_s4 = inlined_call_operand.hbm [shape: bf16[128,512], index: 4, kind: input, shape index: {}]   ;;  %s7584_s5 = inlined_call_operand.vmem [shape: f32[1,512], index: 5, kind: input, shape index: {}]   ;;  %s7585_s6 = inlined_call_operand.hbm [shape: bf16[512,128], index: 6, kind: input, shape index: {}]   ;;  %s7586_s7 = inlined_call_operand.vmem [shape: f32[1,128], index: 7, kind: input, shape index: {}]   ;;  %s7587_s8 = inlined_call_operand.hbm [shape: f32[256,128], index: 8, kind: output, shape index: {}]  }
   0x1   :  { %14 = vsyncpa [#allocation7], 0 }
   0x2   :  { %15 = vsyncpa [#allocation10], 0 }
   0x3   :  { %16 = vsyncpa [#allocation5], 0  ;;  %s4816_s27 = smov [#allocation6]   ;;  %s4676_s9 = scalar_lea.hbm %s7580_s1, 4096 }
   0x4   :  { %s34_s28 = sshll.u32 %s4816_s27, 4  ;;  %p4677_p0 = scmp.ne.s32.totalorder %s7580_s1, %s4676_s9  ;;  %s35_s28 = int_to_ptr.vmem [resolvable:$true] %s34_s28 }
   0x5   :  { %p4680_p1 = scmp.lt.u32.totalorder %s4676_s9, %s7580_s1 }
   0x7   :  { %p4682_p2 = pnand %p4680_p1, %p4677_p0 }
   0x9   :  { %4685 = shalt.err (!%p4682_p2)
}
   0xa   :  { %s4686_s14 = scalar_lea.vmem %s35_s28, 4096  ;;  %p4691_p4 = scmp.lt.s32.totalorder %s35_s28, %s35_s28 }
   0xb   :  { %p4687_p3 = scmp.ne.s32.totalorder %s35_s28, %s4686_s14  ;;  %p4692_p5 = scmp.lt.s32.totalorder %s4686_s14, %s4686_s14 }
   0xd   :  { %p4693_p6 = por %p4692_p5, %p4691_p4 }
   0xf   :  { %p4694_p7 = pnand %p4693_p6, %p4687_p3 }
  0x11   :  { %4697 = shalt.err (!%p4694_p7)
}
  0x12   :  { %s4817_s15 = smov 128   ;;  %s4818_s16 = smov 8  }
  0x13   :  { %40 = dma.hbm_to_vmem [thread:$0]  %s7580_s1, 4096, %s35_s28, [#allocation7], %s4817_s15, %s4817_s15, %s4818_s16  }
  0x14   :  { %s4819_s19 = smov [#allocation9]   ;;  %s4820_s21 = smov [#allocation3]  }
  0x15   :  { %s60_s20 = sshll.u32 %s4819_s19, 4  ;;  %s22_s22 = sshll.u32 %s4820_s21, 4  ;;  %s61_s20 = int_to_ptr.vmem [resolvable:$true] %s60_s20  ;;  %s23_s22 = int_to_ptr.vmem [resolvable:$true] %s22_s22 }
  0x16   :  { %s4698_s25 = scalar_lea.hbm %s7583_s4, 4096 }
  0x17   :  { %p4699_p8 = scmp.ne.s32.totalorder %s7583_s4, %s4698_s25  ;;  %p4702_p9 = scmp.lt.u32.totalorder %s4698_s25, %s7583_s4 }
  0x19   :  { %p4704_p10 = pnand %p4702_p9, %p4699_p8 }
  0x1b   :  { %4707 = shalt.err (!%p4704_p10)
}
  0x1c   :  { %s4708_s1 = scalar_lea.vmem %s61_s20, 4096  ;;  %p4713_p12 = scmp.lt.s32.totalorder %s61_s20, %s61_s20 }
  0x1d   :  { %p4709_p11 = scmp.ne.s32.totalorder %s61_s20, %s4708_s1  ;;  %p4714_p13 = scmp.lt.s32.totalorder %s4708_s1, %s4708_s1 }
  0x1f   :  { %p4715_p0 = por %p4714_p13, %p4713_p12 }
  0x21   :  { %p4716_p1 = pnand %p4715_p0, %p4709_p11 }
  0x23   :  { %4719 = shalt.err (!%p4716_p1)
}
  0x24   :  { %s4821_s28 = smov 256   ;;  %s4822_s9 = smov 16  }
  0x25   :  { %66 = dma.hbm_to_vmem [thread:$0]  %s7583_s4, 4096, %s61_s20, [#allocation10], %s4821_s28, %s4821_s28, %s4822_s9  }
  0x26   :  { %s4720_s14 = scalar_lea.hbm %s7579_s0, 4096 }
  0x27   :  { %p4721_p2 = scmp.ne.s32.totalorder %s7579_s0, %s4720_s14  ;;  %p4724_p3 = scmp.lt.u32.totalorder %s4720_s14, %s7579_s0 }
  0x29   :  { %p4726_p4 = pnand %p4724_p3, %p4721_p2 }
  0x2b   :  { %4729 = shalt.err (!%p4726_p4)
}
  0x2c   :  { %s4730_s23 = scalar_lea.vmem %s23_s22, 4096  ;;  %p4735_p6 = scmp.lt.s32.totalorder %s23_s22, %s23_s22 }
  0x2d   :  { %p4731_p5 = scmp.ne.s32.totalorder %s23_s22, %s4730_s23  ;;  %p4736_p7 = scmp.lt.s32.totalorder %s4730_s23, %s4730_s23 }
  0x2f   :  { %p4737_p8 = por %p4736_p7, %p4735_p6 }
  0x31   :  { %p4738_p9 = pnand %p4737_p8, %p4731_p5 }
  0x33   :  { %4741 = shalt.err (!%p4738_p9)
}
  0x34   :  { %28 = dma.hbm_to_vmem [thread:$0]  %s7579_s0, 4096, %s23_s22, [#allocation4], %s4817_s15, %s4817_s15, %s4818_s16  }
  0x35   :  { %s4823_s24 = smov [#allocation8]   ;;  %s4824_s26 = smov [#allocation11]  }
  0x36   :  { %s46_s25 = sshll.u32 %s4823_s24, 4  ;;  %s74_s27 = sshll.u32 %s4824_s26, 4  ;;  %s47_s25 = int_to_ptr.vmem [resolvable:$true] %s46_s25  ;;  %s75_s27 = int_to_ptr.vmem [resolvable:$true] %s74_s27 }
  0x37   :  { %s4742_s1 = scalar_lea.hbm %s7581_s2, 4096 }
  0x38   :  { %p4743_p10 = scmp.ne.s32.totalorder %s7581_s2, %s4742_s1  ;;  %p4746_p11 = scmp.lt.u32.totalorder %s4742_s1, %s7581_s2 }
  0x3a   :  { %p4748_p12 = pnand %p4746_p11, %p4743_p10 }
  0x3c   :  { %4751 = shalt.err (!%p4748_p12)
}
  0x3d   :  { %s4752_s0 = scalar_lea.vmem %s47_s25, 4096  ;;  %p4757_p0 = scmp.lt.s32.totalorder %s47_s25, %s47_s25 }
  0x3e   :  { %p4753_p13 = scmp.ne.s32.totalorder %s47_s25, %s4752_s0  ;;  %p4758_p1 = scmp.lt.s32.totalorder %s4752_s0, %s4752_s0 }
  0x40   :  { %p4759_p2 = por %p4758_p1, %p4757_p0 }
  0x42   :  { %p4760_p3 = pnand %p4759_p2, %p4753_p13 }
  0x44   :  { %4763 = shalt.err (!%p4760_p3)
}
  0x45   :  { %52 = dma.hbm_to_vmem [thread:$0]  %s7581_s2, 4096, %s47_s25, [#allocation7], %s4821_s28, %s4821_s28, %s4822_s9  }
  0x46   :  { %s4764_s19 = scalar_lea.hbm %s7585_s6, 4096 }
  0x47   :  { %p4765_p4 = scmp.ne.s32.totalorder %s7585_s6, %s4764_s19  ;;  %p4768_p5 = scmp.lt.u32.totalorder %s4764_s19, %s7585_s6 }
  0x49   :  { %p4770_p6 = pnand %p4768_p5, %p4765_p4 }
  0x4b   :  { %4773 = shalt.err (!%p4770_p6)
}
  0x4c   :  { %s4774_s24 = scalar_lea.vmem %s75_s27, 4096  ;;  %p4779_p8 = scmp.lt.s32.totalorder %s75_s27, %s75_s27 }
  0x4d   :  { %p4775_p7 = scmp.ne.s32.totalorder %s75_s27, %s4774_s24  ;;  %p4780_p9 = scmp.lt.s32.totalorder %s4774_s24, %s4774_s24 }
  0x4f   :  { %p4781_p10 = por %p4780_p9, %p4779_p8 }
  0x51   :  { %p4782_p11 = pnand %p4781_p10, %p4775_p7 }
  0x53   :  { %4785 = shalt.err (!%p4782_p11)
}
  0x54   :  { %s4825_s2 = smov 64   ;;  %s4826_s28 = smov 4  }
  0x55   :  { %80 = dma.hbm_to_vmem [thread:$0]  %s7585_s6, 4096, %s75_s27, [#allocation10], %s4825_s2, %s4825_s2, %s4826_s28  }
  0x56   :  { %4808 = dma.done.wait [#allocation4], 4096  }
  0x57   :  { %4809 = vsyncadd [#allocation4], 4294963200 }
  0x58   :  { %4810 = dma.done.wait [#allocation7], 8192  }
  0x59   :  { %4811 = vsyncadd [#allocation7], 4294959104 }
  0x5a   :  { %4812 = dma.done.wait [#allocation10], 8192  }
  0x5b   :  { %4813 = vsyncadd [#allocation10], 4294959104  ;;  %v4827_v0 = vmov 0   ;;  %v4036_v1 = vld [vmem:[#allocation8 + $0x4] ss:$16 sps:$4 sm:$0xff]   ;;  %v136_v34 = vld [vmem:[#allocation3 + $0x8] sm:$0xff] }
  0x5c   :  { %429 = vmatprep.mubr.bf16.mxu0 %v4827_v0  ;;  %622 = vmatprep.mubr.bf16.mxu1 %v4827_v0  ;;  %v4038_v2 = vld [vmem:[#allocation8 + $0xc] ss:$16 sps:$4 sm:$0xff]   ;;  %v4040_v3 = vld [vmem:[#allocation8] ss:$16 sps:$4 sm:$0xff]   ;;  %v4041_v4 = vld [vmem:[#allocation8 + $0x8] ss:$16 sps:$4 sm:$0xff]  }
  0x5d   :  { %397 = vmatprep.subr.bf16.mxu0 %v4036_v1  ;;  %590 = vmatprep.subr.bf16.mxu1 %v4038_v2  ;;  %v4042_v5 = vld [vmem:[#allocation8 + $0x24] ss:$16 sps:$4 sm:$0xff]   ;;  %v4044_v6 = vld [vmem:[#allocation8 + $0x2c] ss:$16 sps:$4 sm:$0xff]   ;;  %v4046_v7 = vld [vmem:[#allocation8 + $0x20] ss:$16 sps:$4 sm:$0xff]  }
  0x5e   :  { %398 = vmatpush1.bf16.msra.mxu0 %v4040_v3  ;;  %591 = vmatpush1.bf16.msra.mxu1 %v4041_v4  ;;  %v4047_v8 = vld [vmem:[#allocation8 + $0x28] ss:$16 sps:$4 sm:$0xff]   ;;  %v4048_v9 = vld [vmem:[#allocation8 + $0x44] ss:$16 sps:$4 sm:$0xff]   ;;  %v4050_v10 = vld [vmem:[#allocation8 + $0x4c] ss:$16 sps:$4 sm:$0xff]  }
  0x5f   :  { %399 = vmatprep.subr.bf16.mxu0 %v4042_v5  ;;  %592 = vmatprep.subr.bf16.mxu1 %v4044_v6  ;;  %v4052_v11 = vld [vmem:[#allocation8 + $0x40] ss:$16 sps:$4 sm:$0xff]   ;;  %v4053_v12 = vld [vmem:[#allocation8 + $0x48] ss:$16 sps:$4 sm:$0xff]   ;;  %v4054_v13 = vld [vmem:[#allocation8 + $0x64] ss:$16 sps:$4 sm:$0xff]  }
  0x60   :  { %v4056_v14 = vld [vmem:[#allocation8 + $0x6c] ss:$16 sps:$4 sm:$0xff]   ;;  %v4058_v15 = vld [vmem:[#allocation8 + $0x60] ss:$16 sps:$4 sm:$0xff]   ;;  %v4059_v16 = vld [vmem:[#allocation8 + $0x68] ss:$16 sps:$4 sm:$0xff]  }
  0x61   :  { %v4060_v17 = vld [vmem:[#allocation8 + $0x84] ss:$16 sps:$4 sm:$0xff]   ;;  %v4062_v18 = vld [vmem:[#allocation8 + $0x8c] ss:$16 sps:$4 sm:$0xff]   ;;  %v4064_v19 = vld [vmem:[#allocation8 + $0x80] ss:$16 sps:$4 sm:$0xff]  }
  0x62   :  { %400 = vmatpush1.bf16.msra.mxu0 %v4046_v7  ;;  %593 = vmatpush1.bf16.msra.mxu1 %v4047_v8  ;;  %v4065_v20 = vld [vmem:[#allocation8 + $0x88] ss:$16 sps:$4 sm:$0xff]   ;;  %v4066_v21 = vld [vmem:[#allocation8 + $0xa4] ss:$16 sps:$4 sm:$0xff]   ;;  %v4068_v22 = vld [vmem:[#allocation8 + $0xac] ss:$16 sps:$4 sm:$0xff]  }
  0x63   :  { %401 = vmatprep.subr.bf16.mxu0 %v4048_v9  ;;  %594 = vmatprep.subr.bf16.mxu1 %v4050_v10  ;;  %v4070_v23 = vld [vmem:[#allocation8 + $0xa0] ss:$16 sps:$4 sm:$0xff]   ;;  %v4071_v24 = vld [vmem:[#allocation8 + $0xa8] ss:$16 sps:$4 sm:$0xff]   ;;  %v4072_v25 = vld [vmem:[#allocation8 + $0xc4] ss:$16 sps:$4 sm:$0xff]  }
  0x64   :  { %v4074_v26 = vld [vmem:[#allocation8 + $0xcc] ss:$16 sps:$4 sm:$0xff]   ;;  %v4076_v27 = vld [vmem:[#allocation8 + $0xc0] ss:$16 sps:$4 sm:$0xff]   ;;  %v4077_v28 = vld [vmem:[#allocation8 + $0xc8] ss:$16 sps:$4 sm:$0xff]  }
  0x65   :  { %v4078_v29 = vld [vmem:[#allocation8 + $0xe4] ss:$16 sps:$4 sm:$0xff]   ;;  %v4080_v30 = vld [vmem:[#allocation8 + $0xec] ss:$16 sps:$4 sm:$0xff]   ;;  %v4082_v31 = vld [vmem:[#allocation8 + $0xe0] ss:$16 sps:$4 sm:$0xff]  }
  0x66   :  { %402 = vmatpush1.bf16.msra.mxu0 %v4052_v11  ;;  %595 = vmatpush1.bf16.msra.mxu1 %v4053_v12  ;;  %v4083_v32 = vld [vmem:[#allocation8 + $0xe8] ss:$16 sps:$4 sm:$0xff]   ;;  %v135_v33 = vld [vmem:[#allocation3] sm:$0xff]  ;;  %v4089_v36 = vld [vmem:[#allocation9 + $0xc] ss:$16 sps:$4 sm:$0xff]  }
  0x67   :  { %403 = vmatprep.subr.bf16.mxu0 %v4054_v13  ;;  %596 = vmatprep.subr.bf16.mxu1 %v4056_v14  ;;  %v4086_v35 = vld [vmem:[#allocation9 + $0x4] ss:$16 sps:$4 sm:$0xff]   ;;  %v167_v37 = vpack.c.bf16 %v136_v34, %v135_v33  ;;  %v4084_v38 = vld [vmem:[#allocation9] ss:$16 sps:$4 sm:$0xff]   ;;  %v4087_v39 = vld [vmem:[#allocation9 + $0x8] ss:$16 sps:$4 sm:$0xff]  }
  0x68   :  { %v4092_v40 = vld [vmem:[#allocation9 + $0x24] ss:$16 sps:$4 sm:$0xff]   ;;  %v4095_v41 = vld [vmem:[#allocation9 + $0x2c] ss:$16 sps:$4 sm:$0xff]   ;;  %v4090_v44 = vld [vmem:[#allocation9 + $0x20] ss:$16 sps:$4 sm:$0xff]  }
  0x69   :  { %v137_v42 = vld [vmem:[#allocation3 + $0x10] sm:$0xff]  ;;  %v138_v43 = vld [vmem:[#allocation3 + $0x18] sm:$0xff]  ;;  %v139_v53 = vld [vmem:[#allocation3 + $0x20] sm:$0xff] }
  0x6a   :  { %404 = vmatpush1.bf16.msra.mxu0 %v4058_v15  ;;  %597 = vmatpush1.bf16.msra.mxu1 %v4059_v16  ;;  %v4093_v45 = vld [vmem:[#allocation9 + $0x28] ss:$16 sps:$4 sm:$0xff]   ;;  %v4098_v46 = vld [vmem:[#allocation9 + $0x44] ss:$16 sps:$4 sm:$0xff]   ;;  %v4101_v47 = vld [vmem:[#allocation9 + $0x4c] ss:$16 sps:$4 sm:$0xff]   ;;  %v168_v48 = vpack.c.bf16 %v138_v43, %v137_v42 }
  0x6b   :  { %405 = vmatprep.subr.bf16.mxu0 %v4060_v17  ;;  %598 = vmatprep.subr.bf16.mxu1 %v4062_v18  ;;  %v4096_v49 = vld [vmem:[#allocation9 + $0x40] ss:$16 sps:$4 sm:$0xff]   ;;  %v4099_v50 = vld [vmem:[#allocation9 + $0x48] ss:$16 sps:$4 sm:$0xff]   ;;  %v4104_v51 = vld [vmem:[#allocation9 + $0x64] ss:$16 sps:$4 sm:$0xff]  }
  0x6c   :  { %v4107_v52 = vld [vmem:[#allocation9 + $0x6c] ss:$16 sps:$4 sm:$0xff]   ;;  %v4102_v55 = vld [vmem:[#allocation9 + $0x60] ss:$16 sps:$4 sm:$0xff]   ;;  %v4105_v56 = vld [vmem:[#allocation9 + $0x68] ss:$16 sps:$4 sm:$0xff]  }
  0x6d   :  { %v140_v54 = vld [vmem:[#allocation3 + $0x28] sm:$0xff]  ;;  %v4110_v57 = vld [vmem:[#allocation9 + $0x84] ss:$16 sps:$4 sm:$0xff]   ;;  %v4108_v60 = vld [vmem:[#allocation9 + $0x80] ss:$16 sps:$4 sm:$0xff]  }
  0x6e   :  { %406 = vmatpush1.bf16.msra.mxu0 %v4064_v19  ;;  %599 = vmatpush1.bf16.msra.mxu1 %v4065_v20  ;;  %v4113_v58 = vld [vmem:[#allocation9 + $0x8c] ss:$16 sps:$4 sm:$0xff]   ;;  %v169_v59 = vpack.c.bf16 %v140_v54, %v139_v53  ;;  %v4111_v61 = vld [vmem:[#allocation9 + $0x88] ss:$16 sps:$4 sm:$0xff]   ;;  %v4116_v62 = vld [vmem:[#allocation9 + $0xa4] ss:$16 sps:$4 sm:$0xff]  }
  0x6f   :  { %407 = vmatprep.subr.bf16.mxu0 %v4066_v21  ;;  %600 = vmatprep.subr.bf16.mxu1 %v4068_v22  ;;  %v4119_v63 = vld [vmem:[#allocation9 + $0xac] ss:$16 sps:$4 sm:$0xff]   ;;  %v141_v1 = vld [vmem:[#allocation3 + $0x30] sm:$0xff]  ;;  %v4117_v4 = vld [vmem:[#allocation9 + $0xa8] ss:$16 sps:$4 sm:$0xff]  }
  0x70   :  { %v142_v2 = vld [vmem:[#allocation3 + $0x38] sm:$0xff]  ;;  %v4114_v3 = vld [vmem:[#allocation9 + $0xa0] ss:$16 sps:$4 sm:$0xff]   ;;  %v4122_v5 = vld [vmem:[#allocation9 + $0xc4] ss:$16 sps:$4 sm:$0xff]  }
  0x71   :  { %v4125_v6 = vld [vmem:[#allocation9 + $0xcc] ss:$16 sps:$4 sm:$0xff]   ;;  %v170_v7 = vpack.c.bf16 %v142_v2, %v141_v1  ;;  %v4120_v8 = vld [vmem:[#allocation9 + $0xc0] ss:$16 sps:$4 sm:$0xff]   ;;  %v4123_v9 = vld [vmem:[#allocation9 + $0xc8] ss:$16 sps:$4 sm:$0xff]  }
  0x72   :  { %408 = vmatpush1.bf16.msra.mxu0 %v4070_v23  ;;  %601 = vmatpush1.bf16.msra.mxu1 %v4071_v24  ;;  %v4128_v10 = vld [vmem:[#allocation9 + $0xe4] ss:$16 sps:$4 sm:$0xff]   ;;  %v4131_v11 = vld [vmem:[#allocation9 + $0xec] ss:$16 sps:$4 sm:$0xff]   ;;  %v4126_v14 = vld [vmem:[#allocation9 + $0xe0] ss:$16 sps:$4 sm:$0xff]  }
  0x73   :  { %409 = vmatprep.subr.bf16.mxu0 %v4072_v25  ;;  %602 = vmatprep.subr.bf16.mxu1 %v4074_v26  ;;  %v143_v12 = vld [vmem:[#allocation3 + $0x40] sm:$0xff]  ;;  %v144_v13 = vld [vmem:[#allocation3 + $0x48] sm:$0xff]  ;;  %v145_v17 = vld [vmem:[#allocation3 + $0x50] sm:$0xff] }
  0x74   :  { %v4129_v15 = vld [vmem:[#allocation9 + $0xe8] ss:$16 sps:$4 sm:$0xff]   ;;  %v171_v16 = vpack.c.bf16 %v144_v13, %v143_v12  ;;  %v147_v20 = vld [vmem:[#allocation3 + $0x60] sm:$0xff]  ;;  %v149_v23 = vld [vmem:[#allocation3 + $0x70] sm:$0xff] }
  0x75   :  { %v146_v18 = vld [vmem:[#allocation3 + $0x58] sm:$0xff]  ;;  %v148_v21 = vld [vmem:[#allocation3 + $0x68] sm:$0xff]  ;;  %v151_v26 = vld [vmem:[#allocation3 + $0x80] sm:$0xff] }
  0x76   :  { %410 = vmatpush1.bf16.msra.mxu0 %v4076_v27  ;;  %603 = vmatpush1.bf16.msra.mxu1 %v4077_v28  ;;  %v172_v19 = vpack.c.bf16 %v146_v18, %v145_v17  ;;  %v173_v22 = vpack.c.bf16 %v148_v21, %v147_v20  ;;  %v150_v24 = vld [vmem:[#allocation3 + $0x78] sm:$0xff]  ;;  %v152_v27 = vld [vmem:[#allocation3 + $0x88] sm:$0xff]  ;;  %v1425_v53 = vld [vmem:[#allocation6 + $0x10] sm:$0xff] }
  0x77   :  { %411 = vmatprep.subr.bf16.mxu0 %v4078_v29  ;;  %604 = vmatprep.subr.bf16.mxu1 %v4080_v30  ;;  %v174_v25 = vpack.c.bf16 %v150_v24, %v149_v23  ;;  %v175_v28 = vpack.c.bf16 %v152_v27, %v151_v26  ;;  %v153_v29 = vld [vmem:[#allocation3 + $0x90] sm:$0xff]  ;;  %v154_v30 = vld [vmem:[#allocation3 + $0x98] sm:$0xff]  ;;  %v156_v33 = vld [vmem:[#allocation3 + $0xa8] sm:$0xff] }
  0x78   :  { %v162_v42 = vld [vmem:[#allocation3 + $0xd8] sm:$0xff]  ;;  %v1435_v12 = vld [vmem:[#allocation6 + $0x60] sm:$0xff]  ;;  %v1436_v13 = vld [vmem:[#allocation6 + $0x68] sm:$0xff] }
  0x79   :  { %v1426_v54 = vld [vmem:[#allocation6 + $0x18] sm:$0xff]  ;;  %v1440_v20 = vld [vmem:[#allocation6 + $0x88] sm:$0xff]  ;;  %v4141_v23 = vld [vmem:[#allocation11 + $0xd0] sm:$0xff]  }
  0x7a   :  { %412 = vmatpush1.bf16.msra.mxu0 %v4082_v31  ;;  %605 = vmatpush1.bf16.msra.mxu1 %v4083_v32  ;;  %v176_v31 = vpack.c.bf16 %v154_v30, %v153_v29  ;;  %v155_v32 = vld [vmem:[#allocation3 + $0xa0] sm:$0xff]  ;;  %v1430_v1 = vld [vmem:[#allocation6 + $0x38] sm:$0xff]  ;;  %v4142_v24 = vld [vmem:[#allocation11 + $0x10] sm:$0xff]   ;;  %v217_v29 = vlaneseq }
  0x7b   :  { %1685 = vmatprep.subr.bf16.mxu0 %v4086_v35  ;;  %1878 = vmatprep.subr.bf16.mxu1 %v4089_v36  ;;  %v177_v34 = vpack.c.bf16 %v156_v33, %v155_v32  ;;  %v157_v35 = vld [vmem:[#allocation3 + $0xb0] sm:$0xff]  ;;  %v158_v36 = vld [vmem:[#allocation3 + $0xb8] sm:$0xff]  ;;  %v1444_v32 = vld [vmem:[#allocation6 + $0xa8] sm:$0xff] }
  0x7c   :  { %v1438_v17 = vld [vmem:[#allocation6 + $0x78] sm:$0xff]  ;;  %v4143_v27 = vld [vmem:[#allocation11 + $0x90] sm:$0xff]   ;;  %v4998_v30 = vshrl.u32 %v217_v29, 7 }
  0x7d   :  { %430 = vmatmul.mubr.bf16.vlgmr.msra.gmra.mrb[0].mxu0 %v167_v37  ;;  %623 = vmatmul.mubr.bf16.vlgmr.msra.gmra.mrb[0].mxu1 %v167_v37  ;;  %v178_v37 = vpack.c.bf16 %v158_v36, %v157_v35  ;;  %v1442_v26 = vld [vmem:[#allocation6 + $0x98] sm:$0xff]  ;;  %v215_v36 = vld [vmem:[%s7582_s3] sm:$0xf] }
  0x7e   :  { %1686 = vmatpush1.bf16.msra.mxu0 %v4084_v38  ;;  %1879 = vmatpush1.bf16.msra.mxu1 %v4087_v39  ;;  %v159_v38 = vld [vmem:[#allocation3 + $0xc0] sm:$0xff]  ;;  %v160_v39 = vld [vmem:[#allocation3 + $0xc8] sm:$0xff]  ;;  %7594 = vst [vmem:[#allocation17_spill] sm:$0xff] %v4998_v30  ;;  %v7590_v35 = vsub.s32 2, %v4998_v30 }
  0x7f   :  { %439 = vmatprep.mubr.bf16.mxu0 %v4827_v0  ;;  %632 = vmatprep.mubr.bf16.mxu1 %v4827_v0 }
  0x80   :  { %1687 = vmatprep.subr.bf16.mxu0 %v4092_v40  ;;  %1880 = vmatprep.subr.bf16.mxu1 %v4095_v41  ;;  %v179_v40 = vpack.c.bf16 %v160_v39, %v159_v38  ;;  %v161_v41 = vld [vmem:[#allocation3 + $0xd0] sm:$0xff]  ;;  %v7588_v38 = vsub.s32 3, %v4998_v30 }
  0x81   :  { %v180_v43 = vpack.c.bf16 %v162_v42, %v161_v41 }
  0x82   :  { %1688 = vmatpush1.bf16.msra.mxu0 %v4090_v44  ;;  %1881 = vmatpush1.bf16.msra.mxu1 %v4093_v45  ;;  %v163_v44 = vld [vmem:[#allocation3 + $0xe0] sm:$0xff]  ;;  %v164_v45 = vld [vmem:[#allocation3 + $0xe8] sm:$0xff]  ;;  %v5023_v42 = vrot.slane %v215_v36, %v7588_v38 }
  0x83   :  { %1689 = vmatprep.subr.bf16.mxu0 %v4098_v46  ;;  %1882 = vmatprep.subr.bf16.mxu1 %v4101_v47  ;;  %v181_v46 = vpack.c.bf16 %v164_v45, %v163_v44  ;;  %v165_v47 = vld [vmem:[#allocation3 + $0xf0] sm:$0xff]  ;;  %v1446_v44 = vld [vmem:[#allocation6 + $0xb8] sm:$0xff] }
  0x85   :  { %440 = vmatmul.mubr.bf16.gmra.mrb[4].mxu0 %v168_v48  ;;  %633 = vmatmul.mubr.bf16.gmra.mrb[4].mxu1 %v168_v48  ;;  %v166_v48 = vld [vmem:[#allocation3 + $0xf8] sm:$0xff] }
  0x86   :  { %449 = vmatprep.mubr.bf16.mxu0 %v4827_v0  ;;  %642 = vmatprep.mubr.bf16.mxu1 %v4827_v0 }
  0x87   :  { %1690 = vmatpush1.bf16.msra.mxu0 %v4096_v49  ;;  %1883 = vmatpush1.bf16.msra.mxu1 %v4099_v50  ;;  %v182_v49 = vpack.c.bf16 %v166_v48, %v165_v47  ;;  %v1423_v50 = vld [vmem:[#allocation6] sm:$0xff] }
  0x88   :  { %1691 = vmatprep.subr.bf16.mxu0 %v4104_v51  ;;  %1884 = vmatprep.subr.bf16.mxu1 %v4107_v52  ;;  %v1424_v51 = vld [vmem:[#allocation6 + $0x8] sm:$0xff] }
  0x89   :  { %v1455_v52 = vpack.c.bf16 %v1424_v51, %v1423_v50 }
  0x8b   :  { %1692 = vmatpush1.bf16.msra.mxu0 %v4102_v55  ;;  %1885 = vmatpush1.bf16.msra.mxu1 %v4105_v56  ;;  %v1456_v55 = vpack.c.bf16 %v1426_v54, %v1425_v53  ;;  %v1427_v56 = vld [vmem:[#allocation6 + $0x20] sm:$0xff]  ;;  %v1448_v53 = vld [vmem:[#allocation6 + $0xc8] sm:$0xff] }
  0x8c   :  { %1693 = vmatprep.subr.bf16.mxu0 %v4110_v57  ;;  %1886 = vmatprep.subr.bf16.mxu1 %v4113_v58  ;;  %v1428_v57 = vld [vmem:[#allocation6 + $0x28] sm:$0xff] }
  0x8d   :  { %450 = vmatmul.mubr.bf16.gmra.mrb[8].mxu0 %v169_v59  ;;  %643 = vmatmul.mubr.bf16.gmra.mrb[8].mxu1 %v169_v59  ;;  %v1457_v58 = vpack.c.bf16 %v1428_v57, %v1427_v56  ;;  %v4132_v59 = vld [vmem:[#allocation11 + $0x40] sm:$0xff]  }
  0x8e   :  { %459 = vmatprep.mubr.bf16.mxu0 %v4827_v0  ;;  %652 = vmatprep.mubr.bf16.mxu1 %v4827_v0 }
  0x8f   :  { %1694 = vmatpush1.bf16.msra.mxu0 %v4108_v60  ;;  %1887 = vmatpush1.bf16.msra.mxu1 %v4111_v61  ;;  %v4133_v60 = vld [vmem:[#allocation11 + $0xc0] sm:$0xff]  }
  0x90   :  { %1695 = vmatprep.subr.bf16.mxu0 %v4116_v62  ;;  %1888 = vmatprep.subr.bf16.mxu1 %v4119_v63  ;;  %v4134_v61 = vld [vmem:[#allocation11] sm:$0xff]   ;;  %v1429_v63 = vld [vmem:[#allocation6 + $0x30] sm:$0xff] }
  0x91   :  { %v4135_v62 = vld [vmem:[#allocation11 + $0x80] sm:$0xff]   ;;  %v1458_v2 = vpack.c.bf16 %v1430_v1, %v1429_v63  ;;  %v1452_v63 = vld [vmem:[#allocation6 + $0xe8] sm:$0xff] }
  0x93   :  { %1696 = vmatpush1.bf16.msra.mxu0 %v4114_v3  ;;  %1889 = vmatpush1.bf16.msra.mxu1 %v4117_v4  ;;  %v1431_v3 = vld [vmem:[#allocation6 + $0x40] sm:$0xff]  ;;  %v1432_v4 = vld [vmem:[#allocation6 + $0x48] sm:$0xff] }
  0x94   :  { %1697 = vmatprep.subr.bf16.mxu0 %v4122_v5  ;;  %1890 = vmatprep.subr.bf16.mxu1 %v4125_v6  ;;  %v1459_v5 = vpack.c.bf16 %v1432_v4, %v1431_v3  ;;  %v1433_v6 = vld [vmem:[#allocation6 + $0x50] sm:$0xff] }
  0x95   :  { %460 = vmatmul.mubr.bf16.gmra.mrb[12].mxu0 %v170_v7  ;;  %653 = vmatmul.mubr.bf16.gmra.mrb[12].mxu1 %v170_v7  ;;  %v1434_v7 = vld [vmem:[#allocation6 + $0x58] sm:$0xff]  ;;  %v1453_v4 = vld [vmem:[#allocation6 + $0xf0] sm:$0xff] }
  0x96   :  { %469 = vmatprep.mubr.bf16.mxu0 %v4827_v0  ;;  %662 = vmatprep.mubr.bf16.mxu1 %v4827_v0 }
  0x97   :  { %1698 = vmatpush1.bf16.msra.mxu0 %v4120_v8  ;;  %1891 = vmatpush1.bf16.msra.mxu1 %v4123_v9  ;;  %v1460_v8 = vpack.c.bf16 %v1434_v7, %v1433_v6  ;;  %v4136_v9 = vld [vmem:[#allocation11 + $0x48] sm:$0xff]  }
  0x98   :  { %1699 = vmatprep.subr.bf16.mxu0 %v4128_v10  ;;  %1892 = vmatprep.subr.bf16.mxu1 %v4131_v11  ;;  %v4137_v10 = vld [vmem:[#allocation11 + $0xc8] sm:$0xff]  }
  0x99   :  { %v4138_v11 = vld [vmem:[#allocation11 + $0x8] sm:$0xff]  }
  0x9b   :  { %1700 = vmatpush1.bf16.msra.mxu0 %v4126_v14  ;;  %1893 = vmatpush1.bf16.msra.mxu1 %v4129_v15  ;;  %v4139_v14 = vld [vmem:[#allocation11 + $0x88] sm:$0xff]   ;;  %v1461_v15 = vpack.c.bf16 %v1436_v13, %v1435_v12  ;;  %v4145_v12 = vld [vmem:[#allocation11 + $0xd8] sm:$0xff]  }
  0x9c   :  { %3799 = vmatprep.subr.bf16.mxu0 %v4132_v59  ;;  %3911 = vmatprep.subr.bf16.mxu1 %v4133_v60  ;;  %v1450_v59 = vld [vmem:[#allocation6 + $0xd8] sm:$0xff] }
  0x9d   :  { %470 = vmatmul.mubr.bf16.gmra.mrb[16].mxu0 %v171_v16  ;;  %663 = vmatmul.mubr.bf16.gmra.mrb[16].mxu1 %v171_v16  ;;  %v1437_v16 = vld [vmem:[#allocation6 + $0x70] sm:$0xff]  ;;  %v4146_v13 = vld [vmem:[#allocation11 + $0x18] sm:$0xff]  }
  0x9e   :  { %479 = vmatprep.mubr.bf16.mxu0 %v4827_v0  ;;  %672 = vmatprep.mubr.bf16.mxu1 %v4827_v0  ;;  %v1462_v18 = vpack.c.bf16 %v1438_v17, %v1437_v16  ;;  %v4147_v17 = vld [vmem:[#allocation11 + $0x98] sm:$0xff]  }
  0xa5   :  { %480 = vmatmul.mubr.bf16.gmra.mrb[20].mxu0 %v172_v19  ;;  %673 = vmatmul.mubr.bf16.gmra.mrb[20].mxu1 %v172_v19  ;;  %v1439_v19 = vld [vmem:[#allocation6 + $0x80] sm:$0xff] }
  0xa6   :  { %489 = vmatprep.mubr.bf16.mxu0 %v4827_v0  ;;  %682 = vmatprep.mubr.bf16.mxu1 %v4827_v0  ;;  %v1463_v21 = vpack.c.bf16 %v1440_v20, %v1439_v19 }
  0xad   :  { %490 = vmatmul.mubr.bf16.gmra.mrb[24].mxu0 %v173_v22  ;;  %683 = vmatmul.mubr.bf16.gmra.mrb[24].mxu1 %v173_v22  ;;  %v4140_v22 = vld [vmem:[#allocation11 + $0x50] sm:$0xff]  }
  0xae   :  { %499 = vmatprep.mubr.bf16.mxu0 %v4827_v0  ;;  %692 = vmatprep.mubr.bf16.mxu1 %v4827_v0 }
  0xb5   :  { %500 = vmatmul.mubr.bf16.gmra.mrb[28].mxu0 %v174_v25  ;;  %693 = vmatmul.mubr.bf16.gmra.mrb[28].mxu1 %v174_v25  ;;  %v1441_v25 = vld [vmem:[#allocation6 + $0x90] sm:$0xff] }
  0xb6   :  { %509 = vmatprep.mubr.bf16.mxu0 %v4827_v0  ;;  %702 = vmatprep.mubr.bf16.mxu1 %v4827_v0 }
  0xbd   :  { %510 = vmatmul.mubr.bf16.gmra.mrb[32].mxu0 %v175_v28  ;;  %703 = vmatmul.mubr.bf16.gmra.mrb[32].mxu1 %v175_v28  ;;  %v1464_v28 = vpack.c.bf16 %v1442_v26, %v1441_v25 }
  0xbe   :  { %519 = vmatprep.mubr.bf16.mxu0 %v4827_v0  ;;  %712 = vmatprep.mubr.bf16.mxu1 %v4827_v0 }
  0xc5   :  { %520 = vmatmul.mubr.bf16.gmra.mrb[36].mxu0 %v176_v31  ;;  %713 = vmatmul.mubr.bf16.gmra.mrb[36].mxu1 %v176_v31  ;;  %v1443_v31 = vld [vmem:[#allocation6 + $0xa0] sm:$0xff] }
  0xc6   :  { %529 = vmatprep.mubr.bf16.mxu0 %v4827_v0  ;;  %722 = vmatprep.mubr.bf16.mxu1 %v4827_v0  ;;  %v1465_v33 = vpack.c.bf16 %v1444_v32, %v1443_v31 }
  0xcd   :  { %530 = vmatmul.mubr.bf16.gmra.mrb[40].mxu0 %v177_v34  ;;  %723 = vmatmul.mubr.bf16.gmra.mrb[40].mxu1 %v177_v34  ;;  %v7591_v34 = vsub.s32 0, %v4998_v30 }
  0xce   :  { %539 = vmatprep.mubr.bf16.mxu0 %v4827_v0  ;;  %732 = vmatprep.mubr.bf16.mxu1 %v4827_v0 }
  0xcf   :  { %v5011_v39 = vrot.slane %v215_v36, %v7591_v34 }
  0xd5   :  { %540 = vmatmul.mubr.bf16.gmra.mrb[44].mxu0 %v178_v37  ;;  %733 = vmatmul.mubr.bf16.gmra.mrb[44].mxu1 %v178_v37  ;;  %v7589_v37 = vsub.s32 1, %v4998_v30  ;;  %v4161_v30 = vld [vmem:[#allocation11 + $0xf8] sm:$0xff]  }
  0xd6   :  { %549 = vmatprep.mubr.bf16.mxu0 %v4827_v0  ;;  %742 = vmatprep.mubr.bf16.mxu1 %v4827_v0 }
  0xd7   :  { %v5019_v41 = vrot.slane %v215_v36, %v7589_v37 }
  0xdd   :  { %550 = vmatmul.mubr.bf16.gmra.mrb[48].mxu0 %v179_v40  ;;  %743 = vmatmul.mubr.bf16.gmra.mrb[48].mxu1 %v179_v40  ;;  %v5015_v40 = vrot.slane %v215_v36, %v7590_v35 }
  0xde   :  { %559 = vmatprep.mubr.bf16.mxu0 %v4827_v0  ;;  %752 = vmatprep.mubr.bf16.mxu1 %v4827_v0 }
  0xe5   :  { %560 = vmatmul.mubr.bf16.gmra.mrb[52].mxu0 %v180_v43  ;;  %753 = vmatmul.mubr.bf16.gmra.mrb[52].mxu1 %v180_v43  ;;  %v1445_v43 = vld [vmem:[#allocation6 + $0xb0] sm:$0xff] }
  0xe6   :  { %569 = vmatprep.mubr.bf16.mxu0 %v4827_v0  ;;  %762 = vmatprep.mubr.bf16.mxu1 %v4827_v0  ;;  %v1466_v51 = vpack.c.bf16 %v1446_v44, %v1445_v43 }
  0xed   :  { %570 = vmatmul.mubr.bf16.gmra.mrb[56].mxu0 %v181_v46  ;;  %763 = vmatmul.mubr.bf16.gmra.mrb[56].mxu1 %v181_v46 }
  0xee   :  { %579 = vmatprep.mubr.bf16.mxu0 %v4827_v0  ;;  %772 = vmatprep.mubr.bf16.mxu1 %v4827_v0 }
  0xf5   :  { %580 = vmatmul.mubr.bf16.gmra.mrb[60].mxu0 %v182_v49  ;;  %773 = vmatmul.mubr.bf16.gmra.mrb[60].mxu1 %v182_v49 }
  0xf6   :  { %1717 = vmatprep.mubr.bf16.mxu0 %v4827_v0  ;;  %1910 = vmatprep.mubr.bf16.mxu1 %v4827_v0 }
  0xfd   :  { %1718 = vmatmul.mubr.bf16.vlgmr.msra.gmra.mrb[64].mxu0 %v1455_v52  ;;  %1911 = vmatmul.mubr.bf16.vlgmr.msra.gmra.mrb[64].mxu1 %v1455_v52  ;;  %v1447_v52 = vld [vmem:[#allocation6 + $0xc0] sm:$0xff] }
  0xfe   :  { %1727 = vmatprep.mubr.bf16.mxu0 %v4827_v0  ;;  %1920 = vmatprep.mubr.bf16.mxu1 %v4827_v0  ;;  %v1467_v3 = vpack.c.bf16 %v1448_v53, %v1447_v52 }
  0xff   :  { %3800 = vmatpush3.bf16.msra.mxu0 %v4134_v61  ;;  %3912 = vmatpush3.bf16.msra.mxu1 %v4135_v62  ;;  %v1451_v62 = vld [vmem:[#allocation6 + $0xe0] sm:$0xff] }
 0x100   :  { %3801 = vmatprep.subr.bf16.mxu0 %v4136_v9  ;;  %3913 = vmatprep.subr.bf16.mxu1 %v4137_v10  ;;  %v5039_v16 = vpack.c.bf16 %v1452_v63, %v1451_v62 }
 0x103   :  { %3802 = vmatpush3.bf16.msra.mxu0 %v4138_v11  ;;  %3914 = vmatpush3.bf16.msra.mxu1 %v4139_v14  ;;  %v4144_v11 = vld [vmem:[#allocation11 + $0x58] sm:$0xff]  }
 0x104   :  { %3803 = vmatprep.subr.bf16.mxu0 %v4140_v22  ;;  %3915 = vmatprep.subr.bf16.mxu1 %v4141_v23 }
 0x105   :  { %1728 = vmatmul.mubr.bf16.gmra.mrb[68].mxu0 %v1456_v55  ;;  %1921 = vmatmul.mubr.bf16.gmra.mrb[68].mxu1 %v1456_v55 }
 0x106   :  { %1737 = vmatprep.mubr.bf16.mxu0 %v4827_v0  ;;  %1930 = vmatprep.mubr.bf16.mxu1 %v4827_v0 }
 0x107   :  { %3804 = vmatpush3.bf16.msra.mxu0 %v4142_v24  ;;  %3916 = vmatpush3.bf16.msra.mxu1 %v4143_v27 }
 0x108   :  { %3805 = vmatprep.subr.bf16.mxu0 %v4144_v11  ;;  %3917 = vmatprep.subr.bf16.mxu1 %v4145_v12 }
 0x10b   :  { %3806 = vmatpush3.bf16.msra.mxu0 %v4146_v13  ;;  %3918 = vmatpush3.bf16.msra.mxu1 %v4147_v17 }
 0x10d   :  { %1738 = vmatmul.mubr.bf16.gmra.mrb[72].mxu0 %v1457_v58  ;;  %1931 = vmatmul.mubr.bf16.gmra.mrb[72].mxu1 %v1457_v58  ;;  %v1449_v58 = vld [vmem:[#allocation6 + $0xd0] sm:$0xff] }
 0x10e   :  { %1747 = vmatprep.mubr.bf16.mxu0 %v4827_v0  ;;  %1940 = vmatprep.mubr.bf16.mxu1 %v4827_v0  ;;  %v5033_v10 = vpack.c.bf16 %v1450_v59, %v1449_v58 }
 0x115   :  { %1748 = vmatmul.mubr.bf16.gmra.mrb[76].mxu0 %v1458_v2  ;;  %1941 = vmatmul.mubr.bf16.gmra.mrb[76].mxu1 %v1458_v2 }
 0x116   :  { %1757 = vmatprep.mubr.bf16.mxu0 %v4827_v0  ;;  %1950 = vmatprep.mubr.bf16.mxu1 %v4827_v0 }
 0x11d   :  { %1758 = vmatmul.mubr.bf16.gmra.mrb[80].mxu0 %v1459_v5  ;;  %1951 = vmatmul.mubr.bf16.gmra.mrb[80].mxu1 %v1459_v5  ;;  %v1454_v5 = vld [vmem:[#allocation6 + $0xf8] sm:$0xff] }
 0x11e   :  { %1767 = vmatprep.mubr.bf16.mxu0 %v4827_v0  ;;  %1960 = vmatprep.mubr.bf16.mxu1 %v4827_v0  ;;  %v5043_v20 = vpack.c.bf16 %v1454_v5, %v1453_v4 }
 0x125   :  { %1768 = vmatmul.mubr.bf16.gmra.mrb[84].mxu0 %v1460_v8  ;;  %1961 = vmatmul.mubr.bf16.gmra.mrb[84].mxu1 %v1460_v8 }
 0x126   :  { %1777 = vmatprep.mubr.bf16.mxu0 %v4827_v0  ;;  %1970 = vmatprep.mubr.bf16.mxu1 %v4827_v0 }
 0x12d   :  { %1778 = vmatmul.mubr.bf16.gmra.mrb[88].mxu0 %v1461_v15  ;;  %1971 = vmatmul.mubr.bf16.gmra.mrb[88].mxu1 %v1461_v15 }
 0x12e   :  { %1787 = vmatprep.mubr.bf16.mxu0 %v4827_v0  ;;  %1980 = vmatprep.mubr.bf16.mxu1 %v4827_v0 }
 0x135   :  { %1788 = vmatmul.mubr.bf16.gmra.mrb[92].mxu0 %v1462_v18  ;;  %1981 = vmatmul.mubr.bf16.gmra.mrb[92].mxu1 %v1462_v18 }
 0x136   :  { %1797 = vmatprep.mubr.bf16.mxu0 %v4827_v0  ;;  %1990 = vmatprep.mubr.bf16.mxu1 %v4827_v0 }
 0x13d   :  { %1798 = vmatmul.mubr.bf16.gmra.mrb[96].mxu0 %v1463_v21  ;;  %1991 = vmatmul.mubr.bf16.gmra.mrb[96].mxu1 %v1463_v21 }
 0x13e   :  { %1807 = vmatprep.mubr.bf16.mxu0 %v4827_v0  ;;  %2000 = vmatprep.mubr.bf16.mxu1 %v4827_v0 }
 0x145   :  { %1808 = vmatmul.mubr.bf16.gmra.mrb[100].mxu0 %v1464_v28  ;;  %2001 = vmatmul.mubr.bf16.gmra.mrb[100].mxu1 %v1464_v28 }
 0x146   :  { %1817 = vmatprep.mubr.bf16.mxu0 %v4827_v0  ;;  %2010 = vmatprep.mubr.bf16.mxu1 %v4827_v0 }
 0x14d   :  { %1818 = vmatmul.mubr.bf16.gmra.mrb[104].mxu0 %v1465_v33  ;;  %2011 = vmatmul.mubr.bf16.gmra.mrb[104].mxu1 %v1465_v33 }
 0x14e   :  { %1827 = vmatprep.mubr.bf16.mxu0 %v4827_v0  ;;  %2020 = vmatprep.mubr.bf16.mxu1 %v4827_v0 }
 0x150   :  { %v431_v45 = vpop.f32.mrb[0].mxu0  ;;  %v624_v46 = vpop.f32.mrb[0].mxu1 }
 0x151   :  { %v432_v47 = vadd.f32 %v431_v45, %v5011_v39  ;;  %v625_v48 = vadd.f32 %v624_v46, %v5015_v40  ;;  %v433_v49 = vpop.f32.mrb[1].mxu0  ;;  %v626_v50 = vpop.f32.mrb[1].mxu1 }
 0x152   :  { %v434_v54 = vadd.f32 %v433_v49, %v5019_v41  ;;  %v627_v55 = vadd.f32 %v626_v50, %v5023_v42  ;;  %v435_v56 = vpop.f32.mrb[2].mxu0  ;;  %v628_v57 = vpop.f32.mrb[2].mxu1 }
 0x153   :  { %v911_v60 = vmul.f32 0.70710677, %v432_v47  ;;  %v913_v61 = vmul.f32 0.70710677, %v625_v48  ;;  %v436_v6 = vadd.f32 %v435_v56, %v5011_v39  ;;  %v629_v7 = vadd.f32 %v628_v57, %v5015_v40  ;;  %v437_v8 = vpop.f32.mrb[3].mxu0  ;;  %v630_v9 = vpop.f32.mrb[3].mxu1 }
 0x154   :  { %v912_v1 = vmul.f32 0.70710677, %v434_v54  ;;  %v914_v2 = vmul.f32 0.70710677, %v627_v55  ;;  %v438_v14 = vadd.f32 %v437_v8, %v5019_v41  ;;  %v631_v15 = vadd.f32 %v630_v9, %v5023_v42 }
 0x155   :  { %4164 = verf.f32 %v911_v60  ;;  %1828 = vmatmul.mubr.bf16.gmra.mrb[108].mxu0 %v1466_v51  ;;  %2021 = vmatmul.mubr.bf16.gmra.mrb[108].mxu1 %v1466_v51  ;;  %v5041_v18 = vmul.f32 0.5, %v432_v47  ;;  %v915_v19 = vmul.f32 0.70710677, %v436_v6  ;;  %v5045_v21 = vmul.f32 0.5, %v625_v48 }
 0x156   :  { %4166 = verf.f32 %v913_v61  ;;  %1837 = vmatprep.mubr.bf16.mxu0 %v4827_v0  ;;  %2030 = vmatprep.mubr.bf16.mxu1 %v4827_v0  ;;  %v917_v22 = vmul.f32 0.70710677, %v629_v7  ;;  %v916_v23 = vmul.f32 0.70710677, %v438_v14  ;;  %v5047_v25 = vmul.f32 0.5, %v434_v54 }
 0x157   :  { %4168 = verf.f32 %v912_v1  ;;  %v918_v26 = vmul.f32 0.70710677, %v631_v15  ;;  %v5050_v31 = vmul.f32 0.5, %v627_v55  ;;  %v5054_v44 = vmul.f32 0.5, %v436_v6 }
 0x158   :  { %4170 = verf.f32 %v914_v2  ;;  %v441_v24 = vpop.f32.mrb[4].mxu0  ;;  %v634_v28 = vpop.f32.mrb[4].mxu1  ;;  %v5057_v49 = vmul.f32 0.5, %v629_v7  ;;  %v5059_v50 = vmul.f32 0.5, %v438_v14  ;;  %v5061_v53 = vmul.f32 0.5, %v631_v15 }
 0x159   :  { %4172 = verf.f32 %v915_v19  ;;  %v442_v27 = vadd.f32 %v441_v24, %v5011_v39  ;;  %v443_v29 = vpop.f32.mrb[5].mxu0  ;;  %v635_v32 = vadd.f32 %v634_v28, %v5015_v40  ;;  %v636_v36 = vpop.f32.mrb[5].mxu1 }
 0x15a   :  { %4174 = verf.f32 %v917_v22  ;;  %v444_v33 = vadd.f32 %v443_v29, %v5019_v41  ;;  %v445_v43 = vpop.f32.mrb[6].mxu0  ;;  %v637_v46 = vadd.f32 %v636_v36, %v5023_v42  ;;  %v638_v47 = vpop.f32.mrb[6].mxu1 }
 0x15b   :  { %4176 = verf.f32 %v916_v23  ;;  %v919_v45 = vmul.f32 0.70710677, %v442_v27  ;;  %v447_v48 = vpop.f32.mrb[7].mxu0  ;;  %v921_v51 = vmul.f32 0.70710677, %v635_v32  ;;  %v640_v52 = vpop.f32.mrb[7].mxu1  ;;  %v446_v56 = vadd.f32 %v445_v43, %v5011_v39 }
 0x15c   :  { %4178 = verf.f32 %v918_v26  ;;  %v920_v54 = vmul.f32 0.70710677, %v444_v33  ;;  %v922_v55 = vmul.f32 0.70710677, %v637_v46  ;;  %v639_v57 = vadd.f32 %v638_v47, %v5015_v40 }
 0x15d   :  { %4180 = verf.f32 %v919_v45  ;;  %1838 = vmatmul.mubr.bf16.gmra.mrb[112].mxu0 %v1467_v3  ;;  %2031 = vmatmul.mubr.bf16.gmra.mrb[112].mxu1 %v1467_v3  ;;  %v448_v58 = vadd.f32 %v447_v48, %v5019_v41  ;;  %v5068_v60 = vmul.f32 0.5, %v442_v27  ;;  %v5070_v61 = vmul.f32 0.5, %v635_v32 }
 0x15e   :  { %4182 = verf.f32 %v921_v51  ;;  %1847 = vmatprep.mubr.bf16.mxu0 %v4827_v0  ;;  %2040 = vmatprep.mubr.bf16.mxu1 %v4827_v0  ;;  %v5072_v62 = vmul.f32 0.5, %v444_v33  ;;  %v923_v2 = vmul.f32 0.70710677, %v446_v56  ;;  %v641_v3 = vadd.f32 %v640_v52, %v5023_v42 }
 0x15f   :  { %v4165_v59 = vpop.eup %4164  ;;  %4184 = verf.f32 %v920_v54  ;;  %v5075_v8 = vmul.f32 0.5, %v637_v46  ;;  %v5077_v9 = vmul.f32 0.5, %v446_v56  ;;  %v925_v11 = vmul.f32 0.70710677, %v639_v57 }
 0x160   :  { %v4167_v63 = vpop.eup %4166  ;;  %v1167_v1 = vadd.f32 1.0, %v4165_v59  ;;  %4186 = verf.f32 %v922_v55  ;;  %v451_v4 = vpop.f32.mrb[8].mxu0  ;;  %v5079_v15 = vmul.f32 0.5, %v639_v57  ;;  %v924_v17 = vmul.f32 0.70710677, %v448_v58 }
 0x161   :  { %v644_v5 = vpop.f32.mrb[8].mxu1  ;;  %v4169_v6 = vpop.eup %4168  ;;  %v1169_v7 = vadd.f32 1.0, %v4167_v63  ;;  %4188 = verf.f32 %v923_v2  ;;  %v5084_v27 = vmul.f32 0.5, %v448_v58  ;;  %v926_v43 = vmul.f32 0.70710677, %v641_v3 }
 0x162   :  { %v453_v12 = vpop.f32.mrb[9].mxu0  ;;  %v4171_v13 = vpop.eup %4170  ;;  %v1168_v14 = vadd.f32 1.0, %v4169_v6  ;;  %v5082_v24 = vmul.f32 %v1167_v1, %v5041_v18  ;;  %4190 = verf.f32 %v925_v11  ;;  %v5091_v48 = vmul.f32 0.5, %v641_v3 }
 0x163   :  { %v646_v19 = vpop.f32.mrb[9].mxu1  ;;  %v455_v22 = vpop.f32.mrb[10].mxu0  ;;  %v1170_v26 = vadd.f32 1.0, %v4171_v13  ;;  %v5087_v33 = vmul.f32 %v1169_v7, %v5045_v21  ;;  %4192 = verf.f32 %v924_v17  ;;  %v452_v18 = vadd.f32 %v451_v4, %v5011_v39 }
 0x164   :  { %v4173_v23 = vpop.eup %4172  ;;  %7595 = vst [vmem:[#allocation18_spill] sm:$0xff] %v5082_v24  ;;  %v648_v28 = vpop.f32.mrb[10].mxu1  ;;  %v645_v51 = vadd.f32 %v644_v5, %v5015_v40  ;;  %v5098_v21 = vmul.f32 %v1168_v14, %v5047_v25  ;;  %4194 = verf.f32 %v926_v43  ;;  %v454_v55 = vadd.f32 %v453_v12, %v5019_v41  ;;  %v4159_v24 = vld [vmem:[#allocation11 + $0xb0] sm:$0xff]  }
 0x165   :  { %v457_v29 = vpop.f32.mrb[11].mxu0  ;;  %v4175_v32 = vpop.eup %4174  ;;  %7596 = vst [vmem:[#allocation19_spill] sm:$0xff] %v5087_v33  ;;  %v1171_v36 = vadd.f32 1.0, %v4173_v23  ;;  %1848 = vmatmul.mubr.bf16.gmra.mrb[116].mxu0 %v5033_v10  ;;  %2041 = vmatmul.mubr.bf16.gmra.mrb[116].mxu1 %v5033_v10  ;;  %v5104_v57 = vmul.f32 %v1170_v26, %v5050_v31  ;;  %v927_v59 = vmul.f32 0.70710677, %v452_v18  ;;  %v5112_v2 = vmul.f32 0.5, %v452_v18 }
 0x166   :  { %v5089_v45 = vpop.f32.mrb[11].mxu1  ;;  %v4177_v46 = vpop.eup %4176  ;;  %v1173_v47 = vadd.f32 1.0, %v4175_v32  ;;  %7597 = vst [vmem:[#allocation20_spill] sm:$0xff] %v5098_v21  ;;  %1857 = vmatprep.mubr.bf16.mxu0 %v4827_v0  ;;  %2050 = vmatprep.mubr.bf16.mxu1 %v4827_v0  ;;  %v929_v3 = vmul.f32 0.70710677, %v645_v51  ;;  %v5121_v7 = vmul.f32 0.5, %v645_v51  ;;  %v456_v43 = vadd.f32 %v455_v22, %v5011_v39 }
 0x167   :  { %v4179_v52 = vpop.eup %4178  ;;  %v1172_v54 = vadd.f32 1.0, %v4177_v46  ;;  %7598 = vst [vmem:[#allocation21_spill] sm:$0xff] %v5104_v57  ;;  %v5107_v58 = vmul.f32 %v1171_v36, %v5054_v44  ;;  %4196 = verf.f32 %v927_v59  ;;  %v928_v17 = vmul.f32 0.70710677, %v454_v55  ;;  %v4156_v21 = vld [vmem:[#allocation11 + $0x70] sm:$0xff]  }
 0x168   :  { %v4181_v56 = vpop.eup %4180  ;;  %v1174_v10 = vadd.f32 1.0, %v4179_v52  ;;  %v5110_v25 = vmul.f32 %v1173_v47, %v5057_v49  ;;  %v5114_v4 = vpop.f32.mrb[12].mxu0  ;;  %4198 = verf.f32 %v929_v3  ;;  %v5132_v32 = vmul.f32 0.5, %v454_v55 }
 0x169   :  { %7599 = vst [vmem:[#allocation22_spill] sm:$0xff] %v5107_v58  ;;  %v4183_v63 = vpop.eup %4182  ;;  %v1175_v1 = vadd.f32 1.0, %v4181_v56  ;;  %v5116_v5 = vpop.f32.mrb[12].mxu1  ;;  %v5119_v31 = vmul.f32 %v1172_v54, %v5059_v50  ;;  %v647_v36 = vadd.f32 %v646_v19, %v5023_v42  ;;  %4200 = verf.f32 %v928_v17 }
 0x16a   :  { %7600 = vst [vmem:[#allocation23_spill] sm:$0xff] %v5110_v25  ;;  %v4185_v6 = vpop.eup %4184  ;;  %v1177_v44 = vadd.f32 1.0, %v4183_v63  ;;  %v463_v11 = vpop.f32.mrb[13].mxu0  ;;  %v5126_v13 = vmul.f32 %v1174_v10, %v5061_v53  ;;  %v649_v51 = vadd.f32 %v648_v28, %v5015_v40  ;;  %v458_v52 = vadd.f32 %v457_v29, %v5019_v41  ;;  %v4149_v10 = vld [vmem:[#allocation11 + $0xe0] sm:$0xff]   ;;  %v4158_v25 = vld [vmem:[#allocation11 + $0x30] sm:$0xff]  }
 0x16b   :  { %7601 = vst [vmem:[#allocation24_spill] sm:$0xff] %v5119_v31  ;;  %v5123_v12 = vpop.f32.mrb[13].mxu1  ;;  %v4187_v49 = vpop.eup %4186  ;;  %v1176_v14 = vadd.f32 1.0, %v4185_v6  ;;  %v5141_v18 = vmul.f32 %v1175_v1, %v5068_v60  ;;  %v930_v56 = vmul.f32 0.70710677, %v647_v36  ;;  %v4148_v60 = vld [vmem:[#allocation11 + $0x60] sm:$0xff]   ;;  %3919 = vmatprep.subr.bf16.mxu1 %v4149_v10 }
 0x16c   :  { %7602 = vst [vmem:[#allocation25_spill] sm:$0xff] %v5126_v13  ;;  %v5128_v23 = vpop.f32.mrb[14].mxu0  ;;  %v5130_v26 = vpop.f32.mrb[14].mxu1  ;;  %v1178_v50 = vadd.f32 1.0, %v4187_v49  ;;  %v5146_v55 = vmul.f32 %v1177_v44, %v5070_v61  ;;  %v5156_v63 = vmul.f32 0.5, %v647_v36  ;;  %v5160_v3 = vmul.f32 0.5, %v456_v43  ;;  %3807 = vmatprep.subr.bf16.mxu0 %v4148_v60 }
 0x16d   :  { %v5136_v46 = vpop.f32.mrb[15].mxu0  ;;  %v5138_v47 = vpop.f32.mrb[15].mxu1  ;;  %7603 = vst [vmem:[#allocation26_spill] sm:$0xff] %v5141_v18  ;;  %v5149_v19 = vmul.f32 %v1176_v14, %v5072_v62  ;;  %1858 = vmatmul.mubr.bf16.gmra.mrb[120].mxu0 %v5039_v16  ;;  %2051 = vmatmul.mubr.bf16.gmra.mrb[120].mxu1 %v5039_v16  ;;  %v931_v61 = vmul.f32 0.70710677, %v456_v43  ;;  %v4150_v62 = vld [vmem:[#allocation11 + $0x20] sm:$0xff]   ;;  %4202 = verf.f32 %v930_v56  ;;  %v651_v43 = vadd.f32 %v5089_v45, %v5023_v42 }
 0x16e   :  { %v4189_v53 = vpop.eup %4188  ;;  %7604 = vst [vmem:[#allocation27_spill] sm:$0xff] %v5146_v55  ;;  %v5154_v28 = vmul.f32 %v1178_v50, %v5075_v8  ;;  %1867 = vmatprep.mubr.bf16.mxu0 %v4827_v0  ;;  %2060 = vmatprep.mubr.bf16.mxu1 %v4827_v0  ;;  %v933_v16 = vmul.f32 0.70710677, %v649_v51  ;;  %v4151_v6 = vld [vmem:[#allocation11 + $0xa0] sm:$0xff]   ;;  %v5165_v49 = vmul.f32 0.5, %v649_v51  ;;  %v462_v51 = vadd.f32 %v5114_v4, %v5011_v39 }
 0x16f   :  { %v4191_v54 = vpop.eup %4190  ;;  %7605 = vst [vmem:[#allocation28_spill] sm:$0xff] %v5149_v19  ;;  %v1179_v22 = vadd.f32 1.0, %v4189_v53  ;;  %4204 = verf.f32 %v931_v61  ;;  %v932_v14 = vmul.f32 0.70710677, %v458_v52  ;;  %3808 = vmatpush3.bf16.msra.mxu0 %v4150_v62  ;;  %3920 = vmatpush3.bf16.msra.mxu1 %v4151_v6  ;;  %v5190_v10 = vmul.f32 0.5, %v458_v52 }
 0x170   :  { %v4193_v59 = vpop.eup %4192  ;;  %7606 = vst [vmem:[#allocation29_spill] sm:$0xff] %v5154_v28  ;;  %v1181_v29 = vadd.f32 1.0, %v4191_v54  ;;  %v471_v17 = vpop.f32.mrb[16].mxu0  ;;  %4206 = verf.f32 %v933_v16  ;;  %v655_v54 = vadd.f32 %v5116_v5, %v5015_v40  ;;  %v5201_v16 = vmul.f32 0.5, %v651_v43 }
 0x171   :  { %v1180_v1 = vadd.f32 1.0, %v4193_v59  ;;  %v4195_v44 = vpop.eup %4194  ;;  %v5163_v8 = vmul.f32 %v1179_v22, %v5077_v9  ;;  %v5167_v50 = vpop.f32.mrb[16].mxu1  ;;  %4208 = verf.f32 %v932_v14  ;;  %v934_v59 = vmul.f32 0.70710677, %v651_v43 }
 0x172   :  { %v5170_v0 = vmul.f32 %v1181_v29, %v5079_v15  ;;  %v1182_v36 = vadd.f32 1.0, %v4195_v44  ;;  %v5174_v53 = vpop.f32.mrb[17].mxu0  ;;  %v5176_v9 = vpop.f32.mrb[17].mxu1  ;;  %v464_v15 = vadd.f32 %v463_v11, %v5019_v41  ;;  %v657_v29 = vadd.f32 %v5123_v12, %v5023_v42 }
 0x173   :  { %7607 = vst [vmem:[#allocation30_spill] sm:$0xff] %v5163_v8  ;;  %v5183_v22 = vpop.f32.mrb[18].mxu0  ;;  %v5185_v56 = vpop.f32.mrb[18].mxu1  ;;  %v5188_v45 = vmul.f32 %v1180_v1, %v5084_v27  ;;  %v935_v6 = vmul.f32 0.70710677, %v462_v51  ;;  %4210 = verf.f32 %v934_v59  ;;  %v5203_v52 = vmul.f32 0.5, %v462_v51 }
 0x174   :  { %7608 = vst [vmem:[#allocation31_spill] sm:$0xff] %v5170_v0  ;;  %v4197_v60 = vpop.eup %4196  ;;  %v5194_v4 = vpop.f32.mrb[19].mxu0  ;;  %v5199_v11 = vmul.f32 %v1182_v36, %v5091_v48  ;;  %v937_v1 = vmul.f32 0.70710677, %v655_v54  ;;  %v5207_v44 = vmul.f32 0.5, %v655_v54  ;;  %v5209_v14 = vmul.f32 0.5, %v464_v15 }
 0x175   :  { %7609 = vst [vmem:[#allocation32_spill] sm:$0xff] %v5188_v45  ;;  %v5196_v61 = vpop.f32.mrb[19].mxu1  ;;  %v4199_v5 = vpop.eup %4198  ;;  %v1183_v62 = vadd.f32 1.0, %v4197_v60  ;;  %1868 = vmatmul.mubr.bf16.gmra.mrb[124].mxu0 %v5043_v20  ;;  %2061 = vmatmul.mubr.bf16.gmra.mrb[124].mxu1 %v5043_v20  ;;  %4212 = verf.f32 %v935_v6  ;;  %v936_v48 = vmul.f32 0.70710677, %v464_v15  ;;  %v466_v51 = vadd.f32 %v5128_v23, %v5011_v39 }
 0x176   :  { %7610 = vst [vmem:[#allocation33_spill] sm:$0xff] %v5199_v11  ;;  %v1185_v27 = vadd.f32 1.0, %v4199_v5  ;;  %v4201_v12 = vpop.eup %4200  ;;  %4214 = verf.f32 %v937_v1  ;;  %v938_v60 = vmul.f32 0.70710677, %v657_v29  ;;  %v659_v20 = vadd.f32 %v5130_v26, %v5015_v40 }
 0x177   :  { %v5212_v36 = vmul.f32 %v1183_v62, %v5112_v2  ;;  %v1184_v43 = vadd.f32 1.0, %v4201_v12  ;;  %4216 = verf.f32 %v936_v48  ;;  %v468_v54 = vadd.f32 %v5136_v46, %v5019_v41  ;;  %v4203_v15 = vpop.eup %4202 }
 0x178   :  { %v5220_v59 = vpop.f32.mrb[20].mxu0  ;;  %v5222_v5 = vpop.f32.mrb[20].mxu1  ;;  %v5225_v2 = vmul.f32 %v1185_v27, %v5121_v7  ;;  %v5227_v62 = vmul.f32 0.5, %v657_v29  ;;  %4218 = verf.f32 %v938_v60  ;;  %v661_v23 = vadd.f32 %v5138_v47, %v5023_v42 }
 0x179   :  { %7611 = vst [vmem:[#allocation34_spill] sm:$0xff] %v5212_v36  ;;  %v5231_v6 = vpop.f32.mrb[21].mxu0  ;;  %v5233_v26 = vpop.f32.mrb[21].mxu1  ;;  %v5236_v46 = vmul.f32 %v1184_v43, %v5132_v32  ;;  %v1186_v12 = vadd.f32 1.0, %v4203_v15  ;;  %v939_v48 = vmul.f32 0.70710677, %v466_v51  ;;  %v472_v38 = vadd.f32 %v471_v17, %v5011_v39 }
 0x17a   :  { %7612 = vst [vmem:[#allocation35_spill] sm:$0xff] %v5225_v2  ;;  %v4205_v1 = vpop.eup %4204  ;;  %v5239_v7 = vpop.f32.mrb[22].mxu0  ;;  %v5241_v60 = vmul.f32 0.5, %v466_v51  ;;  %v941_v37 = vmul.f32 0.70710677, %v659_v20  ;;  %v5243_v2 = vmul.f32 0.5, %v659_v20 }
 0x17b   :  { %7613 = vst [vmem:[#allocation36_spill] sm:$0xff] %v5236_v46  ;;  %v4207_v29 = vpop.eup %4206  ;;  %v1187_v27 = vadd.f32 1.0, %v4205_v1  ;;  %v940_v47 = vmul.f32 0.70710677, %v468_v54  ;;  %4220 = verf.f32 %v939_v48  ;;  %v5245_v36 = vmul.f32 0.5, %v468_v54  ;;  %v5247_v32 = vpop.f32.mrb[22].mxu1 }
 0x17c   :  { %v4209_v35 = vpop.eup %4208  ;;  %v1189_v34 = vadd.f32 1.0, %v4207_v29  ;;  %v5249_v43 = vpop.f32.mrb[23].mxu0  ;;  %v5252_v17 = vmul.f32 %v1186_v12, %v5156_v63  ;;  %4222 = verf.f32 %v941_v37  ;;  %v5254_v15 = vmul.f32 0.5, %v661_v23 }
 0x17d   :  { %v942_v51 = vmul.f32 0.70710677, %v661_v23  ;;  %v5256_v1 = vpop.f32.mrb[23].mxu1  ;;  %v5259_v29 = vmul.f32 %v1187_v27, %v5160_v3  ;;  %v1188_v20 = vadd.f32 1.0, %v4209_v35  ;;  %4224 = verf.f32 %v940_v47  ;;  %v4211_v48 = vpop.eup %4210 }
 0x17e   :  { %7614 = vst [vmem:[#allocation37_spill] sm:$0xff] %v5252_v17  ;;  %v943_v54 = vmul.f32 0.70710677, %v472_v38  ;;  %v5262_v46 = vmul.f32 %v1189_v34, %v5165_v49  ;;  %v665_v63 = vadd.f32 %v5167_v50, %v5015_v40  ;;  %v474_v37 = vadd.f32 %v5174_v53, %v5019_v41 }
 0x17f   :  { %7615 = vst [vmem:[#allocation38_spill] sm:$0xff] %v5259_v29  ;;  %4226 = verf.f32 %v942_v51  ;;  %v4213_v23 = vpop.eup %4212  ;;  %v1190_v12 = vadd.f32 1.0, %v4211_v48  ;;  %v5268_v17 = vmul.f32 0.5, %v472_v38  ;;  %v667_v35 = vadd.f32 %v5176_v9, %v5023_v42 }
 0x180   :  { %7616 = vst [vmem:[#allocation39_spill] sm:$0xff] %v5262_v46  ;;  %4228 = verf.f32 %v943_v54  ;;  %v5272_v3 = vpop.f32.mrb[24].mxu0  ;;  %v5274_v27 = vpop.f32.mrb[24].mxu1  ;;  %v1191_v49 = vadd.f32 1.0, %v4213_v23  ;;  %v5276_v47 = vmul.f32 0.5, %v665_v63  ;;  %v476_v53 = vadd.f32 %v5183_v22, %v5011_v39 }
 0x181   :  { %v4215_v34 = vpop.eup %4214  ;;  %v945_v50 = vmul.f32 0.70710677, %v665_v63  ;;  %v5280_v51 = vpop.f32.mrb[25].mxu0  ;;  %v5283_v54 = vmul.f32 %v1188_v20, %v5190_v10  ;;  %v5285_v9 = vmul.f32 0.5, %v474_v37  ;;  %v944_v46 = vmul.f32 0.70710677, %v474_v37 }
 0x182   :  { %v4217_v38 = vpop.eup %4216  ;;  %v1193_v48 = vadd.f32 1.0, %v4215_v34  ;;  %v5287_v29 = vpop.f32.mrb[25].mxu1  ;;  %v5292_v63 = vmul.f32 %v1190_v12, %v5201_v16  ;;  %v946_v22 = vmul.f32 0.70710677, %v667_v35  ;;  %v5299_v10 = vmul.f32 %v1191_v49, %v5203_v52  ;;  %v4155_v49 = vld [vmem:[#allocation11 + $0xa8] sm:$0xff]  }
 0x183   :  { %7617 = vst [vmem:[#allocation40_spill] sm:$0xff] %v5283_v54  ;;  %v5289_v0 = vpop.f32.mrb[26].mxu0  ;;  %v4219_v23 = vpop.eup %4218  ;;  %v1192_v55 = vadd.f32 1.0, %v4217_v38  ;;  %4230 = verf.f32 %v945_v50  ;;  %v5301_v37 = vmul.f32 0.5, %v667_v35  ;;  %v947_v16 = vmul.f32 0.70710677, %v476_v53 }
 0x184   :  { %7618 = vst [vmem:[#allocation41_spill] sm:$0xff] %v5292_v63  ;;  %v5294_v8 = vpop.f32.mrb[26].mxu1  ;;  %v5296_v18 = vpop.f32.mrb[27].mxu0  ;;  %7619 = vst [vmem:[#allocation42_spill] sm:$0xff] %v5299_v10  ;;  %v1194_v20 = vadd.f32 1.0, %v4219_v23  ;;  %4232 = verf.f32 %v944_v46  ;;  %v5306_v54 = vmul.f32 %v1193_v48, %v5207_v44  ;;  %v669_v12 = vadd.f32 %v5185_v56, %v5015_v40  ;;  %v4152_v50 = vld [vmem:[#allocation11 + $0x68] sm:$0xff]  }
 0x185   :  { %v5303_v34 = vpop.f32.mrb[27].mxu1  ;;  %4234 = verf.f32 %v946_v22  ;;  %v4153_v38 = vld [vmem:[#allocation11 + $0xe8] sm:$0xff]   ;;  %v4221_v11 = vpop.eup %4220  ;;  %v5311_v52 = vmul.f32 %v1192_v55, %v5209_v14  ;;  %v5313_v46 = vmul.f32 0.5, %v476_v53  ;;  %v478_v35 = vadd.f32 %v5194_v4, %v5019_v41  ;;  %3809 = vmatprep.subr.bf16.mxu0 %v4152_v50 }
 0x186   :  { %7620 = vst [vmem:[#allocation43_spill] sm:$0xff] %v5306_v54  ;;  %v4154_v63 = vld [vmem:[#allocation11 + $0x28] sm:$0xff]   ;;  %v671_v44 = vadd.f32 %v5196_v61, %v5023_v42  ;;  %v4223_v48 = vpop.eup %4222  ;;  %v1195_v23 = vadd.f32 1.0, %v4221_v11  ;;  %4236 = verf.f32 %v947_v16  ;;  %v949_v56 = vmul.f32 0.70710677, %v669_v12  ;;  %3921 = vmatprep.subr.bf16.mxu1 %v4153_v38 }
 0x187   :  { %7621 = vst [vmem:[#allocation44_spill] sm:$0xff] %v5311_v52  ;;  %v482_v22 = vadd.f32 %v5220_v59, %v5011_v39  ;;  %v4225_v55 = vpop.eup %4224  ;;  %v5322_v14 = vmul.f32 %v1194_v20, %v5227_v62  ;;  %v1197_v53 = vadd.f32 1.0, %v4223_v48  ;;  %v5324_v54 = vmul.f32 0.5, %v669_v12  ;;  %3810 = vmatpush3.bf16.msra.mxu0 %v4154_v63  ;;  %3922 = vmatpush3.bf16.msra.mxu1 %v4155_v49 }
 0x188   :  { %v948_v4 = vmul.f32 0.70710677, %v478_v35  ;;  %v5326_v10 = vpop.f32.mrb[28].mxu0  ;;  %v1196_v11 = vadd.f32 1.0, %v4225_v55  ;;  %4238 = verf.f32 %v949_v56  ;;  %v5328_v16 = vmul.f32 0.5, %v478_v35  ;;  %v5330_v50 = vpop.f32.mrb[28].mxu1  ;;  %3811 = vmatprep.subr.bf16.mxu0 %v4156_v21 }
 0x189   :  { %7622 = vst [vmem:[#allocation45_spill] sm:$0xff] %v5322_v14  ;;  %v4227_v61 = vpop.eup %4226  ;;  %v950_v59 = vmul.f32 0.70710677, %v671_v44  ;;  %v5332_v38 = vpop.f32.mrb[29].mxu0  ;;  %v5335_v20 = vmul.f32 %v1195_v23, %v5241_v60  ;;  %v5337_v48 = vmul.f32 0.5, %v671_v44  ;;  %v5344_v35 = vmul.f32 %v1197_v53, %v5243_v2 }
 0x18a   :  { %v4229_v62 = vpop.eup %4228  ;;  %v1198_v12 = vadd.f32 1.0, %v4227_v61  ;;  %4240 = verf.f32 %v948_v4  ;;  %v5339_v63 = vpop.f32.mrb[29].mxu1  ;;  %v951_v55 = vmul.f32 0.70710677, %v482_v22  ;;  %v5350_v60 = vmul.f32 0.5, %v482_v22 }
 0x18b   :  { %7623 = vst [vmem:[#allocation46_spill] sm:$0xff] %v5335_v20  ;;  %v5341_v49 = vpop.f32.mrb[30].mxu0  ;;  %7624 = vst [vmem:[#allocation47_spill] sm:$0xff] %v5344_v35  ;;  %v1199_v56 = vadd.f32 1.0, %v4229_v62  ;;  %4242 = verf.f32 %v950_v59  ;;  %v5346_v14 = vpop.f32.mrb[30].mxu1  ;;  %v675_v44 = vadd.f32 %v5222_v5, %v5015_v40  ;;  %v484_v23 = vadd.f32 %v5231_v6, %v5019_v41  ;;  %3812 = vmatpush3.bf16.msra.mxu0 %v4158_v25 }
 0x18c   :  { %v5348_v52 = vpop.f32.mrb[31].mxu0  ;;  %v677_v4 = vadd.f32 %v5233_v26, %v5023_v42  ;;  %v5358_v2 = vpop.f32.mrb[31].mxu1  ;;  %v5361_v61 = vmul.f32 %v1196_v11, %v5245_v36  ;;  %v5364_v59 = vmul.f32 %v1198_v12, %v5254_v15  ;;  %4244 = verf.f32 %v951_v55 }
 0x18d   :  { %v4231_v53 = vpop.eup %4230  ;;  %v486_v22 = vadd.f32 %v5239_v7, %v5011_v39  ;;  %v5369_v62 = vmul.f32 %v1199_v56, %v5268_v17  ;;  %v953_v35 = vmul.f32 0.70710677, %v675_v44  ;;  %v679_v26 = vadd.f32 %v5247_v32, %v5015_v40 }
 0x18e   :  { %7625 = vst [vmem:[#allocation48_spill] sm:$0xff] %v5361_v61  ;;  %7626 = vst [vmem:[#allocation49_spill] sm:$0xff] %v5364_v59  ;;  %v4233_v5 = vpop.eup %4232  ;;  %v1201_v6 = vadd.f32 1.0, %v4231_v53  ;;  %v5373_v36 = vmul.f32 0.5, %v675_v44  ;;  %v952_v11 = vmul.f32 0.70710677, %v484_v23 }
 0x18f   :  { %7627 = vst [vmem:[#allocation50_spill] sm:$0xff] %v5369_v62  ;;  %v4235_v20 = vpop.eup %4234  ;;  %v1200_v28 = vadd.f32 1.0, %v4233_v5  ;;  %v954_v15 = vmul.f32 0.70710677, %v677_v4  ;;  %4246 = verf.f32 %v953_v35  ;;  %v5378_v7 = vmul.f32 0.5, %v484_v23 }
 0x190   :  { %v5376_v12 = vmul.f32 %v1201_v6, %v5276_v47  ;;  %v5380_v55 = vmul.f32 0.5, %v677_v4  ;;  %v5382_v17 = vpop.f32.mrb[32].mxu0  ;;  %v5384_v56 = vpop.f32.mrb[32].mxu1  ;;  %v1202_v32 = vadd.f32 1.0, %v4235_v20  ;;  %4248 = verf.f32 %v952_v11 }
 0x191   :  { %v4237_v53 = vpop.eup %4236  ;;  %v5386_v5 = vmul.f32 0.5, %v486_v22  ;;  %v955_v44 = vmul.f32 0.70710677, %v486_v22  ;;  %v5388_v62 = vpop.f32.mrb[33].mxu0  ;;  %v5393_v47 = vmul.f32 %v1200_v28, %v5285_v9  ;;  %4250 = verf.f32 %v954_v15 }
 0x192   :  { %7628 = vst [vmem:[#allocation51_spill] sm:$0xff] %v5376_v12  ;;  %v5390_v59 = vpop.f32.mrb[33].mxu1  ;;  %v1203_v35 = vadd.f32 1.0, %v4237_v53  ;;  %v957_v23 = vmul.f32 0.70710677, %v679_v26  ;;  %v5395_v4 = vpop.f32.mrb[34].mxu0  ;;  %v488_v20 = vadd.f32 %v5249_v43, %v5019_v41  ;;  %v681_v22 = vadd.f32 %v5256_v1, %v5023_v42 }
 0x193   :  { %7629 = vst [vmem:[#allocation52_spill] sm:$0xff] %v5393_v47  ;;  %v5397_v6 = vpop.f32.mrb[34].mxu1  ;;  %v4239_v12 = vpop.eup %4238  ;;  %4252 = verf.f32 %v955_v44  ;;  %v492_v11 = vadd.f32 %v5272_v3, %v5011_v39  ;;  %v5409_v47 = vmul.f32 0.5, %v679_v26  ;;  %v685_v44 = vadd.f32 %v5274_v27, %v5015_v40 }
 0x194   :  { %v5405_v28 = vpop.f32.mrb[35].mxu0  ;;  %v5407_v9 = vpop.f32.mrb[35].mxu1  ;;  %v1205_v53 = vadd.f32 1.0, %v4239_v12  ;;  %4254 = verf.f32 %v957_v23  ;;  %v5414_v43 = vmul.f32 %v1202_v32, %v5301_v37  ;;  %v5417_v1 = vmul.f32 %v1203_v35, %v5313_v46 }
 0x195   :  { %v4241_v15 = vpop.eup %4240  ;;  %v956_v45 = vmul.f32 0.70710677, %v488_v20  ;;  %v5419_v13 = vmul.f32 0.5, %v488_v20  ;;  %v5421_v57 = vmul.f32 0.5, %v681_v22  ;;  %v958_v26 = vmul.f32 0.70710677, %v681_v22 }
 0x196   :  { %v4243_v61 = vpop.eup %4242  ;;  %7630 = vst [vmem:[#allocation53_spill] sm:$0xff] %v5414_v43  ;;  %7631 = vst [vmem:[#allocation54_spill] sm:$0xff] %v5417_v1  ;;  %v1204_v3 = vadd.f32 1.0, %v4241_v15  ;;  %v5424_v23 = vmul.f32 %v1205_v53, %v5324_v54  ;;  %v5426_v27 = vmul.f32 0.5, %v492_v11  ;;  %v959_v37 = vmul.f32 0.70710677, %v492_v11 }
 0x197   :  { %v1206_v19 = vadd.f32 1.0, %v4243_v61  ;;  %v4245_v12 = vpop.eup %4244  ;;  %4256 = verf.f32 %v956_v45  ;;  %v961_v35 = vmul.f32 0.70710677, %v685_v44  ;;  %v494_v22 = vadd.f32 %v5280_v51, %v5019_v41 }
 0x198   :  { %7632 = vst [vmem:[#allocation55_spill] sm:$0xff] %v5424_v23  ;;  %v5429_v32 = vmul.f32 %v1204_v3, %v5328_v16  ;;  %v1207_v46 = vadd.f32 1.0, %v4245_v12  ;;  %4258 = verf.f32 %v958_v26  ;;  %v5431_v61 = vpop.f32.mrb[36].mxu0  ;;  %v5433_v20 = vpop.f32.mrb[36].mxu1  ;;  %v687_v45 = vadd.f32 %v5287_v29, %v5023_v42 }
 0x199   :  { %4260 = verf.f32 %v959_v37  ;;  %v496_v54 = vadd.f32 %v5289_v0, %v5011_v39  ;;  %v5441_v11 = vpop.f32.mrb[37].mxu0  ;;  %v5443_v16 = vpop.f32.mrb[37].mxu1  ;;  %v5446_v53 = vmul.f32 %v1206_v19, %v5337_v48  ;;  %v5448_v3 = vmul.f32 0.5, %v685_v44 }
 0x19a   :  { %7633 = vst [vmem:[#allocation56_spill] sm:$0xff] %v5429_v32  ;;  %v4247_v15 = vpop.eup %4246  ;;  %4262 = verf.f32 %v961_v35  ;;  %v689_v51 = vadd.f32 %v5294_v8, %v5015_v40  ;;  %v5452_v26 = vpop.f32.mrb[38].mxu0  ;;  %v5456_v37 = vmul.f32 0.5, %v494_v22  ;;  %v960_v23 = vmul.f32 0.70710677, %v494_v22 }
 0x19b   :  { %7634 = vst [vmem:[#allocation57_spill] sm:$0xff] %v5446_v53  ;;  %v5454_v29 = vpop.f32.mrb[38].mxu1  ;;  %v4249_v12 = vpop.eup %4248  ;;  %v1209_v0 = vadd.f32 1.0, %v4247_v15  ;;  %v498_v1 = vadd.f32 %v5296_v18, %v5019_v41  ;;  %v5462_v35 = vmul.f32 0.5, %v687_v45  ;;  %v962_v53 = vmul.f32 0.70710677, %v687_v45 }
 0x19c   :  { %v5460_v19 = vpop.f32.mrb[39].mxu0  ;;  %v4251_v48 = vpop.eup %4250  ;;  %v1208_v44 = vadd.f32 1.0, %v4249_v12  ;;  %v963_v8 = vmul.f32 0.70710677, %v496_v54  ;;  %v5465_v32 = vmul.f32 %v1207_v46, %v5350_v60  ;;  %4264 = verf.f32 %v960_v23  ;;  %v4157_v18 = vld [vmem:[#allocation11 + $0xf0] sm:$0xff]  }
 0x19d   :  { %v4253_v43 = vpop.eup %4252  ;;  %v1210_v31 = vadd.f32 1.0, %v4251_v48  ;;  %v5467_v15 = vmul.f32 0.5, %v496_v54  ;;  %v5469_v22 = vpop.f32.mrb[39].mxu1  ;;  %v5472_v12 = vmul.f32 %v1209_v0, %v5373_v36  ;;  %4266 = verf.f32 %v962_v53  ;;  %3923 = vmatprep.subr.bf16.mxu1 %v4157_v18 }
 0x19e   :  { %7635 = vst [vmem:[#allocation58_spill] sm:$0xff] %v5465_v32  ;;  %v4255_v58 = vpop.eup %4254  ;;  %v1211_v33 = vadd.f32 1.0, %v4253_v43  ;;  %v965_v45 = vmul.f32 0.70710677, %v689_v51  ;;  %v5475_v60 = vmul.f32 %v1208_v44, %v5378_v7  ;;  %4268 = verf.f32 %v963_v8  ;;  %3924 = vmatpush3.bf16.msra.mxu1 %v4159_v24 }
 0x19f   :  { %7636 = vst [vmem:[#allocation59_spill] sm:$0xff] %v5472_v12  ;;  %v1213_v46 = vadd.f32 1.0, %v4255_v58  ;;  %v5477_v23 = vmul.f32 0.5, %v689_v51  ;;  %v5480_v54 = vmul.f32 %v1210_v31, %v5380_v55  ;;  %v964_v48 = vmul.f32 0.70710677, %v498_v1  ;;  %3925 = vmatprep.subr.bf16.mxu1 %v4161_v30 }
 0x1a0   :  { %7637 = vst [vmem:[#allocation60_spill] sm:$0xff] %v5475_v60  ;;  %4270 = verf.f32 %v965_v45  ;;  %v691_v36 = vadd.f32 %v5303_v34, %v5023_v42  ;;  %v5484_v43 = vpop.f32.mrb[40].mxu0  ;;  %v5486_v53 = vpop.f32.mrb[40].mxu1  ;;  %v5489_v7 = vmul.f32 %v1211_v33, %v5386_v5  ;;  %v5491_v21 = vmul.f32 0.5, %v498_v1 }
 0x1a1   :  { %7638 = vst [vmem:[#allocation61_spill] sm:$0xff] %v5480_v54  ;;  %v4257_v58 = vpop.eup %4256  ;;  %v502_v31 = vadd.f32 %v5326_v10, %v5011_v39  ;;  %v695_v55 = vadd.f32 %v5330_v50, %v5015_v40  ;;  %v5497_v51 = vpop.f32.mrb[41].mxu0  ;;  %4272 = verf.f32 %v964_v48  ;;  %v504_v33 = vadd.f32 %v5332_v38, %v5019_v41 }
 0x1a2   :  { %7639 = vst [vmem:[#allocation62_spill] sm:$0xff] %v5489_v7  ;;  %v5499_v34 = vpop.f32.mrb[41].mxu1  ;;  %v4259_v0 = vpop.eup %4258  ;;  %v1212_v44 = vadd.f32 1.0, %v4257_v58  ;;  %v966_v24 = vmul.f32 0.70710677, %v691_v36  ;;  %v5508_v10 = vmul.f32 %v1213_v46, %v5409_v47  ;;  %v5510_v8 = vmul.f32 0.5, %v691_v36 }
 0x1a3   :  { %v5503_v25 = vpop.f32.mrb[42].mxu0  ;;  %v5505_v5 = vpop.f32.mrb[42].mxu1  ;;  %v1214_v50 = vadd.f32 1.0, %v4259_v0  ;;  %v967_v18 = vmul.f32 0.70710677, %v502_v31  ;;  %v5514_v12 = vmul.f32 0.5, %v502_v31  ;;  %v697_v0 = vadd.f32 %v5339_v63, %v5023_v42 }
 0x1a4   :  { %v4261_v1 = vpop.eup %4260  ;;  %7640 = vst [vmem:[#allocation63_spill] sm:$0xff] %v5508_v10  ;;  %v5512_v45 = vpop.f32.mrb[43].mxu0  ;;  %4274 = verf.f32 %v966_v24  ;;  %v969_v38 = vmul.f32 0.70710677, %v695_v55  ;;  %v5519_v32 = vmul.f32 %v1212_v44, %v5419_v13  ;;  %v5521_v47 = vmul.f32 0.5, %v695_v55 }
 0x1a5   :  { %v4263_v58 = vpop.eup %4262  ;;  %v1215_v48 = vadd.f32 1.0, %v4261_v1  ;;  %v5516_v7 = vpop.f32.mrb[43].mxu1  ;;  %4276 = verf.f32 %v967_v18  ;;  %v5524_v46 = vmul.f32 %v1214_v50, %v5421_v57  ;;  %v968_v36 = vmul.f32 0.70710677, %v504_v33 }
 0x1a6   :  { %7641 = vst [vmem:[#allocation64_spill] sm:$0xff] %v5519_v32  ;;  %v1217_v54 = vadd.f32 1.0, %v4263_v58  ;;  %4278 = verf.f32 %v969_v38  ;;  %v4265_v31 = vpop.eup %4264  ;;  %v5531_v1 = vmul.f32 0.5, %v504_v33  ;;  %v506_v13 = vadd.f32 %v5341_v49, %v5011_v39 }
 0x1a7   :  { %7642 = vst [vmem:[#allocation65_spill] sm:$0xff] %v5524_v46  ;;  %v5529_v24 = vmul.f32 %v1215_v48, %v5426_v27  ;;  %v699_v55 = vadd.f32 %v5346_v14, %v5015_v40  ;;  %v4267_v44 = vpop.eup %4266  ;;  %v1216_v57 = vadd.f32 1.0, %v4265_v31  ;;  %4280 = verf.f32 %v968_v36 }
 0x1a8   :  { %v970_v50 = vmul.f32 0.70710677, %v697_v0  ;;  %v508_v18 = vadd.f32 %v5348_v52, %v5019_v41  ;;  %v5539_v63 = vpop.f32.mrb[44].mxu0  ;;  %v5541_v58 = vpop.f32.mrb[44].mxu1  ;;  %v5544_v33 = vmul.f32 %v1217_v54, %v5448_v3  ;;  %v1218_v48 = vadd.f32 1.0, %v4267_v44 }
 0x1a9   :  { %7643 = vst [vmem:[#allocation66_spill] sm:$0xff] %v5529_v24  ;;  %v4269_v27 = vpop.eup %4268  ;;  %v5546_v49 = vmul.f32 0.5, %v697_v0  ;;  %v971_v38 = vmul.f32 0.70710677, %v506_v13  ;;  %v5548_v14 = vpop.f32.mrb[45].mxu0  ;;  %v5550_v24 = vmul.f32 0.5, %v506_v13  ;;  %v5557_v32 = vmul.f32 %v1216_v57, %v5456_v37 }
 0x1aa   :  { %7644 = vst [vmem:[#allocation67_spill] sm:$0xff] %v5544_v33  ;;  %v4271_v31 = vpop.eup %4270  ;;  %v1219_v36 = vadd.f32 1.0, %v4269_v27  ;;  %4282 = verf.f32 %v970_v50  ;;  %v973_v52 = vmul.f32 0.70710677, %v699_v55  ;;  %v5552_v10 = vpop.f32.mrb[45].mxu1  ;;  %v5559_v54 = vmul.f32 0.5, %v699_v55 }
 0x1ab   :  { %v5554_v46 = vpop.f32.mrb[46].mxu0  ;;  %7645 = vst [vmem:[#allocation68_spill] sm:$0xff] %v5557_v32  ;;  %v1221_v3 = vadd.f32 1.0, %v4271_v31  ;;  %4284 = verf.f32 %v971_v38  ;;  %v5561_v0 = vpop.f32.mrb[46].mxu1  ;;  %v5566_v13 = vmul.f32 %v1218_v48, %v5462_v35  ;;  %v972_v50 = vmul.f32 0.70710677, %v508_v18 }
 0x1ac   :  { %v5563_v44 = vpop.f32.mrb[47].mxu0  ;;  %v4273_v27 = vpop.eup %4272  ;;  %4286 = verf.f32 %v973_v52  ;;  %v701_v33 = vadd.f32 %v5358_v2, %v5023_v42  ;;  %v5572_v57 = vmul.f32 0.5, %v508_v18  ;;  %v512_v55 = vadd.f32 %v5382_v17, %v5011_v39  ;;  %v4160_v32 = vld [vmem:[#allocation11 + $0x78] sm:$0xff]  }
 0x1ad   :  { %7646 = vst [vmem:[#allocation69_spill] sm:$0xff] %v5566_v13  ;;  %v5570_v60 = vpop.f32.mrb[47].mxu1  ;;  %v1220_v37 = vadd.f32 1.0, %v4273_v27  ;;  %v705_v38 = vadd.f32 %v5384_v56, %v5015_v40  ;;  %v5579_v35 = vmul.f32 %v1219_v36, %v5467_v15  ;;  %4288 = verf.f32 %v972_v50  ;;  %3813 = vmatprep.subr.bf16.mxu0 %v4160_v32 }
 0x1ae   :  { %7647 = vst [vmem:[#allocation70_spill] sm:$0xff] %v5570_v60  ;;  %v4275_v31 = vpop.eup %4274  ;;  %v974_v48 = vmul.f32 0.70710677, %v701_v33  ;;  %v514_v2 = vadd.f32 %v5388_v62, %v5019_v41  ;;  %v5584_v27 = vmul.f32 %v1221_v3, %v5477_v23  ;;  %v5586_v13 = vmul.f32 0.5, %v701_v33 }
 0x1af   :  { %7648 = vst [vmem:[#allocation71_spill] sm:$0xff] %v5579_v35  ;;  %v4277_v52 = vpop.eup %4276  ;;  %v1222_v18 = vadd.f32 1.0, %v4275_v31  ;;  %v975_v17 = vmul.f32 0.70710677, %v512_v55  ;;  %v5588_v15 = vmul.f32 0.5, %v512_v55  ;;  %v5595_v62 = vmul.f32 %v1220_v37, %v5491_v21  ;;  %v4162_v55 = vld [vmem:[#allocation11 + $0x38] sm:$0xff]  }
 0x1b0   :  { %7649 = vst [vmem:[#allocation72_spill] sm:$0xff] %v5584_v27  ;;  %v4279_v56 = vpop.eup %4278  ;;  %v1223_v60 = vadd.f32 1.0, %v4277_v52  ;;  %4290 = verf.f32 %v974_v48  ;;  %v977_v36 = vmul.f32 0.70710677, %v705_v38  ;;  %v5590_v50 = vpop.f32.mrb[48].mxu0  ;;  %v5597_v33 = vmul.f32 0.5, %v705_v38  ;;  %3814 = vmatpush3.bf16.msra.mxu0 %v4162_v55 }
 0x1b1   :  { %v5592_v35 = vpop.f32.mrb[48].mxu1  ;;  %7651 = vst [vmem:[#allocation74_spill] sm:$0xff] %v5595_v62  ;;  %v1225_v23 = vadd.f32 1.0, %v4279_v56  ;;  %4292 = verf.f32 %v975_v17  ;;  %v5599_v3 = vpop.f32.mrb[49].mxu0  ;;  %v4163_v48 = vld [vmem:[#allocation11 + $0xb8] sm:$0xff]   ;;  %v5604_v27 = vmul.f32 %v1222_v18, %v5510_v8  ;;  %v707_v21 = vadd.f32 %v5390_v59, %v5023_v42 }
 0x1b2   :  { %7650 = vst [vmem:[#allocation73_spill] sm:$0xff] %v5592_v35  ;;  %v5601_v31 = vpop.f32.mrb[49].mxu1  ;;  %v4281_v52 = vpop.eup %4280  ;;  %4294 = verf.f32 %v977_v36  ;;  %v976_v35 = vmul.f32 0.70710677, %v514_v2  ;;  %v5612_v56 = vmul.f32 0.5, %v514_v2  ;;  %v516_v30 = vadd.f32 %v5395_v4, %v5011_v39  ;;  %3926 = vmatpush3.bf16.msra.mxu1 %v4163_v48 }
 0x1b3   :  { %7652 = vst [vmem:[#allocation75_spill] sm:$0xff] %v5604_v27  ;;  %v5608_v37 = vpop.f32.mrb[50].mxu0  ;;  %v5610_v38 = vpop.f32.mrb[50].mxu1  ;;  %v1224_v17 = vadd.f32 1.0, %v4281_v52  ;;  %v709_v32 = vadd.f32 %v5397_v6, %v5015_v40  ;;  %v5623_v36 = vmul.f32 %v1223_v60, %v5514_v12  ;;  %v978_v52 = vmul.f32 0.70710677, %v707_v21 }
 0x1b4   :  { %v5618_v8 = vpop.f32.mrb[51].mxu0  ;;  %v5620_v18 = vpop.f32.mrb[51].mxu1  ;;  %4296 = verf.f32 %v976_v35  ;;  %v518_v2 = vadd.f32 %v5405_v28, %v5019_v41  ;;  %v5628_v4 = vmul.f32 %v1225_v23, %v5521_v47  ;;  %v5630_v62 = vmul.f32 0.5, %v707_v21 }
 0x1b5   :  { %7653 = vst [vmem:[#allocation76_spill] sm:$0xff] %v5618_v8  ;;  %7654 = vst [vmem:[#allocation77_spill] sm:$0xff] %v5620_v18  ;;  %v4283_v59 = vpop.eup %4282  ;;  %v979_v8 = vmul.f32 0.70710677, %v516_v30  ;;  %v5633_v55 = vmul.f32 %v1224_v17, %v5531_v1  ;;  %4298 = verf.f32 %v978_v52  ;;  %v981_v12 = vmul.f32 0.70710677, %v709_v32 }
 0x1b6   :  { %7655 = vst [vmem:[#allocation78_spill] sm:$0xff] %v5623_v36  ;;  %v4285_v27 = vpop.eup %4284  ;;  %7656 = vst [vmem:[#allocation79_spill] sm:$0xff] %v5628_v4  ;;  %v1226_v6 = vadd.f32 1.0, %v4283_v59  ;;  %v5635_v35 = vmul.f32 0.5, %v516_v30  ;;  %v5637_v28 = vmul.f32 0.5, %v709_v32  ;;  %v711_v21 = vadd.f32 %v5407_v9, %v5023_v42 }
 0x1b7   :  { %v4287_v18 = vpop.eup %4286  ;;  %7657 = vst [vmem:[#allocation80_spill] sm:$0xff] %v5633_v55  ;;  %v1227_v48 = vadd.f32 1.0, %v4285_v27  ;;  %4300 = verf.f32 %v979_v8  ;;  %v980_v23 = vmul.f32 0.70710677, %v518_v2  ;;  %v522_v30 = vadd.f32 %v5431_v61, %v5011_v39 }
 0x1b8   :  { %v1229_v60 = vadd.f32 1.0, %v4287_v18  ;;  %v4289_v36 = vpop.eup %4288  ;;  %v5640_v47 = vmul.f32 %v1226_v6, %v5546_v49  ;;  %4302 = verf.f32 %v981_v12  ;;  %v5644_v1 = vpop.f32.mrb[52].mxu0  ;;  %v5648_v18 = vmul.f32 0.5, %v518_v2 }
 0x1b9   :  { %v5646_v27 = vpop.f32.mrb[52].mxu1  ;;  %v1228_v17 = vadd.f32 1.0, %v4289_v36  ;;  %v715_v32 = vadd.f32 %v5433_v20, %v5015_v40  ;;  %v5654_v49 = vpop.f32.mrb[53].mxu0  ;;  %v5659_v9 = vmul.f32 %v1227_v48, %v5550_v24  ;;  %4304 = verf.f32 %v980_v23 }
 0x1ba   :  { %7658 = vst [vmem:[#allocation81_spill] sm:$0xff] %v5640_v47  ;;  %v5656_v8 = vpop.f32.mrb[53].mxu1  ;;  %v4291_v59 = vpop.eup %4290  ;;  %v982_v52 = vmul.f32 0.70710677, %v711_v21  ;;  %v524_v36 = vadd.f32 %v5441_v11, %v5019_v41  ;;  %v5668_v20 = vmul.f32 %v1229_v60, %v5559_v54  ;;  %v5670_v4 = vmul.f32 0.5, %v711_v21 }
 0x1bb   :  { %7659 = vst [vmem:[#allocation82_spill] sm:$0xff] %v5659_v9  ;;  %v5663_v2 = vpop.f32.mrb[54].mxu0  ;;  %v5665_v6 = vpop.f32.mrb[54].mxu1  ;;  %v1230_v12 = vadd.f32 1.0, %v4291_v59  ;;  %v983_v47 = vmul.f32 0.70710677, %v522_v30  ;;  %v5677_v23 = vmul.f32 %v1228_v17, %v5572_v57 }
 0x1bc   :  { %7660 = vst [vmem:[#allocation83_spill] sm:$0xff] %v5663_v2  ;;  %7661 = vst [vmem:[#allocation84_spill] sm:$0xff] %v5665_v6  ;;  %v4293_v61 = vpop.eup %4292  ;;  %v5672_v55 = vpop.f32.mrb[55].mxu0  ;;  %4306 = verf.f32 %v982_v52  ;;  %v985_v9 = vmul.f32 0.70710677, %v715_v32  ;;  %v5679_v2 = vmul.f32 0.5, %v522_v30  ;;  %v526_v52 = vadd.f32 %v5452_v26, %v5011_v39 }
 0x1bd   :  { %7662 = vst [vmem:[#allocation85_spill] sm:$0xff] %v5668_v20  ;;  %v5674_v24 = vpop.f32.mrb[55].mxu1  ;;  %v4295_v48 = vpop.eup %4294  ;;  %7663 = vst [vmem:[#allocation86_spill] sm:$0xff] %v5677_v23  ;;  %v1231_v11 = vadd.f32 1.0, %v4293_v61  ;;  %4308 = verf.f32 %v983_v47  ;;  %v5681_v54 = vmul.f32 0.5, %v715_v32  ;;  %v5684_v21 = vmul.f32 %v1230_v12, %v5586_v13 }
 0x1be   :  { %v1233_v6 = vadd.f32 1.0, %v4295_v48  ;;  %v4297_v60 = vpop.eup %4296  ;;  %4310 = verf.f32 %v985_v9  ;;  %v984_v59 = vmul.f32 0.70710677, %v524_v36  ;;  %v717_v20 = vadd.f32 %v5443_v16, %v5023_v42 }
 0x1bf   :  { %7664 = vst [vmem:[#allocation87_spill] sm:$0xff] %v5684_v21  ;;  %v1232_v57 = vadd.f32 1.0, %v4297_v60  ;;  %v5688_v17 = vmul.f32 0.5, %v524_v36  ;;  %v719_v47 = vadd.f32 %v5454_v29, %v5015_v40  ;;  %v4299_v30 = vpop.eup %4298  ;;  %v5695_v32 = vmul.f32 %v1231_v11, %v5588_v15 }
 0x1c0   :  { %4312 = verf.f32 %v984_v59  ;;  %v986_v13 = vmul.f32 0.70710677, %v717_v20  ;;  %v528_v9 = vadd.f32 %v5460_v19, %v5019_v41  ;;  %v5699_v61 = vpop.f32.mrb[56].mxu0  ;;  %v5701_v16 = vpop.f32.mrb[56].mxu1  ;;  %v5704_v12 = vmul.f32 %v1233_v6, %v5597_v33 }
 0x1c1   :  { %7665 = vst [vmem:[#allocation88_spill] sm:$0xff] %v5695_v32  ;;  %v4301_v36 = vpop.eup %4300  ;;  %v1234_v26 = vadd.f32 1.0, %v4299_v30  ;;  %v5706_v48 = vmul.f32 0.5, %v717_v20  ;;  %v987_v29 = vmul.f32 0.70710677, %v526_v52  ;;  %v5708_v60 = vpop.f32.mrb[57].mxu0  ;;  %v5713_v59 = vmul.f32 %v1232_v57, %v5612_v56 }
 0x1c2   :  { %7666 = vst [vmem:[#allocation89_spill] sm:$0xff] %v5704_v12  ;;  %v5710_v15 = vpop.f32.mrb[57].mxu1  ;;  %v4303_v11 = vpop.eup %4302  ;;  %v1235_v19 = vadd.f32 1.0, %v4301_v36  ;;  %4314 = verf.f32 %v986_v13  ;;  %v989_v32 = vmul.f32 0.70710677, %v719_v47  ;;  %v5719_v6 = vmul.f32 0.5, %v526_v52 }
 0x1c3   :  { %7667 = vst [vmem:[#allocation90_spill] sm:$0xff] %v5710_v15  ;;  %7668 = vst [vmem:[#allocation91_spill] sm:$0xff] %v5713_v59  ;;  %v5715_v21 = vpop.f32.mrb[58].mxu0  ;;  %v5717_v23 = vpop.f32.mrb[58].mxu1  ;;  %v1237_v33 = vadd.f32 1.0, %v4303_v11  ;;  %4316 = verf.f32 %v987_v29  ;;  %v5721_v20 = vmul.f32 0.5, %v719_v47  ;;  %v5728_v56 = vmul.f32 %v1234_v26, %v5630_v62 }
 0x1c4   :  { %v5723_v30 = vpop.f32.mrb[59].mxu0  ;;  %v5725_v12 = vpop.f32.mrb[59].mxu1  ;;  %4318 = verf.f32 %v989_v32  ;;  %v988_v57 = vmul.f32 0.70710677, %v528_v9  ;;  %v721_v13 = vadd.f32 %v5469_v22, %v5023_v42  ;;  %v5732_v11 = vmul.f32 0.5, %v528_v9 }
 0x1c5   :  { %7669 = vst [vmem:[#allocation92_spill] sm:$0xff] %v5725_v12  ;;  %v4305_v15 = vpop.eup %4304  ;;  %7670 = vst [vmem:[#allocation93_spill] sm:$0xff] %v5728_v56  ;;  %v532_v52 = vadd.f32 %v5484_v43, %v5011_v39  ;;  %v725_v47 = vadd.f32 %v5486_v53, %v5015_v40  ;;  %v5739_v59 = vmul.f32 %v1235_v19, %v5635_v35 }
 0x1c6   :  { %v1236_v36 = vadd.f32 1.0, %v4305_v15  ;;  %v4307_v29 = vpop.eup %4306  ;;  %4320 = verf.f32 %v988_v57  ;;  %v990_v62 = vmul.f32 0.70710677, %v721_v13  ;;  %v534_v32 = vadd.f32 %v5497_v51, %v5019_v41 }
 0x1c7   :  { %7671 = vst [vmem:[#allocation94_spill] sm:$0xff] %v5739_v59  ;;  %v4309_v26 = vpop.eup %4308  ;;  %v5744_v22 = vmul.f32 %v1237_v33, %v5637_v28  ;;  %v1238_v9 = vadd.f32 1.0, %v4307_v29  ;;  %v5746_v15 = vmul.f32 0.5, %v721_v13  ;;  %v991_v43 = vmul.f32 0.70710677, %v532_v52 }
 0x1c8   :  { %v4311_v56 = vpop.eup %4310  ;;  %v5749_v53 = vmul.f32 %v1236_v36, %v5648_v18  ;;  %v1239_v12 = vadd.f32 1.0, %v4309_v26  ;;  %4322 = verf.f32 %v990_v62  ;;  %v993_v35 = vmul.f32 0.70710677, %v725_v47  ;;  %v5751_v19 = vpop.f32.mrb[60].mxu0 }
 0x1c9   :  { %7672 = vst [vmem:[#allocation95_spill] sm:$0xff] %v5744_v22  ;;  %v5753_v57 = vpop.f32.mrb[60].mxu1  ;;  %v1241_v51 = vadd.f32 1.0, %v4311_v56  ;;  %v5755_v59 = vmul.f32 0.5, %v532_v52  ;;  %4324 = verf.f32 %v991_v43  ;;  %v5757_v28 = vmul.f32 0.5, %v725_v47  ;;  %v5759_v33 = vpop.f32.mrb[61].mxu0 }
 0x1ca   :  { %7673 = vst [vmem:[#allocation96_spill] sm:$0xff] %v5749_v53  ;;  %v5761_v13 = vpop.f32.mrb[61].mxu1  ;;  %v4313_v29 = vpop.eup %4312  ;;  %v5764_v18 = vmul.f32 %v1238_v9, %v5670_v4  ;;  %4326 = verf.f32 %v993_v35  ;;  %v992_v36 = vmul.f32 0.70710677, %v534_v32  ;;  %v727_v62 = vadd.f32 %v5499_v34, %v5023_v42 }
 0x1cb   :  { %v5768_v26 = vpop.f32.mrb[62].mxu0  ;;  %v5770_v56 = vpop.f32.mrb[62].mxu1  ;;  %v1240_v52 = vadd.f32 1.0, %v4313_v29  ;;  %v5772_v47 = vmul.f32 0.5, %v534_v32  ;;  %v536_v43 = vadd.f32 %v5503_v25, %v5011_v39  ;;  %v729_v22 = vadd.f32 %v5505_v5, %v5015_v40 }
 0x1cc   :  { %7674 = vst [vmem:[#allocation97_spill] sm:$0xff] %v5764_v18  ;;  %7675 = vst [vmem:[#allocation98_spill] sm:$0xff] %v5768_v26  ;;  %v5778_v4 = vpop.f32.mrb[63].mxu0  ;;  %v5780_v9 = vpop.f32.mrb[63].mxu1  ;;  %v5783_v34 = vmul.f32 %v1239_v12, %v5679_v2  ;;  %4328 = verf.f32 %v992_v36  ;;  %v994_v18 = vmul.f32 0.70710677, %v727_v62  ;;  %v538_v32 = vadd.f32 %v5512_v45, %v5019_v41 }
 0x1cd   :  { %7676 = vst [vmem:[#allocation99_spill] sm:$0xff] %v5770_v56  ;;  %7677 = vst [vmem:[#allocation100_spill] sm:$0xff] %v5778_v4  ;;  %v4315_v35 = vpop.eup %4314  ;;  %v5788_v53 = vmul.f32 %v1241_v51, %v5681_v54  ;;  %v5790_v56 = vmul.f32 0.5, %v727_v62  ;;  %v995_v5 = vmul.f32 0.70710677, %v536_v43  ;;  %v5795_v36 = vmul.f32 0.5, %v536_v43 }
 0x1ce   :  { %7678 = vst [vmem:[#allocation101_spill] sm:$0xff] %v5780_v9  ;;  %7679 = vst [vmem:[#allocation102_spill] sm:$0xff] %v5783_v34  ;;  %v4317_v29 = vpop.eup %4316  ;;  %v1242_v25 = vadd.f32 1.0, %v4315_v35  ;;  %v5793_v9 = vmul.f32 %v1240_v52, %v5688_v17  ;;  %4330 = verf.f32 %v994_v18  ;;  %v997_v2 = vmul.f32 0.70710677, %v729_v22 }
 0x1cf   :  { %7680 = vst [vmem:[#allocation103_spill] sm:$0xff] %v5788_v53  ;;  %v4319_v4 = vpop.eup %4318  ;;  %v1243_v26 = vadd.f32 1.0, %v4317_v29  ;;  %4332 = verf.f32 %v995_v5  ;;  %v5797_v45 = vmul.f32 0.5, %v729_v22  ;;  %v996_v51 = vmul.f32 0.70710677, %v538_v32 }
 0x1d0   :  { %7681 = vst [vmem:[#allocation104_spill] sm:$0xff] %v5793_v9  ;;  %v1245_v12 = vadd.f32 1.0, %v4319_v4  ;;  %v4321_v34 = vpop.eup %4320  ;;  %v5800_v54 = vmul.f32 %v1242_v25, %v5706_v48  ;;  %4334 = verf.f32 %v997_v2  ;;  %v731_v62 = vadd.f32 %v5516_v7, %v5023_v42  ;;  %v5804_v17 = vpop.f32.mrb[64].mxu0 }
 0x1d1   :  { %v5806_v52 = vpop.f32.mrb[64].mxu1  ;;  %v1244_v18 = vadd.f32 1.0, %v4321_v34  ;;  %v5808_v4 = vmul.f32 0.5, %v538_v32  ;;  %v542_v22 = vadd.f32 %v5539_v63, %v5011_v39  ;;  %v735_v43 = vadd.f32 %v5541_v58, %v5015_v40  ;;  %v5814_v48 = vpop.f32.mrb[65].mxu0 }
 0x1d2   :  { %7682 = vst [vmem:[#allocation105_spill] sm:$0xff] %v5800_v54  ;;  %v5816_v35 = vpop.f32.mrb[65].mxu1  ;;  %v4323_v29 = vpop.eup %4322  ;;  %v5819_v7 = vmul.f32 %v1243_v26, %v5719_v6  ;;  %4336 = verf.f32 %v996_v51  ;;  %v998_v25 = vmul.f32 0.70710677, %v731_v62  ;;  %v544_v34 = vadd.f32 %v5548_v14, %v5019_v41 }
 0x1d3   :  { %v5823_v32 = vpop.f32.mrb[66].mxu0  ;;  %v5825_v5 = vpop.f32.mrb[66].mxu1  ;;  %v5828_v58 = vmul.f32 %v1245_v12, %v5721_v20  ;;  %v1246_v2 = vadd.f32 1.0, %v4323_v29  ;;  %v5830_v53 = vmul.f32 0.5, %v731_v62  ;;  %v999_v54 = vmul.f32 0.70710677, %v542_v22 }
 0x1d4   :  { %7683 = vst [vmem:[#allocation106_spill] sm:$0xff] %v5819_v7  ;;  %7684 = vst [vmem:[#allocation107_spill] sm:$0xff] %v5823_v32  ;;  %v4325_v63 = vpop.eup %4324  ;;  %v5832_v9 = vpop.f32.mrb[67].mxu0  ;;  %v5837_v51 = vmul.f32 %v1244_v18, %v5732_v11  ;;  %4338 = verf.f32 %v998_v25  ;;  %v1001_v7 = vmul.f32 0.70710677, %v735_v43  ;;  %v5839_v32 = vmul.f32 0.5, %v542_v22 }
 0x1d5   :  { %7685 = vst [vmem:[#allocation108_spill] sm:$0xff] %v5825_v5  ;;  %7686 = vst [vmem:[#allocation109_spill] sm:$0xff] %v5828_v58  ;;  %v5834_v6 = vpop.f32.mrb[67].mxu1  ;;  %v4327_v26 = vpop.eup %4326  ;;  %v1247_v14 = vadd.f32 1.0, %v4325_v63  ;;  %4340 = verf.f32 %v999_v54  ;;  %v5841_v20 = vmul.f32 0.5, %v735_v43  ;;  %v5844_v62 = vmul.f32 %v1246_v2, %v5746_v15 }
 0x1d6   :  { %7687 = vst [vmem:[#allocation110_spill] sm:$0xff] %v5837_v51  ;;  %v1249_v5 = vadd.f32 1.0, %v4327_v26  ;;  %v4329_v12 = vpop.eup %4328  ;;  %4342 = verf.f32 %v1001_v7  ;;  %v1000_v29 = vmul.f32 0.70710677, %v544_v34  ;;  %v737_v58 = vadd.f32 %v5552_v10, %v5023_v42 }
 0x1d7   :  { %7688 = vst [vmem:[#allocation111_spill] sm:$0xff] %v5844_v62  ;;  %v1248_v11 = vadd.f32 1.0, %v4329_v12  ;;  %v5848_v18 = vmul.f32 0.5, %v544_v34  ;;  %v546_v25 = vadd.f32 %v5554_v46, %v5011_v39  ;;  %v739_v54 = vadd.f32 %v5561_v0, %v5015_v40 }
 0x1d8   :  { %v4331_v22 = vpop.eup %4330  ;;  %v5855_v43 = vmul.f32 %v1247_v14, %v5755_v59  ;;  %4344 = verf.f32 %v1000_v29  ;;  %v1002_v15 = vmul.f32 0.70710677, %v737_v58  ;;  %v548_v7 = vadd.f32 %v5563_v44, %v5019_v41  ;;  %v5859_v63 = vpop.f32.mrb[68].mxu0 }
 0x1d9   :  { %v5861_v10 = vpop.f32.mrb[68].mxu1  ;;  %v4333_v34 = vpop.eup %4332  ;;  %v5864_v2 = vmul.f32 %v1249_v5, %v5757_v28  ;;  %v1250_v46 = vadd.f32 1.0, %v4331_v22  ;;  %v5866_v26 = vmul.f32 0.5, %v737_v58  ;;  %v1003_v0 = vmul.f32 0.70710677, %v546_v25 }
 0x1da   :  { %7689 = vst [vmem:[#allocation112_spill] sm:$0xff] %v5855_v43  ;;  %v5868_v12 = vpop.f32.mrb[69].mxu0  ;;  %v5870_v59 = vpop.f32.mrb[69].mxu1  ;;  %v5873_v29 = vmul.f32 %v1248_v11, %v5772_v47  ;;  %v1251_v44 = vadd.f32 1.0, %v4333_v34  ;;  %4346 = verf.f32 %v1002_v15  ;;  %v1005_v43 = vmul.f32 0.70710677, %v739_v54 }
 0x1db   :  { %7690 = vst [vmem:[#allocation113_spill] sm:$0xff] %v5864_v2  ;;  %7691 = vst [vmem:[#allocation114_spill] sm:$0xff] %v5870_v59  ;;  %v4335_v14 = vpop.eup %4334  ;;  %v5875_v62 = vpop.f32.mrb[70].mxu0  ;;  %v5879_v5 = vmul.f32 0.5, %v546_v25  ;;  %4348 = verf.f32 %v1003_v0  ;;  %v5881_v58 = vmul.f32 0.5, %v739_v54  ;;  %v5888_v47 = vmul.f32 %v1250_v46, %v5790_v56  ;;  %v7697_v15 = vld [vmem:[#allocation70_spill] sm:$0xff] }
 0x1dc   :  { %7692 = vst [vmem:[#allocation115_spill] sm:$0xff] %v5873_v29  ;;  %v5877_v51 = vpop.f32.mrb[70].mxu1  ;;  %v1253_v28 = vadd.f32 1.0, %v4335_v14  ;;  %v5883_v22 = vpop.f32.mrb[71].mxu0  ;;  %4350 = verf.f32 %v1005_v43  ;;  %v1004_v11 = vmul.f32 0.70710677, %v548_v7  ;;  %v741_v34 = vadd.f32 %v7697_v15, %v5023_v42 }
 0x1dd   :  { %7693 = vst [vmem:[#allocation116_spill] sm:$0xff] %v5877_v51  ;;  %7694 = vst [vmem:[#allocation117_spill] sm:$0xff] %v5883_v22  ;;  %v5885_v2 = vpop.f32.mrb[71].mxu1  ;;  %v4337_v59 = vpop.eup %4336  ;;  %v5892_v14 = vmul.f32 0.5, %v548_v7  ;;  %v552_v25 = vadd.f32 %v5590_v50, %v5011_v39  ;;  %v7698_v54 = vld [vmem:[#allocation73_spill] sm:$0xff]  ;;  %v554_v43 = vadd.f32 %v5599_v3, %v5019_v41 }
 0x1de   :  { %7695 = vst [vmem:[#allocation118_spill] sm:$0xff] %v5885_v2  ;;  %7696 = vst [vmem:[#allocation119_spill] sm:$0xff] %v5888_v47  ;;  %v1252_v29 = vadd.f32 1.0, %v4337_v59  ;;  %v745_v0 = vadd.f32 %v7698_v54, %v5015_v40  ;;  %v4339_v22 = vpop.eup %4338  ;;  %v5899_v2 = vmul.f32 %v1251_v44, %v5795_v36  ;;  %4352 = verf.f32 %v1004_v11 }
 0x1df   :  { %v1006_v56 = vmul.f32 0.70710677, %v741_v34  ;;  %v4341_v46 = vpop.eup %4340  ;;  %v5904_v59 = vmul.f32 %v1253_v28, %v5797_v45  ;;  %v1254_v7 = vadd.f32 1.0, %v4339_v22  ;;  %v5906_v15 = vmul.f32 0.5, %v741_v34 }
 0x1e0   :  { %7699 = vst [vmem:[#allocation70_spill] sm:$0xff] %v5899_v2  ;;  %v1007_v50 = vmul.f32 0.70710677, %v552_v25  ;;  %v4343_v47 = vpop.eup %4342  ;;  %v5909_v54 = vmul.f32 %v1252_v29, %v5808_v4  ;;  %v1255_v51 = vadd.f32 1.0, %v4341_v46  ;;  %v1009_v36 = vmul.f32 0.70710677, %v745_v0 }
 0x1e1   :  { %7700 = vst [vmem:[#allocation73_spill] sm:$0xff] %v5904_v59  ;;  %4354 = verf.f32 %v1006_v56  ;;  %v5911_v44 = vpop.f32.mrb[72].mxu0  ;;  %v5913_v11 = vpop.f32.mrb[72].mxu1  ;;  %v1257_v3 = vadd.f32 1.0, %v4343_v47  ;;  %v5915_v2 = vmul.f32 0.5, %v552_v25  ;;  %v5917_v45 = vmul.f32 0.5, %v745_v0 }
 0x1e2   :  { %7701 = vst [vmem:[#allocation120_spill] sm:$0xff] %v5909_v54  ;;  %4356 = verf.f32 %v1007_v50  ;;  %v5919_v28 = vpop.f32.mrb[73].mxu0  ;;  %v5921_v22 = vpop.f32.mrb[73].mxu1  ;;  %v5924_v4 = vmul.f32 %v1254_v7, %v5830_v53  ;;  %v1008_v29 = vmul.f32 0.70710677, %v554_v43  ;;  %v747_v56 = vadd.f32 %v5601_v31, %v5023_v42 }
 0x1e3   :  { %7702 = vst [vmem:[#allocation121_spill] sm:$0xff] %v5921_v22  ;;  %v4345_v34 = vpop.eup %4344  ;;  %4358 = verf.f32 %v1009_v36  ;;  %v5928_v46 = vpop.f32.mrb[74].mxu0  ;;  %v5932_v0 = vmul.f32 0.5, %v554_v43  ;;  %v556_v50 = vadd.f32 %v5608_v37, %v5011_v39  ;;  %v749_v59 = vadd.f32 %v5610_v38, %v5015_v40 }
 0x1e4   :  { %7703 = vst [vmem:[#allocation122_spill] sm:$0xff] %v5924_v4  ;;  %7704 = vst [vmem:[#allocation123_spill] sm:$0xff] %v5928_v46  ;;  %v5930_v47 = vpop.f32.mrb[74].mxu1  ;;  %v1256_v25 = vadd.f32 1.0, %v4345_v34  ;;  %v5938_v53 = vpop.f32.mrb[75].mxu0  ;;  %v5943_v31 = vmul.f32 %v1255_v51, %v5839_v32  ;;  %4360 = verf.f32 %v1008_v29  ;;  %v7709_v34 = vld [vmem:[#allocation76_spill] sm:$0xff] }
 0x1e5   :  { %7705 = vst [vmem:[#allocation124_spill] sm:$0xff] %v5930_v47  ;;  %7706 = vst [vmem:[#allocation125_spill] sm:$0xff] %v5938_v53  ;;  %v5940_v7 = vpop.f32.mrb[75].mxu1  ;;  %v4347_v36 = vpop.eup %4346  ;;  %v1010_v4 = vmul.f32 0.70710677, %v747_v56  ;;  %v558_v43 = vadd.f32 %v7709_v34, %v5019_v41  ;;  %v5948_v47 = vmul.f32 %v1257_v3, %v5841_v20  ;;  %v5950_v46 = vmul.f32 0.5, %v747_v56 }
 0x1e6   :  { %7707 = vst [vmem:[#allocation126_spill] sm:$0xff] %v5940_v7  ;;  %7708 = vst [vmem:[#allocation127_spill] sm:$0xff] %v5943_v31  ;;  %v4349_v54 = vpop.eup %4348  ;;  %v1258_v37 = vadd.f32 1.0, %v4347_v36  ;;  %v1011_v38 = vmul.f32 0.70710677, %v556_v50  ;;  %v5953_v7 = vmul.f32 %v1256_v25, %v5848_v18  ;;  %v5955_v29 = vmul.f32 0.5, %v556_v50 }
 0x1e7   :  { %7710 = vst [vmem:[#allocation76_spill] sm:$0xff] %v5948_v47  ;;  %v4351_v53 = vpop.eup %4350  ;;  %v1259_v22 = vadd.f32 1.0, %v4349_v54  ;;  %4362 = verf.f32 %v1010_v4  ;;  %v1013_v32 = vmul.f32 0.70710677, %v749_v59  ;;  %v5957_v34 = vmul.f32 0.5, %v749_v59  ;;  %v7713_v56 = vld [vmem:[#allocation77_spill] sm:$0xff] }
 0x1e8   :  { %7711 = vst [vmem:[#allocation128_spill] sm:$0xff] %v5953_v7  ;;  %v1261_v51 = vadd.f32 1.0, %v4351_v53  ;;  %4364 = verf.f32 %v1011_v38  ;;  %v4353_v31 = vpop.eup %4352  ;;  %v5960_v20 = vmul.f32 %v1258_v37, %v5866_v26  ;;  %v1012_v3 = vmul.f32 0.70710677, %v558_v43  ;;  %v5964_v18 = vpop.f32.mrb[76].mxu0 }
 0x1e9   :  { %4366 = verf.f32 %v1013_v32  ;;  %v751_v36 = vadd.f32 %v7713_v56, %v5023_v42  ;;  %v5966_v54 = vpop.f32.mrb[76].mxu1  ;;  %v1260_v4 = vadd.f32 1.0, %v4353_v31  ;;  %v5968_v25 = vmul.f32 0.5, %v558_v43  ;;  %v5974_v26 = vpop.f32.mrb[77].mxu0 }
 0x1ea   :  { %7712 = vst [vmem:[#allocation129_spill] sm:$0xff] %v5960_v20  ;;  %v562_v59 = vadd.f32 %v5644_v1, %v5011_v39  ;;  %v755_v50 = vadd.f32 %v5646_v27, %v5015_v40  ;;  %v5976_v53 = vpop.f32.mrb[77].mxu1  ;;  %v5979_v38 = vmul.f32 %v1259_v22, %v5879_v5  ;;  %4368 = verf.f32 %v1012_v3  ;;  %v5983_v43 = vpop.f32.mrb[78].mxu0 }
 0x1eb   :  { %7714 = vst [vmem:[#allocation77_spill] sm:$0xff] %v5976_v53  ;;  %v4355_v37 = vpop.eup %4354  ;;  %v1014_v32 = vmul.f32 0.70710677, %v751_v36  ;;  %v564_v31 = vadd.f32 %v5654_v49, %v5019_v41  ;;  %7716 = vst [vmem:[#allocation131_spill] sm:$0xff] %v5983_v43  ;;  %v5985_v56 = vpop.f32.mrb[78].mxu1  ;;  %v5988_v27 = vmul.f32 %v1261_v51, %v5881_v58  ;;  %v5990_v20 = vmul.f32 0.5, %v751_v36 }
 0x1ec   :  { %7715 = vst [vmem:[#allocation130_spill] sm:$0xff] %v5979_v38  ;;  %7717 = vst [vmem:[#allocation132_spill] sm:$0xff] %v5985_v56  ;;  %v4357_v1 = vpop.eup %4356  ;;  %v1262_v47 = vadd.f32 1.0, %v4355_v37  ;;  %v1015_v7 = vmul.f32 0.70710677, %v562_v59  ;;  %v5992_v53 = vpop.f32.mrb[79].mxu0  ;;  %v5997_v3 = vmul.f32 %v1260_v4, %v5892_v14 }
 0x1ed   :  { %7718 = vst [vmem:[#allocation133_spill] sm:$0xff] %v5988_v27  ;;  %v5994_v5 = vpop.f32.mrb[79].mxu1  ;;  %v4359_v22 = vpop.eup %4358  ;;  %v1263_v49 = vadd.f32 1.0, %v4357_v1  ;;  %4370 = verf.f32 %v1014_v32  ;;  %v1017_v38 = vmul.f32 0.70710677, %v755_v50  ;;  %v5999_v43 = vmul.f32 0.5, %v562_v59 }
 0x1ee   :  { %7719 = vst [vmem:[#allocation134_spill] sm:$0xff] %v5997_v3  ;;  %v1265_v56 = vadd.f32 1.0, %v4359_v22  ;;  %4372 = verf.f32 %v1015_v7  ;;  %v6001_v58 = vmul.f32 0.5, %v755_v50  ;;  %v4361_v51 = vpop.eup %4360  ;;  %v6004_v36 = vmul.f32 %v1262_v47, %v5906_v15  ;;  %v7721_v32 = vld [vmem:[#allocation83_spill] sm:$0xff]  ;;  %v7722_v59 = vld [vmem:[#allocation84_spill] sm:$0xff] }
 0x1ef   :  { %4374 = verf.f32 %v1017_v38  ;;  %v1016_v37 = vmul.f32 0.70710677, %v564_v31  ;;  %v757_v27 = vadd.f32 %v5656_v8, %v5023_v42  ;;  %v1264_v14 = vadd.f32 1.0, %v4361_v51 }
 0x1f0   :  { %7720 = vst [vmem:[#allocation135_spill] sm:$0xff] %v6004_v36  ;;  %v6008_v4 = vmul.f32 0.5, %v564_v31  ;;  %v566_v1 = vadd.f32 %v7721_v32, %v5011_v39  ;;  %v759_v7 = vadd.f32 %v7722_v59, %v5015_v40  ;;  %v6015_v22 = vmul.f32 %v1263_v49, %v5915_v2  ;;  %v6019_v38 = vpop.f32.mrb[80].mxu0  ;;  %v6021_v8 = vpop.f32.mrb[80].mxu1 }
 0x1f1   :  { %v4363_v50 = vpop.eup %4362  ;;  %4376 = verf.f32 %v1016_v37  ;;  %v1018_v15 = vmul.f32 0.70710677, %v757_v27  ;;  %v568_v47 = vadd.f32 %v5672_v55, %v5019_v41  ;;  %7724 = vst [vmem:[#allocation84_spill] sm:$0xff] %v6019_v38  ;;  %7725 = vst [vmem:[#allocation136_spill] sm:$0xff] %v6021_v8  ;;  %v6024_v51 = vmul.f32 %v1265_v56, %v5917_v45  ;;  %v6028_v3 = vpop.f32.mrb[81].mxu0 }
 0x1f2   :  { %7723 = vst [vmem:[#allocation83_spill] sm:$0xff] %v6015_v22  ;;  %v4365_v31 = vpop.eup %4364  ;;  %v1266_v32 = vadd.f32 1.0, %v4363_v50  ;;  %v6026_v36 = vmul.f32 0.5, %v757_v27  ;;  %v1019_v59 = vmul.f32 0.70710677, %v566_v1  ;;  %v6030_v2 = vpop.f32.mrb[81].mxu1  ;;  %v6033_v37 = vmul.f32 %v1264_v14, %v5932_v0 }
 0x1f3   :  { %7726 = vst [vmem:[#allocation137_spill] sm:$0xff] %v6024_v51  ;;  %7727 = vst [vmem:[#allocation138_spill] sm:$0xff] %v6030_v2  ;;  %v4367_v49 = vpop.eup %4366  ;;  %v1267_v55 = vadd.f32 1.0, %v4365_v31  ;;  %4378 = verf.f32 %v1018_v15  ;;  %v1021_v22 = vmul.f32 0.70710677, %v759_v7  ;;  %v6035_v8 = vpop.f32.mrb[82].mxu0  ;;  %v761_v15 = vadd.f32 %v5674_v24, %v5023_v42 }
 0x1f4   :  { %7728 = vst [vmem:[#allocation139_spill] sm:$0xff] %v6033_v37  ;;  %v6037_v38 = vpop.f32.mrb[82].mxu1  ;;  %v1269_v45 = vadd.f32 1.0, %v4367_v49  ;;  %v6039_v56 = vmul.f32 0.5, %v566_v1  ;;  %4380 = verf.f32 %v1019_v59  ;;  %v6041_v27 = vmul.f32 0.5, %v759_v7  ;;  %v6043_v50 = vpop.f32.mrb[83].mxu0 }
 0x1f5   :  { %v6045_v51 = vpop.f32.mrb[83].mxu1  ;;  %v4369_v2 = vpop.eup %4368  ;;  %v6048_v0 = vmul.f32 %v1266_v32, %v5950_v46  ;;  %4382 = verf.f32 %v1021_v22  ;;  %v1020_v14 = vmul.f32 0.70710677, %v568_v47  ;;  %v6052_v49 = vmul.f32 0.5, %v568_v47 }
 0x1f6   :  { %7729 = vst [vmem:[#allocation140_spill] sm:$0xff] %v6045_v51  ;;  %v1268_v31 = vadd.f32 1.0, %v4369_v2  ;;  %v572_v1 = vadd.f32 %v5699_v61, %v5011_v39  ;;  %v765_v7 = vadd.f32 %v5701_v16, %v5015_v40  ;;  %v6059_v37 = vmul.f32 %v1267_v55, %v5955_v29 }
 0x1f7   :  { %7730 = vst [vmem:[#allocation141_spill] sm:$0xff] %v6048_v0  ;;  %v4371_v59 = vpop.eup %4370  ;;  %4384 = verf.f32 %v1020_v14  ;;  %v1022_v46 = vmul.f32 0.70710677, %v761_v15  ;;  %v574_v22 = vadd.f32 %v5708_v60, %v5019_v41  ;;  %v6064_v24 = vmul.f32 %v1269_v45, %v5957_v34 }
 0x1f8   :  { %7731 = vst [vmem:[#allocation142_spill] sm:$0xff] %v6059_v37  ;;  %v4373_v32 = vpop.eup %4372  ;;  %v1270_v47 = vadd.f32 1.0, %v4371_v59  ;;  %v6066_v2 = vmul.f32 0.5, %v761_v15  ;;  %v1023_v61 = vmul.f32 0.70710677, %v572_v1  ;;  %v6069_v16 = vmul.f32 %v1268_v31, %v5968_v25  ;;  %v6071_v55 = vpop.f32.mrb[84].mxu0 }
 0x1f9   :  { %7732 = vst [vmem:[#allocation143_spill] sm:$0xff] %v6064_v24  ;;  %v4375_v0 = vpop.eup %4374  ;;  %v1271_v51 = vadd.f32 1.0, %v4373_v32  ;;  %4386 = verf.f32 %v1022_v46  ;;  %v1025_v29 = vmul.f32 0.70710677, %v765_v7  ;;  %v6073_v14 = vpop.f32.mrb[84].mxu1  ;;  %v6075_v37 = vmul.f32 0.5, %v572_v1 }
 0x1fa   :  { %7733 = vst [vmem:[#allocation144_spill] sm:$0xff] %v6069_v16  ;;  %v1273_v60 = vadd.f32 1.0, %v4375_v0  ;;  %4388 = verf.f32 %v1023_v61  ;;  %v6077_v34 = vmul.f32 0.5, %v765_v7  ;;  %v6079_v45 = vpop.f32.mrb[85].mxu0  ;;  %v6081_v15 = vpop.f32.mrb[85].mxu1  ;;  %v6084_v25 = vmul.f32 %v1270_v47, %v5990_v20  ;;  %v7736_v46 = vld [vmem:[#allocation90_spill] sm:$0xff] }
 0x1fb   :  { %7734 = vst [vmem:[#allocation145_spill] sm:$0xff] %v6081_v15  ;;  %v4377_v59 = vpop.eup %4376  ;;  %4390 = verf.f32 %v1025_v29  ;;  %v1024_v31 = vmul.f32 0.70710677, %v574_v22  ;;  %v767_v32 = vadd.f32 %v7736_v46, %v5023_v42  ;;  %v6088_v24 = vpop.f32.mrb[86].mxu0  ;;  %v6092_v7 = vmul.f32 0.5, %v574_v22 }
 0x1fc   :  { %7735 = vst [vmem:[#allocation146_spill] sm:$0xff] %v6084_v25  ;;  %7737 = vst [vmem:[#allocation90_spill] sm:$0xff] %v6088_v24  ;;  %v6090_v0 = vpop.f32.mrb[86].mxu1  ;;  %v1272_v1 = vadd.f32 1.0, %v4377_v59  ;;  %v576_v61 = vadd.f32 %v5715_v21, %v5011_v39  ;;  %v769_v16 = vadd.f32 %v5717_v23, %v5015_v40  ;;  %v6098_v20 = vpop.f32.mrb[87].mxu0  ;;  %v6103_v46 = vmul.f32 %v1271_v51, %v5999_v43 }
 0x1fd   :  { %7738 = vst [vmem:[#allocation147_spill] sm:$0xff] %v6090_v0  ;;  %7739 = vst [vmem:[#allocation148_spill] sm:$0xff] %v6098_v20  ;;  %v6100_v47 = vpop.f32.mrb[87].mxu1  ;;  %v4379_v29 = vpop.eup %4378  ;;  %4392 = verf.f32 %v1024_v31  ;;  %v1026_v25 = vmul.f32 0.70710677, %v767_v32  ;;  %v578_v22 = vadd.f32 %v5723_v30, %v5019_v41  ;;  %v6108_v0 = vmul.f32 %v1273_v60, %v6001_v58 }
 0x1fe   :  { %7740 = vst [vmem:[#allocation149_spill] sm:$0xff] %v6100_v47  ;;  %7741 = vst [vmem:[#allocation150_spill] sm:$0xff] %v6103_v46  ;;  %v4381_v59 = vpop.eup %4380  ;;  %v1274_v21 = vadd.f32 1.0, %v4379_v29  ;;  %v6110_v24 = vmul.f32 0.5, %v767_v32  ;;  %v1027_v23 = vmul.f32 0.70710677, %v576_v61  ;;  %v6113_v47 = vmul.f32 %v1272_v1, %v6008_v4 }
 0x1ff   :  { %7742 = vst [vmem:[#allocation151_spill] sm:$0xff] %v6108_v0  ;;  %v4383_v20 = vpop.eup %4382  ;;  %v1275_v15 = vadd.f32 1.0, %v4381_v59  ;;  %4394 = verf.f32 %v1026_v25  ;;  %v1029_v43 = vmul.f32 0.70710677, %v769_v16  ;;  %v6115_v31 = vmul.f32 0.5, %v576_v61  ;;  %v7745_v32 = vld [vmem:[#allocation92_spill] sm:$0xff] }
 0x200   :  { %7743 = vst [vmem:[#allocation152_spill] sm:$0xff] %v6113_v47  ;;  %v1277_v51 = vadd.f32 1.0, %v4383_v20  ;;  %4396 = verf.f32 %v1027_v23  ;;  %v6117_v30 = vmul.f32 0.5, %v769_v16  ;;  %v6120_v58 = vmul.f32 %v1274_v21, %v6026_v36  ;;  %v6124_v4 = vpop.f32.mrb[88].mxu0  ;;  %v6126_v1 = vpop.f32.mrb[88].mxu1 }
 0x201   :  { %v4385_v46 = vpop.eup %4384  ;;  %4398 = verf.f32 %v1029_v43  ;;  %v1028_v60 = vmul.f32 0.70710677, %v578_v22  ;;  %v771_v29 = vadd.f32 %v7745_v32, %v5023_v42  ;;  %v6128_v20 = vmul.f32 0.5, %v578_v22  ;;  %v6134_v36 = vpop.f32.mrb[89].mxu0 }
 0x202   :  { %7744 = vst [vmem:[#allocation153_spill] sm:$0xff] %v6120_v58  ;;  %v1276_v25 = vadd.f32 1.0, %v4385_v46  ;;  %v582_v16 = vadd.f32 %v5751_v19, %v5011_v39  ;;  %v775_v61 = vadd.f32 %v5753_v57, %v5015_v40  ;;  %v6136_v59 = vpop.f32.mrb[89].mxu1  ;;  %v6139_v23 = vmul.f32 %v1275_v15, %v6039_v56  ;;  %v6143_v22 = vpop.f32.mrb[90].mxu0 }
 0x203   :  { %7746 = vst [vmem:[#allocation92_spill] sm:$0xff] %v6136_v59  ;;  %v4387_v21 = vpop.eup %4386  ;;  %4400 = verf.f32 %v1028_v60  ;;  %v1030_v43 = vmul.f32 0.70710677, %v771_v29  ;;  %v584_v46 = vadd.f32 %v5759_v33, %v5019_v41  ;;  %7748 = vst [vmem:[#allocation155_spill] sm:$0xff] %v6143_v22  ;;  %v6145_v32 = vpop.f32.mrb[90].mxu1  ;;  %v6148_v57 = vmul.f32 %v1277_v51, %v6041_v27 }
 0x204   :  { %7747 = vst [vmem:[#allocation154_spill] sm:$0xff] %v6139_v23  ;;  %7749 = vst [vmem:[#allocation156_spill] sm:$0xff] %v6145_v32  ;;  %v4389_v19 = vpop.eup %4388  ;;  %v1278_v0 = vadd.f32 1.0, %v4387_v21  ;;  %v6150_v58 = vmul.f32 0.5, %v771_v29  ;;  %v1031_v47 = vmul.f32 0.70710677, %v582_v16  ;;  %v6157_v60 = vmul.f32 %v1276_v25, %v6052_v49 }
 0x205   :  { %7750 = vst [vmem:[#allocation157_spill] sm:$0xff] %v6148_v57  ;;  %v6152_v59 = vpop.f32.mrb[91].mxu0  ;;  %v6154_v56 = vpop.f32.mrb[91].mxu1  ;;  %v1279_v33 = vadd.f32 1.0, %v4389_v19  ;;  %4402 = verf.f32 %v1030_v43  ;;  %v1033_v23 = vmul.f32 0.70710677, %v775_v61  ;;  %v777_v57 = vadd.f32 %v5761_v13, %v5023_v42 }
 0x206   :  { %7751 = vst [vmem:[#allocation158_spill] sm:$0xff] %v6152_v59  ;;  %7752 = vst [vmem:[#allocation159_spill] sm:$0xff] %v6154_v56  ;;  %v4391_v15 = vpop.eup %4390  ;;  %v6159_v22 = vmul.f32 0.5, %v582_v16  ;;  %4404 = verf.f32 %v1031_v47  ;;  %v6161_v27 = vmul.f32 0.5, %v775_v61  ;;  %v6164_v29 = vmul.f32 %v1278_v0, %v6066_v2  ;;  %v7755_v43 = vld [vmem:[#allocation98_spill] sm:$0xff]  ;;  %v7756_v16 = vld [vmem:[#allocation99_spill] sm:$0xff] }
 0x207   :  { %7753 = vst [vmem:[#allocation160_spill] sm:$0xff] %v6157_v60  ;;  %v1281_v32 = vadd.f32 1.0, %v4391_v15  ;;  %v4393_v51 = vpop.eup %4392  ;;  %4406 = verf.f32 %v1033_v23  ;;  %v1032_v21 = vmul.f32 0.70710677, %v584_v46  ;;  %v6168_v25 = vmul.f32 0.5, %v584_v46  ;;  %v7758_v0 = vld [vmem:[#allocation100_spill] sm:$0xff] }
 0x208   :  { %7754 = vst [vmem:[#allocation161_spill] sm:$0xff] %v6164_v29  ;;  %v1280_v49 = vadd.f32 1.0, %v4393_v51  ;;  %v586_v19 = vadd.f32 %v7755_v43, %v5011_v39  ;;  %v779_v47 = vadd.f32 %v7756_v16, %v5015_v40  ;;  %v6175_v15 = vmul.f32 %v1279_v33, %v6075_v37  ;;  %v1503_v13 = vld [vmem:[%s7584_s5] sm:$0xf]  ;;  %v6182_v46 = vpop.f32.mrb[92].mxu0  ;;  %v6184_v51 = vpop.f32.mrb[92].mxu1 }
 0x209   :  { %v4395_v61 = vpop.eup %4394  ;;  %4408 = verf.f32 %v1032_v21  ;;  %v1034_v2 = vmul.f32 0.70710677, %v777_v57  ;;  %v588_v23 = vadd.f32 %v7758_v0, %v5019_v41  ;;  %7759 = vst [vmem:[#allocation99_spill] sm:$0xff] %v6182_v46  ;;  %7760 = vst [vmem:[#allocation100_spill] sm:$0xff] %v6184_v51  ;;  %v6187_v40 = vmul.f32 %v1281_v32, %v6077_v34  ;;  %v6191_v21 = vpop.f32.mrb[93].mxu0 }
 0x20a   :  { %7757 = vst [vmem:[#allocation98_spill] sm:$0xff] %v6175_v15  ;;  %v4397_v39 = vpop.eup %4396  ;;  %v1282_v43 = vadd.f32 1.0, %v4395_v61  ;;  %v6189_v37 = vmul.f32 0.5, %v777_v57  ;;  %v1035_v33 = vmul.f32 0.70710677, %v586_v19  ;;  %7762 = vst [vmem:[#allocation163_spill] sm:$0xff] %v6191_v21  ;;  %v6196_v0 = vmul.f32 %v1280_v49, %v6092_v7 }
 0x20b   :  { %7761 = vst [vmem:[#allocation162_spill] sm:$0xff] %v6187_v40  ;;  %v6193_v16 = vpop.f32.mrb[93].mxu1  ;;  %v4399_v41 = vpop.eup %4398  ;;  %v1283_v15 = vadd.f32 1.0, %v4397_v39  ;;  %4410 = verf.f32 %v1034_v2  ;;  %v1037_v29 = vmul.f32 0.70710677, %v779_v47  ;;  %v6202_v32 = vmul.f32 0.5, %v586_v19 }
 0x20c   :  { %7763 = vst [vmem:[#allocation164_spill] sm:$0xff] %v6193_v16  ;;  %7764 = vst [vmem:[#allocation165_spill] sm:$0xff] %v6196_v0  ;;  %v6198_v60 = vpop.f32.mrb[94].mxu0  ;;  %v6200_v51 = vpop.f32.mrb[94].mxu1  ;;  %v1285_v34 = vadd.f32 1.0, %v4399_v41  ;;  %4412 = verf.f32 %v1035_v33  ;;  %v6204_v57 = vmul.f32 0.5, %v779_v47  ;;  %v6211_v7 = vmul.f32 %v1282_v43, %v6110_v24 }
 0x20d   :  { %7765 = vst [vmem:[#allocation166_spill] sm:$0xff] %v6198_v60  ;;  %7766 = vst [vmem:[#allocation167_spill] sm:$0xff] %v6200_v51  ;;  %v6206_v61 = vpop.f32.mrb[95].mxu0  ;;  %v6208_v40 = vpop.f32.mrb[95].mxu1  ;;  %4414 = verf.f32 %v1037_v29  ;;  %v1036_v49 = vmul.f32 0.70710677, %v588_v23  ;;  %v6226_v24 = vmul.f32 %v1283_v15, %v6115_v31 }
 0x20e   :  { %7767 = vst [vmem:[#allocation168_spill] sm:$0xff] %v6206_v61  ;;  %7768 = vst [vmem:[#allocation169_spill] sm:$0xff] %v6208_v40  ;;  %v4401_v16 = vpop.eup %4400  ;;  %v7770_v2 = vld [vmem:[#allocation101_spill] sm:$0xff]  ;;  %v6215_v41 = vmul.f32 0.5, %v588_v23 }
 0x20f   :  { %7769 = vst [vmem:[#allocation170_spill] sm:$0xff] %v6211_v7  ;;  %v781_v39 = vadd.f32 %v7770_v2, %v5023_v42  ;;  %v1284_v0 = vadd.f32 1.0, %v4401_v16  ;;  %v7772_v19 = vld [vmem:[#allocation17_spill] sm:$0xff]  ;;  %v4403_v40 = vpop.eup %4402  ;;  %4416 = verf.f32 %v1036_v49  ;;  %v6233_v16 = vmul.f32 %v1285_v34, %v6117_v30 }
 0x210   :  { %7771 = vst [vmem:[#allocation101_spill] sm:$0xff] %v6215_v41  ;;  %v7773_v33 = vsub.s32 0, %v7772_v19  ;;  %v7774_v61 = vsub.s32 2, %v7772_v19  ;;  %7775 = vst [vmem:[#allocation17_spill] sm:$0xff] %v6226_v24  ;;  %v7776_v43 = vsub.s32 1, %v7772_v19  ;;  %v4405_v23 = vpop.eup %4404  ;;  %v1286_v2 = vadd.f32 1.0, %v4403_v40 }
 0x211   :  { %v1038_v29 = vmul.f32 0.70710677, %v781_v39  ;;  %7777 = vst [vmem:[#allocation171_spill] sm:$0xff] %v6233_v16  ;;  %v4407_v41 = vpop.eup %4406  ;;  %v1287_v31 = vadd.f32 1.0, %v4405_v23  ;;  %v7778_v49 = vsub.s32 3, %v7772_v19  ;;  %v6245_v24 = vpop.f32.mrb[96].mxu0  ;;  %v6250_v40 = vmul.f32 %v1284_v0, %v6128_v20 }
 0x212   :  { %v6219_v47 = vrot.slane %v1503_v13, %v7773_v33  ;;  %v6223_v51 = vrot.slane %v1503_v13, %v7774_v61  ;;  %v6230_v42 = vrot.slane %v1503_v13, %v7776_v43  ;;  %7779 = vst [vmem:[#allocation172_spill] sm:$0xff] %v6245_v24  ;;  %v6247_v30 = vpop.f32.mrb[96].mxu1  ;;  %v1289_v23 = vadd.f32 1.0, %v4407_v41  ;;  %v7791_v41 = vld [vmem:[#allocation107_spill] sm:$0xff] }
 0x213   :  { %4418 = verf.f32 %v1038_v29  ;;  %v6243_v43 = vrot.slane %v1503_v13, %v7778_v49  ;;  %7780 = vst [vmem:[#allocation173_spill] sm:$0xff] %v6247_v30  ;;  %7781 = vst [vmem:[#allocation174_spill] sm:$0xff] %v6250_v40  ;;  %v6257_v29 = vpop.f32.mrb[97].mxu0  ;;  %v4409_v19 = vpop.eup %4408  ;;  %v6262_v13 = vmul.f32 %v1287_v31, %v6159_v22  ;;  %v7792_v31 = vld [vmem:[#allocation108_spill] sm:$0xff] }
 0x214   :  { %v1720_v33 = vadd.f32 %v5804_v17, %v6219_v47  ;;  %v1913_v61 = vadd.f32 %v5806_v52, %v6223_v51  ;;  %v1722_v15 = vadd.f32 %v5814_v48, %v6230_v42  ;;  %v6253_v17 = vmul.f32 %v1286_v2, %v6150_v58  ;;  %7784 = vst [vmem:[#allocation177_spill] sm:$0xff] %v6257_v29  ;;  %v6259_v48 = vpop.f32.mrb[97].mxu1  ;;  %v6266_v20 = vpop.f32.mrb[98].mxu0 }
 0x215   :  { %v6255_v52 = vmul.f32 0.5, %v781_v39  ;;  %7785 = vst [vmem:[#allocation178_spill] sm:$0xff] %v6259_v48  ;;  %7786 = vst [vmem:[#allocation179_spill] sm:$0xff] %v6262_v13  ;;  %v6268_v0 = vpop.f32.mrb[98].mxu1  ;;  %v1288_v58 = vadd.f32 1.0, %v4409_v19  ;;  %v4411_v7 = vpop.eup %4410  ;;  %v1915_v22 = vadd.f32 %v5816_v35, %v6243_v43  ;;  %v1917_v13 = vadd.f32 %v7792_v31, %v6223_v51 }
 0x216   :  { %7782 = vst [vmem:[#allocation175_spill] sm:$0xff] %v6253_v17  ;;  %v2199_v34 = vmul.f32 0.70710677, %v1720_v33  ;;  %v6264_v49 = vmul.f32 0.5, %v1720_v33  ;;  %v2201_v16 = vmul.f32 0.70710677, %v1913_v61  ;;  %v1724_v33 = vadd.f32 %v7791_v41, %v6219_v47  ;;  %v4413_v19 = vpop.eup %4412 }
 0x217   :  { %7783 = vst [vmem:[#allocation176_spill] sm:$0xff] %v6255_v52  ;;  %7787 = vst [vmem:[#allocation180_spill] sm:$0xff] %v6266_v20  ;;  %v6270_v39 = vmul.f32 0.5, %v1913_v61  ;;  %v2200_v2 = vmul.f32 0.70710677, %v1722_v15  ;;  %v6272_v52 = vpop.f32.mrb[99].mxu0  ;;  %v1726_v40 = vadd.f32 %v5832_v9, %v6230_v42  ;;  %v6290_v35 = vmul.f32 %v1288_v58, %v6168_v25 }
 0x218   :  { %7788 = vst [vmem:[#allocation181_spill] sm:$0xff] %v6268_v0  ;;  %4420 = verf.f32 %v2199_v34  ;;  %7789 = vst [vmem:[#allocation182_spill] sm:$0xff] %v6272_v52  ;;  %v6274_v17 = vpop.f32.mrb[99].mxu1  ;;  %v1290_v34 = vadd.f32 1.0, %v4411_v7  ;;  %v6282_v61 = vmul.f32 0.5, %v1722_v15  ;;  %v1291_v52 = vadd.f32 1.0, %v4413_v19 }
 0x219   :  { %7790 = vst [vmem:[#allocation183_spill] sm:$0xff] %v6274_v17  ;;  %4422 = verf.f32 %v2201_v16  ;;  %v4415_v17 = vpop.eup %4414  ;;  %v6287_v16 = vmul.f32 %v1289_v23, %v6161_v27  ;;  %7794 = vst [vmem:[#allocation108_spill] sm:$0xff] %v6290_v35  ;;  %v2202_v41 = vmul.f32 0.70710677, %v1915_v22  ;;  %v6295_v31 = vmul.f32 0.5, %v1915_v22  ;;  %v6308_v22 = vpop.f32.mrb[100].mxu1 }
 0x21a   :  { %4424 = verf.f32 %v2200_v2  ;;  %v6293_v0 = vmul.f32 %v1290_v34, %v6189_v37  ;;  %v6297_v7 = vmul.f32 0.5, %v1724_v33  ;;  %v2203_v15 = vmul.f32 0.70710677, %v1724_v33  ;;  %v4417_v2 = vpop.eup %4416  ;;  %v6306_v37 = vpop.f32.mrb[100].mxu0  ;;  %7798 = vst [vmem:[#allocation187_spill] sm:$0xff] %v6308_v22 }
 0x21b   :  { %7793 = vst [vmem:[#allocation107_spill] sm:$0xff] %v6287_v16  ;;  %v1293_v20 = vadd.f32 1.0, %v4415_v17  ;;  %4426 = verf.f32 %v2202_v41  ;;  %v6299_v9 = vmul.f32 0.5, %v1917_v13  ;;  %v2205_v27 = vmul.f32 0.70710677, %v1917_v13  ;;  %7797 = vst [vmem:[#allocation186_spill] sm:$0xff] %v6306_v37 }
 0x21c   :  { %7795 = vst [vmem:[#allocation184_spill] sm:$0xff] %v6293_v0  ;;  %v6302_v23 = vmul.f32 %v1291_v52, %v6202_v32  ;;  %4428 = verf.f32 %v2203_v15  ;;  %v6304_v25 = vmul.f32 0.5, %v1726_v40  ;;  %v2204_v58 = vmul.f32 0.70710677, %v1726_v40  ;;  %v6316_v52 = vpop.f32.mrb[101].mxu0  ;;  %v6318_v13 = vpop.f32.mrb[101].mxu1 }
 0x21d   :  { %v4419_v19 = vpop.eup %4418  ;;  %4430 = verf.f32 %v2205_v27  ;;  %v1919_v17 = vadd.f32 %v5834_v6, %v6243_v43  ;;  %v1730_v33 = vadd.f32 %v5859_v63, %v6219_v47  ;;  %v1923_v32 = vadd.f32 %v5861_v10, %v6223_v51  ;;  %7799 = vst [vmem:[#allocation188_spill] sm:$0xff] %v6316_v52  ;;  %7800 = vst [vmem:[#allocation189_spill] sm:$0xff] %v6318_v13  ;;  %v6326_v15 = vpop.f32.mrb[102].mxu0 }
 0x21e   :  { %7796 = vst [vmem:[#allocation185_spill] sm:$0xff] %v6302_v23  ;;  %v6320_v40 = vadd.f32 1.0, %v4417_v2  ;;  %v6322_v34 = vadd.f32 1.0, %v4419_v19  ;;  %4432 = verf.f32 %v2204_v58  ;;  %v1732_v41 = vadd.f32 %v5868_v12, %v6230_v42  ;;  %7803 = vst [vmem:[#allocation192_spill] sm:$0xff] %v6326_v15  ;;  %v6328_v6 = vpop.f32.mrb[102].mxu1  ;;  %v6341_v12 = vpop.f32.mrb[103].mxu0 }
 0x21f   :  { %7804 = vst [vmem:[#allocation193_spill] sm:$0xff] %v6328_v6  ;;  %v6330_v63 = vmul.f32 0.5, %v1919_v17  ;;  %v2206_v27 = vmul.f32 0.70710677, %v1919_v17  ;;  %v6332_v10 = vmul.f32 0.5, %v1730_v33  ;;  %v6335_v2 = vmul.f32 %v1293_v20, %v6204_v57  ;;  %7806 = vst [vmem:[#allocation195_spill] sm:$0xff] %v6341_v12 }
 0x220   :  { %7801 = vst [vmem:[#allocation190_spill] sm:$0xff] %v6320_v40  ;;  %7802 = vst [vmem:[#allocation191_spill] sm:$0xff] %v6322_v34  ;;  %v2207_v16 = vmul.f32 0.70710677, %v1730_v33  ;;  %v6337_v19 = vmul.f32 0.5, %v1923_v32  ;;  %v6339_v34 = vmul.f32 0.5, %v1732_v41  ;;  %v1734_v57 = vadd.f32 %v5875_v62, %v6219_v47 }
 0x221   :  { %7805 = vst [vmem:[#allocation194_spill] sm:$0xff] %v6335_v2  ;;  %v2209_v58 = vmul.f32 0.70710677, %v1923_v32  ;;  %v6343_v40 = vpop.f32.mrb[103].mxu1  ;;  %4434 = verf.f32 %v2206_v27  ;;  %v2208_v17 = vmul.f32 0.70710677, %v1732_v41 }
 0x222   :  { %v4421_v23 = vpop.eup %4420  ;;  %7807 = vst [vmem:[#allocation196_spill] sm:$0xff] %v6343_v40  ;;  %v7808_v6 = vld [vmem:[#allocation114_spill] sm:$0xff]  ;;  %4436 = verf.f32 %v2207_v16  ;;  %v7809_v20 = vld [vmem:[#allocation116_spill] sm:$0xff] }
 0x223   :  { %v4423_v0 = vpop.eup %4422  ;;  %v2455_v35 = vadd.f32 1.0, %v4421_v23  ;;  %v1925_v33 = vadd.f32 %v7808_v6, %v6243_v43  ;;  %v1927_v32 = vadd.f32 %v7809_v20, %v6223_v51  ;;  %4438 = verf.f32 %v2209_v58  ;;  %v7810_v16 = vld [vmem:[#allocation18_spill] sm:$0xff] }
 0x224   :  { %v4425_v15 = vpop.eup %4424  ;;  %v2457_v13 = vadd.f32 1.0, %v4423_v0  ;;  %4440 = verf.f32 %v2208_v17  ;;  %v6355_v6 = vmul.f32 0.5, %v1734_v57  ;;  %v2211_v20 = vmul.f32 0.70710677, %v1734_v57 }
 0x225   :  { %v2583_v2 = vmul.f32 %v2455_v35, %v6264_v49  ;;  %v2456_v12 = vadd.f32 1.0, %v4425_v15  ;;  %v6352_v40 = vmul.f32 0.5, %v1925_v33  ;;  %v2210_v41 = vmul.f32 0.70710677, %v1925_v33  ;;  %v4427_v0 = vpop.eup %4426  ;;  %v7811_v35 = vld [vmem:[#allocation19_spill] sm:$0xff]  ;;  %v7812_v33 = vld [vmem:[#allocation117_spill] sm:$0xff] }
 0x226   :  { %v2585_v23 = vmul.f32 %v2457_v13, %v6270_v39  ;;  %v6363_v52 = vmul.f32 0.5, %v1927_v32  ;;  %v4429_v49 = vpop.eup %4428  ;;  %v2458_v58 = vadd.f32 1.0, %v4427_v0  ;;  %v2213_v39 = vmul.f32 0.70710677, %v1927_v32 }
 0x227   :  { %v6358_v27 = vadd.f32 %v2583_v2, %v7810_v16  ;;  %v6361_v62 = vmul.f32 %v2456_v12, %v6282_v61  ;;  %4442 = verf.f32 %v2210_v41  ;;  %v4431_v13 = vpop.eup %4430  ;;  %v2459_v17 = vadd.f32 1.0, %v4429_v49  ;;  %v7813_v16 = vld [vmem:[#allocation118_spill] sm:$0xff] }
 0x228   :  { %v6366_v15 = vadd.f32 %v2585_v23, %v7811_v35  ;;  %4444 = verf.f32 %v2211_v20  ;;  %v1736_v2 = vadd.f32 %v7812_v33, %v6230_v42  ;;  %v1929_v61 = vadd.f32 %v7813_v16, %v6243_v43  ;;  %v4433_v12 = vpop.eup %4432 }
 0x229   :  { %v6373_v57 = vmul.f32 %v2458_v58, %v6295_v31  ;;  %v2461_v22 = vadd.f32 1.0, %v4431_v13  ;;  %4446 = verf.f32 %v2213_v39  ;;  %v1740_v23 = vadd.f32 %v5911_v44, %v6219_v47  ;;  %v6385_v31 = vpop.f32.mrb[104].mxu0  ;;  %v6387_v58 = vpop.f32.mrb[104].mxu1  ;;  %v7816_v13 = vld [vmem:[#allocation22_spill] sm:$0xff] }
 0x22a   :  { %v2587_v32 = vmul.f32 %v2459_v17, %v6297_v7  ;;  %v2460_v41 = vadd.f32 1.0, %v4433_v12  ;;  %v6378_v0 = vmul.f32 0.5, %v1736_v2  ;;  %v2212_v20 = vmul.f32 0.70710677, %v1736_v2  ;;  %7814 = vst [vmem:[#allocation114_spill] sm:$0xff] %v6385_v31  ;;  %7815 = vst [vmem:[#allocation116_spill] sm:$0xff] %v6387_v58 }
 0x22b   :  { %v2589_v49 = vmul.f32 %v2461_v22, %v6299_v9  ;;  %v6381_v35 = vmul.f32 0.5, %v1929_v61  ;;  %v2214_v33 = vmul.f32 0.70710677, %v1929_v61  ;;  %v6383_v16 = vmul.f32 0.5, %v1740_v23  ;;  %v4435_v39 = vpop.eup %4434  ;;  %v6395_v2 = vpop.f32.mrb[105].mxu0  ;;  %v7819_v61 = vld [vmem:[#allocation23_spill] sm:$0xff] }
 0x22c   :  { %v6390_v44 = vadd.f32 %v2587_v32, %v7816_v13  ;;  %v6393_v7 = vmul.f32 %v2460_v41, %v6304_v25  ;;  %4448 = verf.f32 %v2212_v20  ;;  %v2215_v17 = vmul.f32 0.70710677, %v1740_v23  ;;  %7817 = vst [vmem:[#allocation18_spill] sm:$0xff] %v6395_v2  ;;  %v6397_v9 = vpop.f32.mrb[105].mxu1  ;;  %v4437_v22 = vpop.eup %4436 }
 0x22d   :  { %7818 = vst [vmem:[#allocation19_spill] sm:$0xff] %v6397_v9  ;;  %v6400_v12 = vadd.f32 %v2589_v49, %v7819_v61  ;;  %v2462_v31 = vadd.f32 1.0, %v4435_v39  ;;  %4450 = verf.f32 %v2214_v33  ;;  %v1933_v58 = vadd.f32 %v5913_v11, %v6223_v51  ;;  %v6404_v32 = vpop.f32.mrb[106].mxu0  ;;  %v6406_v13 = vpop.f32.mrb[106].mxu1  ;;  %v7824_v11 = vld [vmem:[#allocation121_spill] sm:$0xff] }
 0x22e   :  { %7820 = vst [vmem:[#allocation117_spill] sm:$0xff] %v6404_v32  ;;  %7821 = vst [vmem:[#allocation118_spill] sm:$0xff] %v6406_v13  ;;  %v4439_v25 = vpop.eup %4438  ;;  %v2463_v41 = vadd.f32 1.0, %v4437_v22  ;;  %4452 = verf.f32 %v2215_v17  ;;  %v1742_v20 = vadd.f32 %v5919_v28, %v6230_v42  ;;  %v6412_v49 = vpop.f32.mrb[107].mxu0  ;;  %v1935_v2 = vadd.f32 %v7824_v11, %v6243_v43 }
 0x22f   :  { %7822 = vst [vmem:[#allocation22_spill] sm:$0xff] %v6412_v49  ;;  %v6414_v39 = vpop.f32.mrb[107].mxu1  ;;  %v4441_v33 = vpop.eup %4440  ;;  %v6419_v61 = vmul.f32 %v2462_v31, %v6330_v63  ;;  %v2465_v13 = vadd.f32 1.0, %v4439_v25  ;;  %v6421_v32 = vmul.f32 0.5, %v1933_v58  ;;  %v2217_v23 = vmul.f32 0.70710677, %v1933_v58 }
 0x230   :  { %7823 = vst [vmem:[#allocation23_spill] sm:$0xff] %v6414_v39  ;;  %v6424_v22 = vmul.f32 %v2463_v41, %v6332_v10  ;;  %v2464_v17 = vadd.f32 1.0, %v4441_v33  ;;  %v6426_v28 = vmul.f32 0.5, %v1742_v20  ;;  %v2216_v9 = vmul.f32 0.70710677, %v1742_v20  ;;  %v7825_v63 = vld [vmem:[#allocation123_spill] sm:$0xff] }
 0x231   :  { %v4443_v49 = vpop.eup %4442  ;;  %v6429_v39 = vmul.f32 %v2465_v13, %v6337_v19  ;;  %v1744_v31 = vadd.f32 %v7825_v63, %v6219_v47  ;;  %4454 = verf.f32 %v2217_v23  ;;  %v7826_v58 = vld [vmem:[#allocation124_spill] sm:$0xff]  ;;  %v6440_v19 = vmul.f32 0.5, %v1935_v2 }
 0x232   :  { %v4445_v25 = vpop.eup %4444  ;;  %v6436_v37 = vmul.f32 %v2464_v17, %v6339_v34  ;;  %v2466_v10 = vadd.f32 1.0, %v4443_v49  ;;  %v1937_v41 = vadd.f32 %v7826_v58, %v6223_v51  ;;  %4456 = verf.f32 %v2216_v9 }
 0x233   :  { %v4447_v33 = vpop.eup %4446  ;;  %v2467_v48 = vadd.f32 1.0, %v4445_v25  ;;  %v2218_v13 = vmul.f32 0.70710677, %v1935_v2  ;;  %v6445_v63 = vmul.f32 0.5, %v1744_v31  ;;  %v2219_v29 = vmul.f32 0.70710677, %v1744_v31 }
 0x234   :  { %v6443_v20 = vmul.f32 %v2466_v10, %v6352_v40  ;;  %v2469_v11 = vadd.f32 1.0, %v4447_v33  ;;  %v6450_v23 = vmul.f32 0.5, %v1937_v41  ;;  %v2221_v49 = vmul.f32 0.70710677, %v1937_v41  ;;  %v7827_v2 = vld [vmem:[#allocation125_spill] sm:$0xff]  ;;  %v7828_v25 = vld [vmem:[#allocation126_spill] sm:$0xff] }
 0x235   :  { %v6448_v34 = vmul.f32 %v2467_v48, %v6355_v6  ;;  %4458 = verf.f32 %v2218_v13  ;;  %v1746_v40 = vadd.f32 %v7827_v2, %v6230_v42  ;;  %v1939_v10 = vadd.f32 %v7828_v25, %v6243_v43 }
 0x236   :  { %v4449_v17 = vpop.eup %4448  ;;  %v6453_v9 = vmul.f32 %v2469_v11, %v6363_v52  ;;  %4460 = verf.f32 %v2219_v29  ;;  %v1750_v48 = vadd.f32 %v5964_v18, %v6219_v47  ;;  %v1943_v6 = vadd.f32 %v5966_v54, %v6223_v51 }
 0x237   :  { %v4451_v58 = vpop.eup %4450  ;;  %v2468_v31 = vadd.f32 1.0, %v4449_v17  ;;  %4462 = verf.f32 %v2221_v49  ;;  %v6463_v52 = vmul.f32 0.5, %v1746_v40  ;;  %v2220_v29 = vmul.f32 0.70710677, %v1746_v40 }
 0x238   :  { %v4453_v41 = vpop.eup %4452  ;;  %v2470_v33 = vadd.f32 1.0, %v4451_v58  ;;  %v6465_v13 = vmul.f32 0.5, %v1939_v10  ;;  %v2222_v25 = vmul.f32 0.70710677, %v1939_v10  ;;  %v6470_v17 = vmul.f32 0.5, %v1750_v48  ;;  %v6484_v10 = vpop.f32.mrb[108].mxu1 }
 0x239   :  { %v6468_v11 = vmul.f32 %v2468_v31, %v6378_v0  ;;  %v2471_v2 = vadd.f32 1.0, %v4453_v41  ;;  %4464 = verf.f32 %v2220_v29  ;;  %v2223_v18 = vmul.f32 0.70710677, %v1750_v48  ;;  %v6482_v31 = vpop.f32.mrb[108].mxu0  ;;  %7830 = vst [vmem:[#allocation123_spill] sm:$0xff] %v6484_v10  ;;  %v7832_v48 = vld [vmem:[#allocation131_spill] sm:$0xff] }
 0x23a   :  { %v6473_v49 = vmul.f32 %v2470_v33, %v6381_v35  ;;  %v6475_v54 = vmul.f32 0.5, %v1943_v6  ;;  %4466 = verf.f32 %v2222_v25  ;;  %v2225_v40 = vmul.f32 0.70710677, %v1943_v6  ;;  %7829 = vst [vmem:[#allocation121_spill] sm:$0xff] %v6482_v31  ;;  %v7831_v35 = vld [vmem:[#allocation77_spill] sm:$0xff]  ;;  %v6492_v25 = vpop.f32.mrb[109].mxu0 }
 0x23b   :  { %v6478_v58 = vmul.f32 %v2471_v2, %v6383_v16  ;;  %v1752_v0 = vadd.f32 %v5974_v26, %v6230_v42  ;;  %v4455_v41 = vpop.eup %4454  ;;  %4468 = verf.f32 %v2223_v18  ;;  %v1945_v33 = vadd.f32 %v7831_v35, %v6243_v43  ;;  %v7833_v16 = vld [vmem:[#allocation132_spill] sm:$0xff]  ;;  %7834 = vst [vmem:[#allocation124_spill] sm:$0xff] %v6492_v25  ;;  %v6494_v6 = vpop.f32.mrb[109].mxu1 }
 0x23c   :  { %v1754_v29 = vadd.f32 %v7832_v48, %v6219_v47  ;;  %v1947_v2 = vadd.f32 %v7833_v16, %v6223_v51  ;;  %7835 = vst [vmem:[#allocation125_spill] sm:$0xff] %v6494_v6  ;;  %v4457_v26 = vpop.eup %4456  ;;  %v2473_v30 = vadd.f32 1.0, %v4455_v41  ;;  %4470 = verf.f32 %v2225_v40  ;;  %v6498_v18 = vpop.f32.mrb[110].mxu0 }
 0x23d   :  { %v6496_v31 = vmul.f32 0.5, %v1752_v0  ;;  %v2224_v10 = vmul.f32 0.70710677, %v1752_v0  ;;  %7836 = vst [vmem:[#allocation126_spill] sm:$0xff] %v6498_v18  ;;  %v6500_v24 = vpop.f32.mrb[110].mxu1  ;;  %v2472_v35 = vadd.f32 1.0, %v4457_v26 }
 0x23e   :  { %7837 = vst [vmem:[#allocation77_spill] sm:$0xff] %v6500_v24  ;;  %v6502_v60 = vmul.f32 0.5, %v1945_v33  ;;  %v2226_v48 = vmul.f32 0.70710677, %v1945_v33  ;;  %v6504_v21 = vmul.f32 0.5, %v1754_v29  ;;  %v6506_v16 = vpop.f32.mrb[111].mxu0  ;;  %v6509_v6 = vmul.f32 %v2473_v30, %v6421_v32 }
 0x23f   :  { %7838 = vst [vmem:[#allocation131_spill] sm:$0xff] %v6506_v16  ;;  %v4459_v25 = vpop.eup %4458  ;;  %4472 = verf.f32 %v2224_v10  ;;  %v2227_v40 = vmul.f32 0.70710677, %v1754_v29  ;;  %v6511_v41 = vmul.f32 0.5, %v1947_v2  ;;  %v6513_v0 = vpop.f32.mrb[111].mxu1  ;;  %v6516_v26 = vmul.f32 %v2472_v35, %v6426_v28 }
 0x240   :  { %7839 = vst [vmem:[#allocation132_spill] sm:$0xff] %v6513_v0  ;;  %v4461_v18 = vpop.eup %4460  ;;  %v2474_v24 = vadd.f32 1.0, %v4459_v25  ;;  %4474 = verf.f32 %v2226_v48  ;;  %v2229_v33 = vmul.f32 0.70710677, %v1947_v2  ;;  %v1756_v30 = vadd.f32 %v5992_v53, %v6230_v42  ;;  %v7840_v0 = vld [vmem:[#allocation20_spill] sm:$0xff] }
 0x241   :  { %v4463_v46 = vpop.eup %4462  ;;  %v2475_v56 = vadd.f32 1.0, %v4461_v18  ;;  %4476 = verf.f32 %v2227_v40  ;;  %v1949_v32 = vadd.f32 %v5994_v5, %v6243_v43  ;;  %v2712_v28 = vadd.f32 %v6361_v62, %v7840_v0 }
 0x242   :  { %v6523_v10 = vmul.f32 %v2474_v24, %v6440_v19  ;;  %v2477_v29 = vadd.f32 1.0, %v4463_v46  ;;  %4478 = verf.f32 %v2229_v33  ;;  %v6530_v2 = vmul.f32 0.5, %v1756_v30  ;;  %v7841_v24 = vld [vmem:[#allocation24_spill] sm:$0xff]  ;;  %v7842_v19 = vld [vmem:[#allocation21_spill] sm:$0xff] }
 0x243   :  { %v6528_v25 = vmul.f32 %v2475_v56, %v6445_v63  ;;  %v2228_v18 = vmul.f32 0.70710677, %v1756_v30  ;;  %v6532_v35 = vmul.f32 0.5, %v1949_v32  ;;  %v4465_v53 = vpop.eup %4464  ;;  %v2230_v5 = vmul.f32 0.70710677, %v1949_v32  ;;  %v7843_v56 = vld [vmem:[#allocation25_spill] sm:$0xff] }
 0x244   :  { %v6535_v48 = vmul.f32 %v2477_v29, %v6450_v23  ;;  %v2716_v46 = vadd.f32 %v6393_v7, %v7841_v24  ;;  %v2714_v40 = vadd.f32 %v6373_v57, %v7842_v19  ;;  %v4467_v62 = vpop.eup %4466  ;;  %v2476_v0 = vadd.f32 1.0, %v4465_v53  ;;  %v7844_v33 = vld [vmem:[#allocation84_spill] sm:$0xff] }
 0x245   :  { %4480 = verf.f32 %v2228_v18  ;;  %v2718_v63 = vadd.f32 %v6419_v61, %v7843_v56  ;;  %v1760_v30 = vadd.f32 %v7844_v33, %v6219_v47  ;;  %v4469_v16 = vpop.eup %4468  ;;  %v2478_v59 = vadd.f32 1.0, %v4467_v62  ;;  %v7845_v32 = vld [vmem:[#allocation136_spill] sm:$0xff] }
 0x246   :  { %4482 = verf.f32 %v2230_v5  ;;  %v2840_v23 = vpack.c.bf16 %v2716_v46, %v2712_v28  ;;  %v1953_v29 = vadd.f32 %v7845_v32, %v6223_v51  ;;  %v4471_v7 = vpop.eup %4470  ;;  %v6548_v24 = vmul.f32 %v2476_v0, %v6463_v52  ;;  %v6569_v0 = vpop.f32.mrb[112].mxu1 }
 0x247   :  { %v2479_v57 = vadd.f32 1.0, %v4469_v16  ;;  %v2842_v53 = vpack.c.bf16 %v2718_v63, %v2714_v40  ;;  %v6550_v18 = vmul.f32 0.5, %v1760_v30  ;;  %v6553_v61 = vmul.f32 %v2478_v59, %v6465_v13  ;;  %v7847_v59 = vld [vmem:[#allocation138_spill] sm:$0xff]  ;;  %v6567_v40 = vpop.f32.mrb[112].mxu0 }
 0x248   :  { %v2481_v19 = vadd.f32 1.0, %v4471_v7  ;;  %3223 = vmatprep.mubr.bf16.mxu0 %v2840_v23  ;;  %v2231_v56 = vmul.f32 0.70710677, %v1760_v30  ;;  %v6555_v62 = vmul.f32 0.5, %v1953_v29  ;;  %v7846_v52 = vpack.c.bf16 %v6390_v44, %v6358_v27  ;;  %v6579_v44 = vpop.f32.mrb[113].mxu0  ;;  %v6581_v30 = vpop.f32.mrb[113].mxu1 }
 0x249   :  { %v4473_v28 = vpop.eup %4472  ;;  %v6558_v5 = vmul.f32 %v2479_v57, %v6470_v17  ;;  %3384 = vmatprep.mubr.bf16.mxu1 %v2842_v53  ;;  %v2233_v16 = vmul.f32 0.70710677, %v1953_v29  ;;  %v1762_v46 = vadd.f32 %v6028_v3, %v6230_v42  ;;  %v1955_v13 = vadd.f32 %v7847_v59, %v6243_v43  ;;  %v6585_v7 = vpop.f32.mrb[114].mxu0 }
 0x24a   :  { %3224 = vmatmul.mubr.bf16.vlgmr.msra.gmra.mrb[128].mxu0 %v7846_v52  ;;  %v4475_v63 = vpop.eup %4474  ;;  %v6572_v17 = vmul.f32 %v2481_v19, %v6475_v54  ;;  %v2480_v33 = vadd.f32 1.0, %v4473_v28  ;;  %v7848_v27 = vpack.c.bf16 %v6400_v12, %v6366_v15  ;;  %4484 = verf.f32 %v2231_v56  ;;  %v6587_v57 = vpop.f32.mrb[114].mxu1 }
 0x24b   :  { %v1764_v3 = vadd.f32 %v6035_v8, %v6219_v47  ;;  %v4477_v23 = vpop.eup %4476  ;;  %v2482_v32 = vadd.f32 1.0, %v4475_v63  ;;  %4486 = verf.f32 %v2233_v16  ;;  %v6583_v29 = vmul.f32 0.5, %v1762_v46  ;;  %7849 = vst [vmem:[#allocation20_spill] sm:$0xff] %v6587_v57  ;;  %v6594_v56 = vpop.f32.mrb[115].mxu0  ;;  %v7860_v57 = vld [vmem:[#allocation31_spill] sm:$0xff] }
 0x24c   :  { %3385 = vmatmul.mubr.bf16.vlgmr.msra.gmra.mrb[128].mxu1 %v7848_v27  ;;  %v2232_v54 = vmul.f32 0.70710677, %v1762_v46  ;;  %v4479_v15 = vpop.eup %4478  ;;  %v6590_v12 = vmul.f32 %v2480_v33, %v6496_v31  ;;  %v2483_v53 = vadd.f32 1.0, %v4477_v23  ;;  %v6592_v8 = vmul.f32 0.5, %v1955_v13  ;;  %7850 = vst [vmem:[#allocation24_spill] sm:$0xff] %v6594_v56  ;;  %v6596_v28 = vpop.f32.mrb[115].mxu1 }
 0x24d   :  { %v2234_v19 = vmul.f32 0.70710677, %v1955_v13  ;;  %7851 = vst [vmem:[#allocation21_spill] sm:$0xff] %v6596_v28  ;;  %v6599_v52 = vmul.f32 %v2482_v32, %v6502_v60  ;;  %v2485_v16 = vadd.f32 1.0, %v4479_v15  ;;  %v6601_v46 = vmul.f32 0.5, %v1764_v3  ;;  %v7852_v27 = vld [vmem:[#allocation140_spill] sm:$0xff] }
 0x24e   :  { %4488 = verf.f32 %v2232_v54  ;;  %v6604_v59 = vmul.f32 %v2483_v53, %v6504_v21  ;;  %v2235_v31 = vmul.f32 0.70710677, %v1764_v3  ;;  %v1957_v63 = vadd.f32 %v6037_v38, %v6223_v51  ;;  %v7853_v32 = vld [vmem:[#allocation28_spill] sm:$0xff] }
 0x24f   :  { %4490 = verf.f32 %v2234_v19  ;;  %v4481_v13 = vpop.eup %4480  ;;  %v6609_v33 = vmul.f32 %v2485_v16, %v6511_v41  ;;  %v1766_v60 = vadd.f32 %v6043_v50, %v6230_v42  ;;  %v1959_v23 = vadd.f32 %v7852_v27, %v6243_v43  ;;  %v7854_v28 = vld [vmem:[#allocation32_spill] sm:$0xff] }
 0x250   :  { %v2720_v54 = vadd.f32 %v6436_v37, %v7853_v32  ;;  %v4483_v21 = vpop.eup %4482  ;;  %v2484_v15 = vadd.f32 1.0, %v4481_v13  ;;  %4492 = verf.f32 %v2235_v31  ;;  %v6617_v3 = vmul.f32 0.5, %v1957_v63  ;;  %v7855_v31 = vld [vmem:[#allocation29_spill] sm:$0xff] }
 0x251   :  { %v2237_v53 = vmul.f32 0.70710677, %v1957_v63  ;;  %v2486_v38 = vadd.f32 1.0, %v4483_v21  ;;  %v6619_v19 = vmul.f32 0.5, %v1766_v60  ;;  %v2236_v41 = vmul.f32 0.70710677, %v1766_v60 }
 0x252   :  { %v6621_v16 = vmul.f32 0.5, %v1959_v23  ;;  %v6624_v50 = vmul.f32 %v2484_v15, %v6530_v2  ;;  %v2238_v27 = vmul.f32 0.70710677, %v1959_v23  ;;  %v2724_v37 = vadd.f32 %v6468_v11, %v7854_v28  ;;  %v7856_v32 = vld [vmem:[#allocation33_spill] sm:$0xff]  ;;  %v7857_v2 = vld [vmem:[#allocation26_spill] sm:$0xff] }
 0x253   :  { %4494 = verf.f32 %v2237_v53  ;;  %v6629_v13 = vmul.f32 %v2486_v38, %v6532_v35  ;;  %v2722_v63 = vadd.f32 %v6443_v20, %v7855_v31  ;;  %v2726_v60 = vadd.f32 %v6473_v49, %v7856_v32  ;;  %v7858_v23 = vld [vmem:[#allocation30_spill] sm:$0xff]  ;;  %v7859_v38 = vld [vmem:[#allocation27_spill] sm:$0xff] }
 0x254   :  { %4496 = verf.f32 %v2236_v41  ;;  %v4485_v21 = vpop.eup %4484  ;;  %v2844_v56 = vpack.c.bf16 %v2724_v37, %v2720_v54  ;;  %v2719_v15 = vadd.f32 %v6424_v22, %v7857_v2  ;;  %v2723_v53 = vadd.f32 %v6448_v34, %v7858_v23 }
 0x255   :  { %4498 = verf.f32 %v2238_v27  ;;  %v4487_v11 = vpop.eup %4486  ;;  %v2487_v28 = vadd.f32 1.0, %v4485_v21  ;;  %v2846_v35 = vpack.c.bf16 %v2726_v60, %v2722_v63  ;;  %v2721_v41 = vadd.f32 %v6429_v39, %v7859_v38 }
 0x256   :  { %v2725_v20 = vadd.f32 %v6453_v9, %v7860_v57  ;;  %v2489_v31 = vadd.f32 1.0, %v4487_v11  ;;  %3231 = vmatprep.mubr.bf16.mxu0 %v2844_v56  ;;  %v2843_v49 = vpack.c.bf16 %v2723_v53, %v2719_v15  ;;  %v1770_v54 = vadd.f32 %v6071_v55, %v6219_v47  ;;  %v7861_v9 = vld [vmem:[#allocation145_spill] sm:$0xff]  ;;  %v6670_v11 = vpop.f32.mrb[116].mxu1 }
 0x257   :  { %v1963_v22 = vadd.f32 %v6073_v14, %v6223_v51  ;;  %v6648_v34 = vmul.f32 %v2487_v28, %v6550_v18  ;;  %3392 = vmatprep.mubr.bf16.mxu1 %v2846_v35  ;;  %v1772_v39 = vadd.f32 %v6079_v45, %v6230_v42  ;;  %v1965_v57 = vadd.f32 %v7861_v9, %v6243_v43  ;;  %v6663_v45 = vpop.f32.mrb[116].mxu0 }
 0x258   :  { %v4489_v27 = vpop.eup %4488  ;;  %v2845_v37 = vpack.c.bf16 %v2725_v20, %v2721_v41  ;;  %v6655_v63 = vmul.f32 %v2489_v31, %v6555_v62  ;;  %3232 = vmatmul.mubr.bf16.gmra.mrb[132].mxu0 %v2843_v49  ;;  %v6657_v32 = vmul.f32 0.5, %v1770_v54  ;;  %v2239_v14 = vmul.f32 0.70710677, %v1770_v54  ;;  %v6672_v28 = vpop.f32.mrb[117].mxu0  ;;  %v7863_v49 = vld [vmem:[#allocation90_spill] sm:$0xff] }
 0x259   :  { %v4491_v56 = vpop.eup %4490  ;;  %v2488_v55 = vadd.f32 1.0, %v4489_v27  ;;  %v6659_v18 = vmul.f32 0.5, %v1963_v22  ;;  %v2241_v21 = vmul.f32 0.70710677, %v1963_v22  ;;  %v6661_v2 = vmul.f32 0.5, %v1772_v39  ;;  %v6677_v20 = vpop.f32.mrb[117].mxu1 }
 0x25a   :  { %v2490_v60 = vadd.f32 1.0, %v4491_v56  ;;  %3393 = vmatmul.mubr.bf16.gmra.mrb[132].mxu1 %v2845_v37  ;;  %v4493_v15 = vpop.eup %4492  ;;  %4500 = verf.f32 %v2239_v14  ;;  %v2240_v62 = vmul.f32 0.70710677, %v1772_v39  ;;  %v6668_v53 = vmul.f32 0.5, %v1965_v57  ;;  %v6679_v31 = vpop.f32.mrb[118].mxu0  ;;  %v7864_v22 = vld [vmem:[#allocation147_spill] sm:$0xff] }
 0x25b   :  { %v6666_v23 = vmul.f32 %v2488_v55, %v6583_v29  ;;  %v2491_v38 = vadd.f32 1.0, %v4493_v15  ;;  %4502 = verf.f32 %v2241_v21  ;;  %v2242_v41 = vmul.f32 0.70710677, %v1965_v57  ;;  %7862 = vst [vmem:[#allocation25_spill] sm:$0xff] %v6679_v31  ;;  %v7865_v37 = vld [vmem:[#allocation148_spill] sm:$0xff]  ;;  %v6689_v9 = vpop.f32.mrb[119].mxu0 }
 0x25c   :  { %v6675_v35 = vmul.f32 %v2490_v60, %v6592_v8  ;;  %4504 = verf.f32 %v2240_v62  ;;  %v1774_v54 = vadd.f32 %v7863_v49, %v6219_v47  ;;  %v1967_v27 = vadd.f32 %v7864_v22, %v6223_v51  ;;  %v6687_v8 = vpop.f32.mrb[118].mxu1  ;;  %7867 = vst [vmem:[#allocation136_spill] sm:$0xff] %v6689_v9  ;;  %v7868_v14 = vld [vmem:[#allocation149_spill] sm:$0xff] }
 0x25d   :  { %v4495_v29 = vpop.eup %4494  ;;  %v1776_v39 = vadd.f32 %v7865_v37, %v6230_v42  ;;  %7866 = vst [vmem:[#allocation84_spill] sm:$0xff] %v6687_v8  ;;  %v6692_v56 = vmul.f32 %v2491_v38, %v6601_v46  ;;  %4506 = verf.f32 %v2242_v41  ;;  %v1969_v60 = vadd.f32 %v7868_v14, %v6243_v43  ;;  %v6696_v21 = vpop.f32.mrb[119].mxu1 }
 0x25e   :  { %v4497_v57 = vpop.eup %4496  ;;  %v2493_v55 = vadd.f32 1.0, %v4495_v29  ;;  %7869 = vst [vmem:[#allocation138_spill] sm:$0xff] %v6696_v21  ;;  %v6698_v49 = vmul.f32 0.5, %v1774_v54  ;;  %v2243_v22 = vmul.f32 0.70710677, %v1774_v54  ;;  %v6700_v37 = vmul.f32 0.5, %v1967_v27 }
 0x25f   :  { %v4499_v15 = vpop.eup %4498  ;;  %v2492_v62 = vadd.f32 1.0, %v4497_v57  ;;  %v2245_v46 = vmul.f32 0.70710677, %v1967_v27  ;;  %v6705_v38 = vmul.f32 0.5, %v1776_v39  ;;  %v2244_v29 = vmul.f32 0.70710677, %v1776_v39 }
 0x260   :  { %v6703_v9 = vmul.f32 %v2493_v55, %v6617_v3  ;;  %v2494_v8 = vadd.f32 1.0, %v4499_v15  ;;  %4508 = verf.f32 %v2243_v22  ;;  %v6710_v14 = vmul.f32 0.5, %v1969_v60  ;;  %v7870_v21 = vld [vmem:[#allocation36_spill] sm:$0xff]  ;;  %v7872_v15 = vld [vmem:[#allocation37_spill] sm:$0xff]  ;;  %v7874_v22 = vld [vmem:[#allocation34_spill] sm:$0xff] }
 0x261   :  { %v6708_v41 = vmul.f32 %v2492_v62, %v6619_v19  ;;  %4510 = verf.f32 %v2245_v46  ;;  %v2246_v54 = vmul.f32 0.70710677, %v1969_v60  ;;  %v2728_v3 = vadd.f32 %v6516_v26, %v7870_v21  ;;  %v7871_v55 = vld [vmem:[#allocation40_spill] sm:$0xff]  ;;  %v7873_v62 = vld [vmem:[#allocation41_spill] sm:$0xff]  ;;  %v7876_v46 = vld [vmem:[#allocation35_spill] sm:$0xff] }
 0x262   :  { %v6713_v57 = vmul.f32 %v2494_v8, %v6621_v16  ;;  %4512 = verf.f32 %v2244_v29  ;;  %v2732_v27 = vadd.f32 %v6548_v24, %v7871_v55  ;;  %v2730_v19 = vadd.f32 %v6523_v10, %v7872_v15  ;;  %v7875_v8 = vld [vmem:[#allocation38_spill] sm:$0xff]  ;;  %v7877_v24 = vld [vmem:[#allocation39_spill] sm:$0xff] }
 0x263   :  { %v2734_v39 = vadd.f32 %v6553_v61, %v7873_v62  ;;  %4514 = verf.f32 %v2246_v54  ;;  %v2727_v16 = vadd.f32 %v6478_v58, %v7874_v22  ;;  %v2731_v60 = vadd.f32 %v6528_v25, %v7875_v8 }
 0x264   :  { %v2729_v26 = vadd.f32 %v6509_v6, %v7876_v46  ;;  %v4501_v21 = vpop.eup %4500  ;;  %v2848_v29 = vpack.c.bf16 %v2732_v27, %v2728_v3  ;;  %v2733_v55 = vadd.f32 %v6535_v48, %v7877_v24  ;;  %v1780_v10 = vadd.f32 %v6124_v4, %v6219_v47 }
 0x265   :  { %v2850_v31 = vpack.c.bf16 %v2734_v39, %v2730_v19  ;;  %v4503_v61 = vpop.eup %4502  ;;  %v2495_v54 = vadd.f32 1.0, %v4501_v21  ;;  %v2847_v15 = vpack.c.bf16 %v2731_v60, %v2727_v16  ;;  %v1973_v58 = vadd.f32 %v6126_v1, %v6223_v51  ;;  %v6744_v16 = vpop.f32.mrb[120].mxu0 }
 0x266   :  { %v1782_v25 = vadd.f32 %v6134_v36, %v6230_v42  ;;  %v4505_v62 = vpop.eup %4504  ;;  %v2497_v6 = vadd.f32 1.0, %v4503_v61  ;;  %3239 = vmatprep.mubr.bf16.mxu0 %v2848_v29  ;;  %v2849_v3 = vpack.c.bf16 %v2733_v55, %v2729_v26  ;;  %v6737_v27 = vmul.f32 0.5, %v1780_v10  ;;  %v6746_v36 = vpop.f32.mrb[120].mxu1  ;;  %v7880_v29 = vld [vmem:[#allocation92_spill] sm:$0xff] }
 0x267   :  { %3400 = vmatprep.mubr.bf16.mxu1 %v2850_v31  ;;  %v2247_v48 = vmul.f32 0.70710677, %v1780_v10  ;;  %v4507_v19 = vpop.eup %4506  ;;  %v6740_v4 = vmul.f32 %v2495_v54, %v6657_v32  ;;  %v2496_v39 = vadd.f32 1.0, %v4505_v62  ;;  %3240 = vmatmul.mubr.bf16.gmra.mrb[136].mxu0 %v2847_v15  ;;  %v6742_v22 = vmul.f32 0.5, %v1973_v58  ;;  %v6753_v46 = vpop.f32.mrb[121].mxu0  ;;  %v7883_v54 = vld [vmem:[#allocation155_spill] sm:$0xff] }
 0x268   :  { %v2249_v1 = vmul.f32 0.70710677, %v1973_v58  ;;  %v6749_v8 = vmul.f32 %v2497_v6, %v6659_v18  ;;  %v2498_v31 = vadd.f32 1.0, %v4507_v19  ;;  %3401 = vmatmul.mubr.bf16.gmra.mrb[136].mxu1 %v2849_v3  ;;  %v6751_v60 = vmul.f32 0.5, %v1782_v25  ;;  %7878 = vst [vmem:[#allocation140_spill] sm:$0xff] %v6753_v46  ;;  %v6755_v32 = vpop.f32.mrb[121].mxu1 }
 0x269   :  { %4516 = verf.f32 %v2247_v48  ;;  %7879 = vst [vmem:[#allocation28_spill] sm:$0xff] %v6755_v32  ;;  %v6758_v26 = vmul.f32 %v2496_v39, %v6661_v2  ;;  %v2248_v21 = vmul.f32 0.70710677, %v1782_v25  ;;  %v1975_v24 = vadd.f32 %v7880_v29, %v6243_v43  ;;  %v6762_v55 = vpop.f32.mrb[122].mxu0  ;;  %v6764_v18 = vpop.f32.mrb[122].mxu1  ;;  %v7884_v58 = vld [vmem:[#allocation156_spill] sm:$0xff] }
 0x26a   :  { %4518 = verf.f32 %v2249_v1  ;;  %7881 = vst [vmem:[#allocation32_spill] sm:$0xff] %v6762_v55  ;;  %7882 = vst [vmem:[#allocation29_spill] sm:$0xff] %v6764_v18  ;;  %v4509_v10 = vpop.eup %4508  ;;  %v6767_v61 = vmul.f32 %v2498_v31, %v6668_v53  ;;  %v1784_v15 = vadd.f32 %v7883_v54, %v6219_v47  ;;  %v1977_v2 = vadd.f32 %v7884_v58, %v6223_v51  ;;  %v7885_v62 = vld [vmem:[#allocation158_spill] sm:$0xff]  ;;  %v6775_v6 = vpop.f32.mrb[123].mxu0  ;;  %v7888_v55 = vld [vmem:[#allocation159_spill] sm:$0xff] }
 0x26b   :  { %v1786_v25 = vadd.f32 %v7885_v62, %v6230_v42  ;;  %7886 = vst [vmem:[#allocation33_spill] sm:$0xff] %v6775_v6  ;;  %v6777_v3 = vpop.f32.mrb[123].mxu1  ;;  %v4511_v48 = vpop.eup %4510  ;;  %v2499_v19 = vadd.f32 1.0, %v4509_v10  ;;  %4520 = verf.f32 %v2248_v21  ;;  %v6779_v39 = vmul.f32 0.5, %v1975_v24 }
 0x26c   :  { %7887 = vst [vmem:[#allocation26_spill] sm:$0xff] %v6777_v3  ;;  %v2250_v53 = vmul.f32 0.70710677, %v1975_v24  ;;  %v4513_v1 = vpop.eup %4512  ;;  %v2501_v31 = vadd.f32 1.0, %v4511_v48  ;;  %v6781_v29 = vmul.f32 0.5, %v1784_v15  ;;  %v6783_v18 = vmul.f32 0.5, %v1977_v2 }
 0x26d   :  { %v2251_v54 = vmul.f32 0.70710677, %v1784_v15  ;;  %v4515_v58 = vpop.eup %4514  ;;  %v6786_v62 = vmul.f32 %v2499_v19, %v6698_v49  ;;  %v2500_v6 = vadd.f32 1.0, %v4513_v1  ;;  %v2253_v3 = vmul.f32 0.70710677, %v1977_v2  ;;  %v7889_v19 = vld [vmem:[#allocation44_spill] sm:$0xff] }
 0x26e   :  { %4522 = verf.f32 %v2250_v53  ;;  %v6789_v10 = vmul.f32 %v2501_v31, %v6700_v37  ;;  %v2502_v21 = vadd.f32 1.0, %v4515_v58  ;;  %v6791_v24 = vmul.f32 0.5, %v1786_v25  ;;  %v7890_v37 = vld [vmem:[#allocation48_spill] sm:$0xff]  ;;  %v7891_v1 = vld [vmem:[#allocation45_spill] sm:$0xff] }
 0x26f   :  { %4524 = verf.f32 %v2251_v54  ;;  %v6794_v48 = vmul.f32 %v2500_v6, %v6705_v38  ;;  %v2252_v15 = vmul.f32 0.70710677, %v1786_v25  ;;  %v1979_v32 = vadd.f32 %v7888_v55, %v6243_v43  ;;  %v7892_v25 = vld [vmem:[#allocation49_spill] sm:$0xff] }
 0x270   :  { %4526 = verf.f32 %v2253_v3  ;;  %v6799_v49 = vmul.f32 %v2502_v21, %v6710_v14  ;;  %v2736_v2 = vadd.f32 %v6590_v12, %v7889_v19  ;;  %v2740_v53 = vadd.f32 %v6624_v50, %v7890_v37  ;;  %v7893_v14 = vld [vmem:[#allocation42_spill] sm:$0xff]  ;;  %v7895_v19 = vld [vmem:[#allocation43_spill] sm:$0xff] }
 0x271   :  { %v2738_v31 = vadd.f32 %v6599_v52, %v7891_v1  ;;  %4528 = verf.f32 %v2252_v15  ;;  %v6807_v38 = vmul.f32 0.5, %v1979_v32  ;;  %v2254_v6 = vmul.f32 0.70710677, %v1979_v32  ;;  %v7894_v21 = vld [vmem:[#allocation46_spill] sm:$0xff]  ;;  %v7896_v1 = vld [vmem:[#allocation47_spill] sm:$0xff] }
 0x272   :  { %v2742_v3 = vadd.f32 %v6629_v13, %v7892_v25  ;;  %v2852_v54 = vpack.c.bf16 %v2740_v53, %v2736_v2  ;;  %v2735_v58 = vadd.f32 %v6558_v5, %v7893_v14  ;;  %v2739_v12 = vadd.f32 %v6604_v59, %v7894_v21  ;;  %v7897_v2 = vld [vmem:[#allocation99_spill] sm:$0xff]  ;;  %v7898_v5 = vld [vmem:[#allocation100_spill] sm:$0xff] }
 0x273   :  { %v4517_v55 = vpop.eup %4516  ;;  %v2737_v50 = vadd.f32 %v6572_v17, %v7895_v19  ;;  %4530 = verf.f32 %v2254_v6  ;;  %v2741_v32 = vadd.f32 %v6609_v33, %v7896_v1  ;;  %v1790_v53 = vadd.f32 %v7897_v2, %v6219_v47  ;;  %v7900_v33 = vld [vmem:[#allocation164_spill] sm:$0xff] }
 0x274   :  { %v4519_v37 = vpop.eup %4518  ;;  %v2503_v52 = vadd.f32 1.0, %v4517_v55  ;;  %v2854_v15 = vpack.c.bf16 %v2742_v3, %v2738_v31  ;;  %3247 = vmatprep.mubr.bf16.mxu0 %v2852_v54  ;;  %v2851_v13 = vpack.c.bf16 %v2739_v12, %v2735_v58  ;;  %v1983_v25 = vadd.f32 %v7898_v5, %v6223_v51  ;;  %v7899_v31 = vld [vmem:[#allocation163_spill] sm:$0xff]  ;;  %v7903_v5 = vld [vmem:[#allocation166_spill] sm:$0xff] }
 0x275   :  { %v2505_v46 = vadd.f32 1.0, %v4519_v37  ;;  %v4521_v59 = vpop.eup %4520  ;;  %v2853_v17 = vpack.c.bf16 %v2741_v32, %v2737_v50  ;;  %v1792_v6 = vadd.f32 %v7899_v31, %v6230_v42  ;;  %v1985_v3 = vadd.f32 %v7900_v33, %v6243_v43  ;;  %v6846_v32 = vpop.f32.mrb[124].mxu1 }
 0x276   :  { %v6824_v14 = vmul.f32 %v2503_v52, %v6737_v27  ;;  %3408 = vmatprep.mubr.bf16.mxu1 %v2854_v15  ;;  %v2504_v54 = vadd.f32 1.0, %v4521_v59  ;;  %3248 = vmatmul.mubr.bf16.gmra.mrb[140].mxu0 %v2851_v13  ;;  %v6833_v58 = vmul.f32 0.5, %v1790_v53  ;;  %v2255_v21 = vmul.f32 0.70710677, %v1790_v53  ;;  %7902 = vst [vmem:[#allocation27_spill] sm:$0xff] %v6846_v32  ;;  %v7915_v32 = vld [vmem:[#allocation53_spill] sm:$0xff] }
 0x277   :  { %v6831_v55 = vmul.f32 %v2505_v46, %v6742_v22  ;;  %3409 = vmatmul.mubr.bf16.gmra.mrb[140].mxu1 %v2853_v17  ;;  %v6835_v27 = vmul.f32 0.5, %v1983_v25  ;;  %v2257_v19 = vmul.f32 0.70710677, %v1983_v25  ;;  %v6837_v50 = vmul.f32 0.5, %v1792_v6  ;;  %v6844_v46 = vpop.f32.mrb[124].mxu0  ;;  %v6852_v17 = vpop.f32.mrb[125].mxu1 }
 0x278   :  { %v4523_v12 = vpop.eup %4522  ;;  %v2256_v37 = vmul.f32 0.70710677, %v1792_v6  ;;  %v6840_v15 = vmul.f32 %v2504_v54, %v6751_v60  ;;  %4532 = verf.f32 %v2255_v21  ;;  %v6842_v22 = vmul.f32 0.5, %v1985_v3  ;;  %7901 = vst [vmem:[#allocation30_spill] sm:$0xff] %v6844_v46  ;;  %v6850_v59 = vpop.f32.mrb[125].mxu0  ;;  %7905 = vst [vmem:[#allocation145_spill] sm:$0xff] %v6852_v17 }
 0x279   :  { %v4525_v52 = vpop.eup %4524  ;;  %v2506_v1 = vadd.f32 1.0, %v4523_v12  ;;  %4534 = verf.f32 %v2257_v19  ;;  %v2258_v53 = vmul.f32 0.70710677, %v1985_v3  ;;  %v1794_v25 = vadd.f32 %v7903_v5, %v6219_v47  ;;  %7904 = vst [vmem:[#allocation31_spill] sm:$0xff] %v6850_v59  ;;  %v7906_v6 = vld [vmem:[#allocation167_spill] sm:$0xff]  ;;  %v6859_v54 = vpop.f32.mrb[126].mxu0 }
 0x27a   :  { %v4527_v13 = vpop.eup %4526  ;;  %v2507_v2 = vadd.f32 1.0, %v4525_v52  ;;  %4536 = verf.f32 %v2256_v37  ;;  %v1987_v33 = vadd.f32 %v7906_v6, %v6223_v51  ;;  %7907 = vst [vmem:[#allocation90_spill] sm:$0xff] %v6859_v54  ;;  %v6861_v21 = vpop.f32.mrb[126].mxu1  ;;  %v7936_v46 = vld [vmem:[#allocation63_spill] sm:$0xff] }
 0x27b   :  { %v6855_v60 = vmul.f32 %v2506_v1, %v6779_v39  ;;  %v2509_v31 = vadd.f32 1.0, %v4527_v13  ;;  %7908 = vst [vmem:[#allocation147_spill] sm:$0xff] %v6861_v21  ;;  %v4529_v3 = vpop.eup %4528  ;;  %4538 = verf.f32 %v2258_v53  ;;  %v6866_v19 = vmul.f32 0.5, %v1794_v25  ;;  %v6868_v5 = vpop.f32.mrb[127].mxu0  ;;  %v7912_v53 = vld [vmem:[#allocation169_spill] sm:$0xff] }
 0x27c   :  { %v6864_v12 = vmul.f32 %v2507_v2, %v6781_v29  ;;  %v2259_v52 = vmul.f32 0.70710677, %v1794_v25  ;;  %7909 = vst [vmem:[#allocation148_spill] sm:$0xff] %v6868_v5  ;;  %v6870_v39 = vpop.f32.mrb[127].mxu1  ;;  %v2508_v1 = vadd.f32 1.0, %v4529_v3  ;;  %v6875_v13 = vmul.f32 0.5, %v1987_v33 }
 0x27d   :  { %7910 = vst [vmem:[#allocation149_spill] sm:$0xff] %v6870_v39  ;;  %v6873_v37 = vmul.f32 %v2509_v31, %v6783_v18  ;;  %v2261_v6 = vmul.f32 0.70710677, %v1987_v33  ;;  %v4531_v21 = vpop.eup %4530  ;;  %v7911_v29 = vld [vmem:[#allocation168_spill] sm:$0xff]  ;;  %v1989_v54 = vadd.f32 %v7912_v53, %v6243_v43 }
 0x27e   :  { %4540 = verf.f32 %v2259_v52  ;;  %v1796_v2 = vadd.f32 %v7911_v29, %v6230_v42  ;;  %v7913_v25 = vld [vmem:[#allocation52_spill] sm:$0xff]  ;;  %v6884_v39 = vmul.f32 %v2508_v1, %v6791_v24  ;;  %v2510_v18 = vadd.f32 1.0, %v4531_v21  ;;  %v7916_v24 = vld [vmem:[#allocation57_spill] sm:$0xff]  ;;  %v7917_v1 = vld [vmem:[#allocation50_spill] sm:$0xff] }
 0x27f   :  { %v2744_v5 = vadd.f32 %v6666_v23, %v7913_v25  ;;  %4542 = verf.f32 %v2261_v6  ;;  %v7914_v31 = vld [vmem:[#allocation56_spill] sm:$0xff]  ;;  %v6890_v17 = vmul.f32 0.5, %v1989_v54  ;;  %v2262_v29 = vmul.f32 0.70710677, %v1989_v54  ;;  %v7918_v6 = vld [vmem:[#allocation54_spill] sm:$0xff]  ;;  %v7919_v25 = vld [vmem:[#allocation51_spill] sm:$0xff] }
 0x280   :  { %v2748_v3 = vadd.f32 %v6708_v41, %v7914_v31  ;;  %v6888_v33 = vmul.f32 0.5, %v1796_v2  ;;  %v2260_v52 = vmul.f32 0.70710677, %v1796_v2  ;;  %v6893_v59 = vmul.f32 %v2510_v18, %v6807_v38 }
 0x281   :  { %v2746_v23 = vadd.f32 %v6675_v35, %v7915_v32  ;;  %v2750_v21 = vadd.f32 %v6713_v57, %v7916_v24  ;;  %v2743_v41 = vadd.f32 %v6648_v34, %v7917_v1  ;;  %v2747_v2 = vadd.f32 %v6692_v56, %v7918_v6  ;;  %v7921_v32 = vld [vmem:[#allocation172_spill] sm:$0xff]  ;;  %v7922_v34 = vld [vmem:[#allocation173_spill] sm:$0xff] }
 0x282   :  { %v2856_v53 = vpack.c.bf16 %v2748_v3, %v2744_v5  ;;  %4544 = verf.f32 %v2260_v52  ;;  %v2745_v54 = vadd.f32 %v6655_v63, %v7919_v25  ;;  %v4533_v31 = vpop.eup %4532  ;;  %v7920_v5 = vld [vmem:[#allocation55_spill] sm:$0xff]  ;;  %v1800_v57 = vadd.f32 %v7921_v32, %v6219_v47  ;;  %v7923_v56 = vld [vmem:[#allocation177_spill] sm:$0xff]  ;;  %v7924_v32 = vld [vmem:[#allocation178_spill] sm:$0xff] }
 0x283   :  { %4546 = verf.f32 %v2262_v29  ;;  %v2858_v38 = vpack.c.bf16 %v2750_v21, %v2746_v23  ;;  %v2749_v35 = vadd.f32 %v6703_v9, %v7920_v5  ;;  %v4535_v18 = vpop.eup %4534  ;;  %v2511_v3 = vadd.f32 1.0, %v4533_v31 }
 0x284   :  { %3255 = vmatprep.mubr.bf16.mxu0 %v2856_v53  ;;  %v2855_v52 = vpack.c.bf16 %v2747_v2, %v2743_v41  ;;  %v1993_v24 = vadd.f32 %v7922_v34, %v6223_v51  ;;  %v1802_v1 = vadd.f32 %v7923_v56, %v6230_v42  ;;  %v4537_v63 = vpop.eup %4536  ;;  %v2513_v6 = vadd.f32 1.0, %v4535_v18 }
 0x285   :  { %3416 = vmatprep.mubr.bf16.mxu1 %v2858_v38  ;;  %v2857_v29 = vpack.c.bf16 %v2749_v35, %v2745_v54  ;;  %v6913_v53 = vmul.f32 0.5, %v1800_v57  ;;  %v2263_v23 = vmul.f32 0.70710677, %v1800_v57  ;;  %v4539_v9 = vpop.eup %4538  ;;  %v6916_v21 = vmul.f32 %v2511_v3, %v6833_v58 }
 0x286   :  { %v2512_v25 = vadd.f32 1.0, %v4537_v63  ;;  %3256 = vmatmul.mubr.bf16.gmra.mrb[144].mxu0 %v2855_v52  ;;  %v6918_v41 = vmul.f32 0.5, %v1993_v24  ;;  %v2265_v2 = vmul.f32 0.70710677, %v1993_v24  ;;  %v6921_v31 = vmul.f32 %v2513_v6, %v6835_v27  ;;  %v7925_v52 = vld [vmem:[#allocation180_spill] sm:$0xff]  ;;  %v7926_v24 = vld [vmem:[#allocation181_spill] sm:$0xff] }
 0x287   :  { %v2514_v5 = vadd.f32 1.0, %v4539_v9  ;;  %3417 = vmatmul.mubr.bf16.gmra.mrb[144].mxu1 %v2857_v29  ;;  %4548 = verf.f32 %v2263_v23  ;;  %v6923_v38 = vmul.f32 0.5, %v1802_v1  ;;  %v2264_v58 = vmul.f32 0.70710677, %v1802_v1 }
 0x288   :  { %v4541_v54 = vpop.eup %4540  ;;  %v6926_v35 = vmul.f32 %v2512_v25, %v6837_v50  ;;  %4550 = verf.f32 %v2265_v2  ;;  %v1995_v57 = vadd.f32 %v7924_v32, %v6243_v43  ;;  %v1804_v34 = vadd.f32 %v7925_v52, %v6219_v47 }
 0x289   :  { %v4543_v18 = vpop.eup %4542  ;;  %v6931_v3 = vmul.f32 %v2514_v5, %v6842_v22  ;;  %v2515_v27 = vadd.f32 1.0, %v4541_v54  ;;  %v1997_v56 = vadd.f32 %v7926_v24, %v6223_v51  ;;  %4552 = verf.f32 %v2264_v58  ;;  %v7927_v5 = vld [vmem:[#allocation182_spill] sm:$0xff] }
 0x28a   :  { %v2517_v63 = vadd.f32 1.0, %v4543_v18  ;;  %v6937_v50 = vmul.f32 0.5, %v1995_v57  ;;  %v2266_v6 = vmul.f32 0.70710677, %v1995_v57  ;;  %v6942_v29 = vmul.f32 0.5, %v1804_v34  ;;  %v7929_v18 = vld [vmem:[#allocation60_spill] sm:$0xff] }
 0x28b   :  { %v6940_v1 = vmul.f32 %v2515_v27, %v6866_v19  ;;  %v2267_v23 = vmul.f32 0.70710677, %v1804_v34  ;;  %v6944_v22 = vmul.f32 0.5, %v1997_v56  ;;  %v2269_v2 = vmul.f32 0.70710677, %v1997_v56  ;;  %v7928_v19 = vld [vmem:[#allocation183_spill] sm:$0xff] }
 0x28c   :  { %v4545_v9 = vpop.eup %4544  ;;  %v6947_v25 = vmul.f32 %v2517_v63, %v6875_v13  ;;  %4554 = verf.f32 %v2266_v6  ;;  %v1806_v54 = vadd.f32 %v7927_v5, %v6230_v42  ;;  %v1999_v57 = vadd.f32 %v7928_v19, %v6243_v43  ;;  %v7930_v6 = vld [vmem:[#allocation64_spill] sm:$0xff]  ;;  %v7931_v5 = vld [vmem:[#allocation61_spill] sm:$0xff] }
 0x28d   :  { %v4547_v58 = vpop.eup %4546  ;;  %v2516_v32 = vadd.f32 1.0, %v4545_v9  ;;  %4556 = verf.f32 %v2267_v23  ;;  %v2752_v27 = vadd.f32 %v6758_v26, %v7929_v18  ;;  %v2756_v23 = vadd.f32 %v6794_v48, %v7930_v6 }
 0x28e   :  { %v2518_v52 = vadd.f32 1.0, %v4547_v58  ;;  %4558 = verf.f32 %v2269_v2  ;;  %v6955_v34 = vmul.f32 0.5, %v1806_v54  ;;  %v2268_v13 = vmul.f32 0.70710677, %v1806_v54  ;;  %v7932_v2 = vld [vmem:[#allocation65_spill] sm:$0xff] }
 0x28f   :  { %v6958_v24 = vmul.f32 %v2516_v32, %v6888_v33  ;;  %v6960_v56 = vmul.f32 0.5, %v1999_v57  ;;  %v2270_v63 = vmul.f32 0.70710677, %v1999_v57  ;;  %v2754_v26 = vadd.f32 %v6767_v61, %v7931_v5  ;;  %v7933_v32 = vld [vmem:[#allocation58_spill] sm:$0xff] }
 0x290   :  { %v6965_v9 = vmul.f32 %v2518_v52, %v6890_v17  ;;  %4560 = verf.f32 %v2268_v13  ;;  %v2758_v58 = vadd.f32 %v6799_v49, %v7932_v2  ;;  %v2860_v33 = vpack.c.bf16 %v2756_v23, %v2752_v27  ;;  %v7934_v57 = vld [vmem:[#allocation62_spill] sm:$0xff]  ;;  %v7935_v52 = vld [vmem:[#allocation59_spill] sm:$0xff] }
 0x291   :  { %v4549_v54 = vpop.eup %4548  ;;  %4562 = verf.f32 %v2270_v63  ;;  %v2751_v19 = vadd.f32 %v6740_v4, %v7933_v32  ;;  %v2755_v18 = vadd.f32 %v6786_v62, %v7934_v57  ;;  %v2753_v13 = vadd.f32 %v6749_v8, %v7935_v52  ;;  %v7937_v27 = vld [vmem:[#allocation186_spill] sm:$0xff]  ;;  %v7938_v4 = vld [vmem:[#allocation187_spill] sm:$0xff]  ;;  %v7939_v8 = vld [vmem:[#allocation188_spill] sm:$0xff] }
 0x292   :  { %v4551_v48 = vpop.eup %4550  ;;  %v2519_v6 = vadd.f32 1.0, %v4549_v54  ;;  %v2862_v17 = vpack.c.bf16 %v2758_v58, %v2754_v26  ;;  %v2757_v61 = vadd.f32 %v6789_v10, %v7936_v46  ;;  %3263 = vmatprep.mubr.bf16.mxu0 %v2860_v33  ;;  %v1810_v63 = vadd.f32 %v7937_v27, %v6219_v47  ;;  %v7940_v10 = vld [vmem:[#allocation189_spill] sm:$0xff]  ;;  %v7941_v27 = vld [vmem:[#allocation192_spill] sm:$0xff] }
 0x293   :  { %v2521_v5 = vadd.f32 1.0, %v4551_v48  ;;  %v2859_v49 = vpack.c.bf16 %v2755_v18, %v2751_v19  ;;  %v2003_v23 = vadd.f32 %v7938_v4, %v6223_v51  ;;  %v4553_v2 = vpop.eup %4552  ;;  %v1812_v58 = vadd.f32 %v7939_v8, %v6230_v42 }
 0x294   :  { %v6984_v62 = vmul.f32 %v2519_v6, %v6913_v53  ;;  %3424 = vmatprep.mubr.bf16.mxu1 %v2862_v17  ;;  %v2861_v26 = vpack.c.bf16 %v2757_v61, %v2753_v13  ;;  %v2005_v46 = vadd.f32 %v7940_v10, %v6243_v43  ;;  %v2520_v33 = vadd.f32 1.0, %v4553_v2  ;;  %v7942_v2 = vld [vmem:[#allocation193_spill] sm:$0xff] }
 0x295   :  { %v6991_v54 = vmul.f32 %v2521_v5, %v6918_v41  ;;  %3264 = vmatmul.mubr.bf16.gmra.mrb[148].mxu0 %v2859_v49  ;;  %v6993_v32 = vmul.f32 0.5, %v1810_v63  ;;  %v2271_v19 = vmul.f32 0.70710677, %v1810_v63  ;;  %v6995_v53 = vmul.f32 0.5, %v2003_v23 }
 0x296   :  { %v4555_v57 = vpop.eup %4554  ;;  %3425 = vmatmul.mubr.bf16.gmra.mrb[148].mxu1 %v2861_v26  ;;  %v2273_v18 = vmul.f32 0.70710677, %v2003_v23  ;;  %v6997_v48 = vmul.f32 0.5, %v1812_v58  ;;  %v2272_v6 = vmul.f32 0.70710677, %v1812_v58  ;;  %v7000_v52 = vmul.f32 %v2520_v33, %v6923_v38 }
 0x297   :  { %v4557_v17 = vpop.eup %4556  ;;  %v2522_v13 = vadd.f32 1.0, %v4555_v57  ;;  %4564 = verf.f32 %v2271_v19  ;;  %v7002_v41 = vmul.f32 0.5, %v2005_v46  ;;  %v2274_v49 = vmul.f32 0.70710677, %v2005_v46 }
 0x298   :  { %v4559_v61 = vpop.eup %4558  ;;  %v2523_v5 = vadd.f32 1.0, %v4557_v17  ;;  %4566 = verf.f32 %v2273_v18  ;;  %v1814_v63 = vadd.f32 %v7941_v27, %v6219_v47  ;;  %v2007_v38 = vadd.f32 %v7942_v2, %v6223_v51 }
 0x299   :  { %v7007_v4 = vmul.f32 %v2522_v13, %v6937_v50  ;;  %v2525_v23 = vadd.f32 1.0, %v4559_v61  ;;  %4568 = verf.f32 %v2272_v6  ;;  %v7943_v6 = vld [vmem:[#allocation195_spill] sm:$0xff] }
 0x29a   :  { %v4561_v26 = vpop.eup %4560  ;;  %v7012_v8 = vmul.f32 %v2523_v5, %v6942_v29  ;;  %4570 = verf.f32 %v2274_v49  ;;  %v7014_v58 = vmul.f32 0.5, %v1814_v63  ;;  %v2275_v10 = vmul.f32 0.70710677, %v1814_v63  ;;  %v7944_v29 = vld [vmem:[#allocation196_spill] sm:$0xff]  ;;  %v7946_v49 = vld [vmem:[#allocation74_spill] sm:$0xff] }
 0x29b   :  { %v4563_v46 = vpop.eup %4562  ;;  %v7017_v33 = vmul.f32 %v2525_v23, %v6944_v22  ;;  %v2524_v19 = vadd.f32 1.0, %v4561_v26  ;;  %v7019_v50 = vmul.f32 0.5, %v2007_v38  ;;  %v2277_v57 = vmul.f32 0.70710677, %v2007_v38  ;;  %v7945_v5 = vld [vmem:[#allocation68_spill] sm:$0xff] }
 0x29c   :  { %v2526_v18 = vadd.f32 1.0, %v4563_v46  ;;  %4572 = verf.f32 %v2275_v10  ;;  %v1816_v17 = vadd.f32 %v7943_v6, %v6230_v42  ;;  %v2009_v13 = vadd.f32 %v7944_v29, %v6243_v43  ;;  %v7947_v46 = vld [vmem:[#allocation69_spill] sm:$0xff]  ;;  %v7950_v6 = vld [vmem:[#allocation71_spill] sm:$0xff] }
 0x29d   :  { %v7026_v61 = vmul.f32 %v2524_v19, %v6955_v34  ;;  %4574 = verf.f32 %v2277_v57  ;;  %v2760_v22 = vadd.f32 %v6840_v15, %v7945_v5  ;;  %v2764_v27 = vadd.f32 %v6884_v39, %v7946_v49  ;;  %v7948_v19 = vld [vmem:[#allocation75_spill] sm:$0xff]  ;;  %v7949_v15 = vld [vmem:[#allocation66_spill] sm:$0xff]  ;;  %v7952_v5 = vld [vmem:[#allocation72_spill] sm:$0xff] }
 0x29e   :  { %v7033_v63 = vmul.f32 %v2526_v18, %v6960_v56  ;;  %v7035_v23 = vmul.f32 0.5, %v1816_v17  ;;  %v2276_v2 = vmul.f32 0.70710677, %v1816_v17  ;;  %v7037_v38 = vmul.f32 0.5, %v2009_v13  ;;  %v7951_v18 = vld [vmem:[#allocation67_spill] sm:$0xff] }
 0x29f   :  { %v2278_v26 = vmul.f32 0.70710677, %v2009_v13  ;;  %v2864_v10 = vpack.c.bf16 %v2764_v27, %v2760_v22  ;;  %v2762_v34 = vadd.f32 %v6855_v60, %v7947_v46  ;;  %v2766_v57 = vadd.f32 %v6893_v59, %v7948_v19  ;;  %v7953_v22 = vld [vmem:[#allocation114_spill] sm:$0xff] }
 0x2a0   :  { %4576 = verf.f32 %v2276_v2  ;;  %v2759_v39 = vadd.f32 %v6824_v14, %v7949_v15  ;;  %v2763_v56 = vadd.f32 %v6864_v12, %v7950_v6  ;;  %v2761_v17 = vadd.f32 %v6831_v55, %v7951_v18  ;;  %v7954_v14 = vld [vmem:[#allocation116_spill] sm:$0xff]  ;;  %v7955_v12 = vld [vmem:[#allocation18_spill] sm:$0xff] }
 0x2a1   :  { %v4565_v29 = vpop.eup %4564  ;;  %4578 = verf.f32 %v2278_v26  ;;  %3271 = vmatprep.mubr.bf16.mxu0 %v2864_v10  ;;  %v2866_v13 = vpack.c.bf16 %v2766_v57, %v2762_v34  ;;  %v2765_v60 = vadd.f32 %v6873_v37, %v7952_v5  ;;  %v1820_v59 = vadd.f32 %v7953_v22, %v6219_v47 }
 0x2a2   :  { %v4567_v49 = vpop.eup %4566  ;;  %v2527_v27 = vadd.f32 1.0, %v4565_v29  ;;  %v2863_v2 = vpack.c.bf16 %v2763_v56, %v2759_v39  ;;  %v2013_v46 = vadd.f32 %v7954_v14, %v6223_v51  ;;  %v1822_v19 = vadd.f32 %v7955_v12, %v6230_v42  ;;  %v7958_v14 = vld [vmem:[#allocation118_spill] sm:$0xff] }
 0x2a3   :  { %v4569_v55 = vpop.eup %4568  ;;  %v2529_v15 = vadd.f32 1.0, %v4567_v49  ;;  %3432 = vmatprep.mubr.bf16.mxu1 %v2866_v13  ;;  %v2865_v26 = vpack.c.bf16 %v2765_v60, %v2761_v17  ;;  %v7057_v10 = vmul.f32 0.5, %v1820_v59  ;;  %v2279_v34 = vmul.f32 0.70710677, %v1820_v59  ;;  %v7956_v60 = vld [vmem:[#allocation19_spill] sm:$0xff] }
 0x2a4   :  { %v4571_v37 = vpop.eup %4570  ;;  %v7060_v57 = vmul.f32 %v2527_v27, %v6993_v32  ;;  %v2528_v6 = vadd.f32 1.0, %v4569_v55  ;;  %3272 = vmatmul.mubr.bf16.gmra.mrb[152].mxu0 %v2863_v2  ;;  %v7062_v39 = vmul.f32 0.5, %v2013_v46  ;;  %v2281_v56 = vmul.f32 0.70710677, %v2013_v46  ;;  %v7957_v27 = vld [vmem:[#allocation117_spill] sm:$0xff] }
 0x2a5   :  { %v7065_v18 = vmul.f32 %v2529_v15, %v6995_v53  ;;  %v2530_v29 = vadd.f32 1.0, %v4571_v37  ;;  %3433 = vmatmul.mubr.bf16.gmra.mrb[152].mxu1 %v2865_v26  ;;  %4580 = verf.f32 %v2279_v34  ;;  %v7067_v13 = vmul.f32 0.5, %v1822_v19 }
 0x2a6   :  { %v4573_v17 = vpop.eup %4572  ;;  %v7070_v5 = vmul.f32 %v2528_v6, %v6997_v48  ;;  %4582 = verf.f32 %v2281_v56  ;;  %v2280_v32 = vmul.f32 0.70710677, %v1822_v19  ;;  %v2015_v22 = vadd.f32 %v7956_v60, %v6243_v43  ;;  %v7959_v56 = vld [vmem:[#allocation22_spill] sm:$0xff] }
 0x2a7   :  { %v4575_v59 = vpop.eup %4574  ;;  %v7075_v49 = vmul.f32 %v2530_v29, %v7002_v41  ;;  %v2531_v53 = vadd.f32 1.0, %v4573_v17  ;;  %v1824_v2 = vadd.f32 %v7957_v27, %v6219_v47  ;;  %v2017_v46 = vadd.f32 %v7958_v14, %v6223_v51 }
 0x2a8   :  { %v2533_v12 = vadd.f32 1.0, %v4575_v59  ;;  %4584 = verf.f32 %v2280_v32  ;;  %v7081_v48 = vmul.f32 0.5, %v2015_v22  ;;  %v2282_v55 = vmul.f32 0.70710677, %v2015_v22  ;;  %v7961_v22 = vld [vmem:[#allocation80_spill] sm:$0xff] }
 0x2a9   :  { %v7084_v19 = vmul.f32 %v2531_v53, %v7014_v58  ;;  %v7086_v15 = vmul.f32 0.5, %v1824_v2  ;;  %v2283_v26 = vmul.f32 0.70710677, %v1824_v2  ;;  %v7088_v41 = vmul.f32 0.5, %v2017_v46  ;;  %v7960_v58 = vld [vmem:[#allocation23_spill] sm:$0xff] }
 0x2aa   :  { %v4577_v34 = vpop.eup %4576  ;;  %v7091_v37 = vmul.f32 %v2533_v12, %v7019_v50  ;;  %4586 = verf.f32 %v2282_v55  ;;  %v2285_v6 = vmul.f32 0.70710677, %v2017_v46  ;;  %v1826_v29 = vadd.f32 %v7959_v56, %v6230_v42  ;;  %v7962_v12 = vld [vmem:[#allocation86_spill] sm:$0xff] }
 0x2ab   :  { %v4579_v17 = vpop.eup %4578  ;;  %v2532_v32 = vadd.f32 1.0, %v4577_v34  ;;  %4588 = verf.f32 %v2283_v26  ;;  %v2019_v60 = vadd.f32 %v7960_v58, %v6243_v43  ;;  %v2768_v59 = vadd.f32 %v6926_v35, %v7961_v22  ;;  %v7963_v34 = vld [vmem:[#allocation81_spill] sm:$0xff]  ;;  %v7966_v58 = vld [vmem:[#allocation82_spill] sm:$0xff] }
 0x2ac   :  { %v2534_v53 = vadd.f32 1.0, %v4579_v17  ;;  %4590 = verf.f32 %v2285_v6  ;;  %v7099_v27 = vmul.f32 0.5, %v1826_v29  ;;  %v2284_v50 = vmul.f32 0.70710677, %v1826_v29  ;;  %v7964_v6 = vld [vmem:[#allocation87_spill] sm:$0xff]  ;;  %v7965_v17 = vld [vmem:[#allocation78_spill] sm:$0xff] }
 0x2ad   :  { %v7102_v2 = vmul.f32 %v2532_v32, %v7035_v23  ;;  %v7104_v14 = vmul.f32 0.5, %v2019_v60  ;;  %v2286_v46 = vmul.f32 0.70710677, %v2019_v60  ;;  %v2772_v55 = vadd.f32 %v6958_v24, %v7962_v12  ;;  %v7968_v12 = vld [vmem:[#allocation85_spill] sm:$0xff] }
 0x2ae   :  { %v7109_v26 = vmul.f32 %v2534_v53, %v7037_v38  ;;  %4592 = verf.f32 %v2284_v50  ;;  %v2770_v35 = vadd.f32 %v6931_v3, %v7963_v34  ;;  %v2774_v56 = vadd.f32 %v6965_v9, %v7964_v6  ;;  %v7967_v53 = vld [vmem:[#allocation79_spill] sm:$0xff] }
 0x2af   :  { %v4581_v29 = vpop.eup %4580  ;;  %4594 = verf.f32 %v2286_v46  ;;  %v2868_v23 = vpack.c.bf16 %v2772_v55, %v2768_v59  ;;  %v2767_v32 = vadd.f32 %v6916_v21, %v7965_v17  ;;  %v2771_v60 = vadd.f32 %v6940_v1, %v7966_v58  ;;  %v7969_v59 = vld [vmem:[#allocation121_spill] sm:$0xff]  ;;  %v7970_v21 = vld [vmem:[#allocation123_spill] sm:$0xff] }
 0x2b0   :  { %v4583_v24 = vpop.eup %4582  ;;  %v2535_v22 = vadd.f32 1.0, %v4581_v29  ;;  %v2870_v38 = vpack.c.bf16 %v2774_v56, %v2770_v35  ;;  %v2769_v50 = vadd.f32 %v6921_v31, %v7967_v53  ;;  %v2773_v3 = vadd.f32 %v6947_v25, %v7968_v12  ;;  %v7971_v31 = vld [vmem:[#allocation124_spill] sm:$0xff]  ;;  %v7972_v25 = vld [vmem:[#allocation125_spill] sm:$0xff] }
 0x2b1   :  { %v2537_v34 = vadd.f32 1.0, %v4583_v24  ;;  %3279 = vmatprep.mubr.bf16.mxu0 %v2868_v23  ;;  %v2867_v9 = vpack.c.bf16 %v2771_v60, %v2767_v32  ;;  %v1830_v46 = vadd.f32 %v7969_v59, %v6219_v47  ;;  %v2023_v55 = vadd.f32 %v7970_v21, %v6223_v51  ;;  %v7973_v59 = vld [vmem:[#allocation126_spill] sm:$0xff] }
 0x2b2   :  { %v4585_v6 = vpop.eup %4584  ;;  %v7128_v1 = vmul.f32 %v2535_v22, %v7057_v10  ;;  %3440 = vmatprep.mubr.bf16.mxu1 %v2870_v38  ;;  %v2869_v35 = vpack.c.bf16 %v2773_v3, %v2769_v50  ;;  %v1832_v56 = vadd.f32 %v7971_v31, %v6230_v42  ;;  %v2025_v29 = vadd.f32 %v7972_v25, %v6243_v43 }
 0x2b3   :  { %v7135_v23 = vmul.f32 %v2537_v34, %v7062_v39  ;;  %v2536_v17 = vadd.f32 1.0, %v4585_v6  ;;  %3280 = vmatmul.mubr.bf16.gmra.mrb[156].mxu0 %v2867_v9  ;;  %v7137_v32 = vmul.f32 0.5, %v1830_v46  ;;  %v2287_v58 = vmul.f32 0.70710677, %v1830_v46  ;;  %v7974_v6 = vld [vmem:[#allocation77_spill] sm:$0xff] }
 0x2b4   :  { %v4587_v60 = vpop.eup %4586  ;;  %3441 = vmatmul.mubr.bf16.gmra.mrb[156].mxu1 %v2869_v35  ;;  %v7139_v10 = vmul.f32 0.5, %v2023_v55  ;;  %v2289_v24 = vmul.f32 0.70710677, %v2023_v55  ;;  %v7141_v22 = vmul.f32 0.5, %v1832_v56  ;;  %v2288_v38 = vmul.f32 0.70710677, %v1832_v56 }
 0x2b5   :  { %v4589_v53 = vpop.eup %4588  ;;  %v7144_v50 = vmul.f32 %v2536_v17, %v7067_v13  ;;  %v2538_v12 = vadd.f32 1.0, %v4587_v60  ;;  %4596 = verf.f32 %v2287_v58  ;;  %v7146_v39 = vmul.f32 0.5, %v2025_v29 }
 0x2b6   :  { %v4591_v3 = vpop.eup %4590  ;;  %v2539_v34 = vadd.f32 1.0, %v4589_v53  ;;  %4598 = verf.f32 %v2289_v24  ;;  %v2290_v9 = vmul.f32 0.70710677, %v2025_v29  ;;  %v1834_v46 = vadd.f32 %v7973_v59, %v6219_v47 }
 0x2b7   :  { %v7151_v21 = vmul.f32 %v2538_v12, %v7081_v48  ;;  %v2541_v55 = vadd.f32 1.0, %v4591_v3  ;;  %4600 = verf.f32 %v2288_v38  ;;  %v2027_v13 = vadd.f32 %v7974_v6, %v6223_v51  ;;  %v7975_v38 = vld [vmem:[#allocation131_spill] sm:$0xff] }
 0x2b8   :  { %v4593_v35 = vpop.eup %4592  ;;  %v7156_v31 = vmul.f32 %v2539_v34, %v7086_v15  ;;  %4602 = verf.f32 %v2290_v9  ;;  %v7158_v56 = vmul.f32 0.5, %v1834_v46  ;;  %v2291_v25 = vmul.f32 0.70710677, %v1834_v46  ;;  %v7976_v15 = vld [vmem:[#allocation132_spill] sm:$0xff]  ;;  %v7977_v34 = vld [vmem:[#allocation91_spill] sm:$0xff] }
 0x2b9   :  { %v4595_v29 = vpop.eup %4594  ;;  %v7161_v17 = vmul.f32 %v2541_v55, %v7088_v41  ;;  %v2540_v58 = vadd.f32 1.0, %v4593_v35  ;;  %v7163_v48 = vmul.f32 0.5, %v2027_v13  ;;  %v2293_v60 = vmul.f32 0.70710677, %v2027_v13  ;;  %v7978_v9 = vld [vmem:[#allocation96_spill] sm:$0xff] }
 0x2ba   :  { %v2542_v24 = vadd.f32 1.0, %v4595_v29  ;;  %4604 = verf.f32 %v2291_v25  ;;  %v1836_v53 = vadd.f32 %v7975_v38, %v6230_v42  ;;  %v2029_v12 = vadd.f32 %v7976_v15, %v6243_v43  ;;  %v7979_v29 = vld [vmem:[#allocation93_spill] sm:$0xff]  ;;  %v7982_v38 = vld [vmem:[#allocation94_spill] sm:$0xff] }
 0x2bb   :  { %v7170_v3 = vmul.f32 %v2540_v58, %v7099_v27  ;;  %4606 = verf.f32 %v2293_v60  ;;  %v2776_v41 = vadd.f32 %v7000_v52, %v7977_v34  ;;  %v2780_v59 = vadd.f32 %v7026_v61, %v7978_v9  ;;  %v7980_v58 = vld [vmem:[#allocation97_spill] sm:$0xff]  ;;  %v7981_v52 = vld [vmem:[#allocation88_spill] sm:$0xff]  ;;  %v7984_v34 = vld [vmem:[#allocation95_spill] sm:$0xff] }
 0x2bc   :  { %v7177_v46 = vmul.f32 %v2542_v24, %v7104_v14  ;;  %v7179_v55 = vmul.f32 0.5, %v1836_v53  ;;  %v2292_v6 = vmul.f32 0.70710677, %v1836_v53  ;;  %v7181_v13 = vmul.f32 0.5, %v2029_v12  ;;  %v7983_v24 = vld [vmem:[#allocation89_spill] sm:$0xff] }
 0x2bd   :  { %v2294_v35 = vmul.f32 0.70710677, %v2029_v12  ;;  %v2872_v25 = vpack.c.bf16 %v2780_v59, %v2776_v41  ;;  %v2778_v27 = vadd.f32 %v7007_v4, %v7979_v29  ;;  %v2782_v60 = vadd.f32 %v7033_v63, %v7980_v58 }
 0x2be   :  { %4608 = verf.f32 %v2292_v6  ;;  %v2775_v61 = vadd.f32 %v6984_v62, %v7981_v52  ;;  %v2779_v14 = vadd.f32 %v7012_v8, %v7982_v38  ;;  %v2777_v53 = vadd.f32 %v6991_v54, %v7983_v24 }
 0x2bf   :  { %v4597_v15 = vpop.eup %4596  ;;  %4610 = verf.f32 %v2294_v35  ;;  %3287 = vmatprep.mubr.bf16.mxu0 %v2872_v25  ;;  %v2874_v12 = vpack.c.bf16 %v2782_v60, %v2778_v27  ;;  %v2781_v4 = vadd.f32 %v7017_v33, %v7984_v34  ;;  %v1840_v63 = vadd.f32 %v6567_v40, %v6219_v47 }
 0x2c0   :  { %v4599_v41 = vpop.eup %4598  ;;  %v2543_v9 = vadd.f32 1.0, %v4597_v15  ;;  %v2871_v59 = vpack.c.bf16 %v2779_v14, %v2775_v61  ;;  %v2033_v62 = vadd.f32 %v6569_v0, %v6223_v51  ;;  %v1842_v8 = vadd.f32 %v6579_v44, %v6230_v42 }
 0x2c1   :  { %v4601_v54 = vpop.eup %4600  ;;  %v2545_v6 = vadd.f32 1.0, %v4599_v41  ;;  %3448 = vmatprep.mubr.bf16.mxu1 %v2874_v12  ;;  %v2873_v35 = vpack.c.bf16 %v2781_v4, %v2777_v53  ;;  %v7201_v25 = vmul.f32 0.5, %v1840_v63  ;;  %v2295_v29 = vmul.f32 0.70710677, %v1840_v63  ;;  %v7985_v12 = vld [vmem:[#allocation20_spill] sm:$0xff] }
 0x2c2   :  { %v4603_v33 = vpop.eup %4602  ;;  %v7204_v27 = vmul.f32 %v2543_v9, %v7137_v32  ;;  %v2544_v40 = vadd.f32 1.0, %v4601_v54  ;;  %3288 = vmatmul.mubr.bf16.gmra.mrb[160].mxu0 %v2871_v59  ;;  %v7206_v58 = vmul.f32 0.5, %v2033_v62  ;;  %v2297_v60 = vmul.f32 0.70710677, %v2033_v62 }
 0x2c3   :  { %v7209_v0 = vmul.f32 %v2545_v6, %v7139_v10  ;;  %v2546_v44 = vadd.f32 1.0, %v4603_v33  ;;  %3449 = vmatmul.mubr.bf16.gmra.mrb[160].mxu1 %v2873_v35  ;;  %4612 = verf.f32 %v2295_v29  ;;  %v7211_v52 = vmul.f32 0.5, %v1842_v8  ;;  %v7988_v33 = vld [vmem:[#allocation104_spill] sm:$0xff] }
 0x2c4   :  { %v4605_v61 = vpop.eup %4604  ;;  %v7214_v38 = vmul.f32 %v2544_v40, %v7141_v22  ;;  %4614 = verf.f32 %v2297_v60  ;;  %v2296_v32 = vmul.f32 0.70710677, %v1842_v8  ;;  %v2035_v14 = vadd.f32 %v6581_v30, %v6243_v43  ;;  %v7986_v8 = vld [vmem:[#allocation24_spill] sm:$0xff] }
 0x2c5   :  { %v4607_v24 = vpop.eup %4606  ;;  %v7219_v53 = vmul.f32 %v2546_v44, %v7146_v39  ;;  %v2547_v10 = vadd.f32 1.0, %v4605_v61  ;;  %v1844_v15 = vadd.f32 %v6585_v7, %v6219_v47  ;;  %v2037_v34 = vadd.f32 %v7985_v12, %v6223_v51  ;;  %v7990_v12 = vld [vmem:[#allocation105_spill] sm:$0xff] }
 0x2c6   :  { %v2549_v4 = vadd.f32 1.0, %v4607_v24  ;;  %4616 = verf.f32 %v2296_v32  ;;  %v7225_v22 = vmul.f32 0.5, %v2035_v14  ;;  %v2298_v63 = vmul.f32 0.70710677, %v2035_v14  ;;  %v7989_v24 = vld [vmem:[#allocation110_spill] sm:$0xff] }
 0x2c7   :  { %v7228_v41 = vmul.f32 %v2547_v10, %v7158_v56  ;;  %v7230_v30 = vmul.f32 0.5, %v1844_v15  ;;  %v2299_v9 = vmul.f32 0.70710677, %v1844_v15  ;;  %v7232_v39 = vmul.f32 0.5, %v2037_v34  ;;  %v7987_v56 = vld [vmem:[#allocation21_spill] sm:$0xff] }
 0x2c8   :  { %v4609_v59 = vpop.eup %4608  ;;  %v7235_v62 = vmul.f32 %v2549_v4, %v7163_v48  ;;  %4618 = verf.f32 %v2298_v63  ;;  %v2301_v7 = vmul.f32 0.70710677, %v2037_v34  ;;  %v1846_v54 = vadd.f32 %v7986_v8, %v6230_v42  ;;  %v7991_v34 = vld [vmem:[#allocation111_spill] sm:$0xff] }
 0x2c9   :  { %v4611_v6 = vpop.eup %4610  ;;  %v2548_v35 = vadd.f32 1.0, %v4609_v59  ;;  %4620 = verf.f32 %v2299_v9  ;;  %v2039_v29 = vadd.f32 %v7987_v56, %v6243_v43  ;;  %v2784_v40 = vadd.f32 %v7070_v5, %v7988_v33  ;;  %v7992_v9 = vld [vmem:[#allocation102_spill] sm:$0xff]  ;;  %v7995_v56 = vld [vmem:[#allocation109_spill] sm:$0xff] }
 0x2ca   :  { %v2550_v60 = vadd.f32 1.0, %v4611_v6  ;;  %4622 = verf.f32 %v2301_v7  ;;  %v7243_v44 = vmul.f32 0.5, %v1846_v54  ;;  %v2300_v48 = vmul.f32 0.70710677, %v1846_v54  ;;  %v7993_v7 = vld [vmem:[#allocation106_spill] sm:$0xff]  ;;  %v7994_v6 = vld [vmem:[#allocation103_spill] sm:$0xff] }
 0x2cb   :  { %v7246_v61 = vmul.f32 %v2548_v35, %v7179_v55  ;;  %v7248_v32 = vmul.f32 0.5, %v2039_v29  ;;  %v2302_v14 = vmul.f32 0.70710677, %v2039_v29  ;;  %v2788_v10 = vadd.f32 %v7102_v2, %v7989_v24 }
 0x2cc   :  { %v7253_v15 = vmul.f32 %v2550_v60, %v7181_v13  ;;  %4624 = verf.f32 %v2300_v48  ;;  %v2786_v5 = vadd.f32 %v7075_v49, %v7990_v12  ;;  %v2790_v4 = vadd.f32 %v7109_v26, %v7991_v34 }
 0x2cd   :  { %v4613_v63 = vpop.eup %4612  ;;  %4626 = verf.f32 %v2302_v14  ;;  %v2876_v55 = vpack.c.bf16 %v2788_v10, %v2784_v40  ;;  %v2783_v59 = vadd.f32 %v7060_v57, %v7992_v9  ;;  %v2787_v8 = vadd.f32 %v7084_v19, %v7993_v7  ;;  %v7996_v9 = vld [vmem:[#allocation25_spill] sm:$0xff] }
 0x2ce   :  { %v4615_v2 = vpop.eup %4614  ;;  %v2551_v54 = vadd.f32 1.0, %v4613_v63  ;;  %v2878_v13 = vpack.c.bf16 %v2790_v4, %v2786_v5  ;;  %v2785_v35 = vadd.f32 %v7065_v18, %v7994_v6  ;;  %v2789_v49 = vadd.f32 %v7091_v37, %v7995_v56 }
 0x2cf   :  { %v2553_v29 = vadd.f32 1.0, %v4615_v2  ;;  %3295 = vmatprep.mubr.bf16.mxu0 %v2876_v55  ;;  %v2875_v26 = vpack.c.bf16 %v2787_v8, %v2783_v59  ;;  %v1850_v33 = vadd.f32 %v6663_v45, %v6219_v47  ;;  %v2043_v57 = vadd.f32 %v6670_v11, %v6223_v51  ;;  %v7997_v2 = vld [vmem:[#allocation84_spill] sm:$0xff] }
 0x2d0   :  { %v4617_v40 = vpop.eup %4616  ;;  %v7272_v19 = vmul.f32 %v2551_v54, %v7201_v25  ;;  %3456 = vmatprep.mubr.bf16.mxu1 %v2878_v13  ;;  %v2877_v60 = vpack.c.bf16 %v2789_v49, %v2785_v35  ;;  %v1852_v18 = vadd.f32 %v6672_v28, %v6230_v42  ;;  %v2045_v37 = vadd.f32 %v6677_v20, %v6243_v43 }
 0x2d1   :  { %v7279_v48 = vmul.f32 %v2553_v29, %v7206_v58  ;;  %v2552_v14 = vadd.f32 1.0, %v4617_v40  ;;  %3296 = vmatmul.mubr.bf16.gmra.mrb[164].mxu0 %v2875_v26  ;;  %v7281_v45 = vmul.f32 0.5, %v1850_v33  ;;  %v2303_v11 = vmul.f32 0.70710677, %v1850_v33 }
 0x2d2   :  { %v4619_v24 = vpop.eup %4618  ;;  %3457 = vmatmul.mubr.bf16.gmra.mrb[164].mxu1 %v2877_v60  ;;  %v7283_v25 = vmul.f32 0.5, %v2043_v57  ;;  %v2305_v10 = vmul.f32 0.70710677, %v2043_v57  ;;  %v7285_v12 = vmul.f32 0.5, %v1852_v18  ;;  %v2304_v5 = vmul.f32 0.70710677, %v1852_v18 }
 0x2d3   :  { %v4621_v28 = vpop.eup %4620  ;;  %v7288_v34 = vmul.f32 %v2552_v14, %v7211_v52  ;;  %v2554_v20 = vadd.f32 1.0, %v4619_v24  ;;  %4628 = verf.f32 %v2303_v11  ;;  %v7290_v58 = vmul.f32 0.5, %v2045_v37  ;;  %v7998_v57 = vld [vmem:[#allocation136_spill] sm:$0xff] }
 0x2d4   :  { %v4623_v4 = vpop.eup %4622  ;;  %v2555_v63 = vadd.f32 1.0, %v4621_v28  ;;  %4630 = verf.f32 %v2305_v10  ;;  %v2306_v55 = vmul.f32 0.70710677, %v2045_v37  ;;  %v1854_v59 = vadd.f32 %v7996_v9, %v6219_v47  ;;  %v8000_v37 = vld [vmem:[#allocation115_spill] sm:$0xff]  ;;  %v8001_v14 = vld [vmem:[#allocation120_spill] sm:$0xff] }
 0x2d5   :  { %v7295_v7 = vmul.f32 %v2554_v20, %v7225_v22  ;;  %v2557_v8 = vadd.f32 1.0, %v4623_v4  ;;  %4632 = verf.f32 %v2304_v5  ;;  %v2047_v52 = vadd.f32 %v7997_v2, %v6223_v51 }
 0x2d6   :  { %v4625_v54 = vpop.eup %4624  ;;  %v7300_v13 = vmul.f32 %v2555_v63, %v7230_v30  ;;  %4634 = verf.f32 %v2306_v55  ;;  %v7302_v6 = vmul.f32 0.5, %v1854_v59  ;;  %v2307_v35 = vmul.f32 0.70710677, %v1854_v59  ;;  %v7999_v30 = vld [vmem:[#allocation138_spill] sm:$0xff]  ;;  %v8002_v63 = vld [vmem:[#allocation119_spill] sm:$0xff] }
 0x2d7   :  { %v4627_v56 = vpop.eup %4626  ;;  %v7305_v49 = vmul.f32 %v2557_v8, %v7232_v39  ;;  %v2556_v29 = vadd.f32 1.0, %v4625_v54  ;;  %v7307_v22 = vmul.f32 0.5, %v2047_v52  ;;  %v2309_v26 = vmul.f32 0.70710677, %v2047_v52  ;;  %v8003_v55 = vld [vmem:[#allocation122_spill] sm:$0xff]  ;;  %v8006_v8 = vld [vmem:[#allocation113_spill] sm:$0xff] }
 0x2d8   :  { %v2558_v33 = vadd.f32 1.0, %v4627_v56  ;;  %4636 = verf.f32 %v2307_v35  ;;  %v1856_v40 = vadd.f32 %v7998_v57, %v6230_v42  ;;  %v2049_v60 = vadd.f32 %v7999_v30, %v6243_v43  ;;  %v8005_v59 = vld [vmem:[#allocation70_spill] sm:$0xff]  ;;  %v8007_v35 = vld [vmem:[#allocation73_spill] sm:$0xff] }
 0x2d9   :  { %v7314_v18 = vmul.f32 %v2556_v29, %v7243_v44  ;;  %4638 = verf.f32 %v2309_v26  ;;  %v2792_v39 = vadd.f32 %v7144_v50, %v8000_v37  ;;  %v2796_v11 = vadd.f32 %v7170_v3, %v8001_v14  ;;  %v8004_v50 = vld [vmem:[#allocation112_spill] sm:$0xff] }
 0x2da   :  { %v7321_v24 = vmul.f32 %v2558_v33, %v7248_v32  ;;  %v7323_v10 = vmul.f32 0.5, %v1856_v40  ;;  %v2308_v5 = vmul.f32 0.70710677, %v1856_v40  ;;  %v7325_v28 = vmul.f32 0.5, %v2049_v60 }
 0x2db   :  { %v2310_v20 = vmul.f32 0.70710677, %v2049_v60  ;;  %v2880_v4 = vpack.c.bf16 %v2796_v11, %v2792_v39  ;;  %v2794_v44 = vadd.f32 %v7151_v21, %v8002_v63  ;;  %v2798_v9 = vadd.f32 %v7177_v46, %v8003_v55  ;;  %v8009_v63 = vld [vmem:[#allocation28_spill] sm:$0xff] }
 0x2dc   :  { %4640 = verf.f32 %v2308_v5  ;;  %v2791_v3 = vadd.f32 %v7128_v1, %v8004_v50  ;;  %v2795_v32 = vadd.f32 %v7156_v31, %v8005_v59  ;;  %v2793_v2 = vadd.f32 %v7135_v23, %v8006_v8  ;;  %v8008_v31 = vld [vmem:[#allocation140_spill] sm:$0xff]  ;;  %v8011_v59 = vld [vmem:[#allocation29_spill] sm:$0xff] }
 0x2dd   :  { %v4629_v52 = vpop.eup %4628  ;;  %4642 = verf.f32 %v2310_v20  ;;  %3303 = vmatprep.mubr.bf16.mxu0 %v2880_v4  ;;  %v2882_v54 = vpack.c.bf16 %v2798_v9, %v2794_v44  ;;  %v2797_v21 = vadd.f32 %v7161_v17, %v8007_v35  ;;  %v1860_v46 = vadd.f32 %v6744_v16, %v6219_v47  ;;  %v8010_v50 = vld [vmem:[#allocation32_spill] sm:$0xff] }
 0x2de   :  { %v4631_v56 = vpop.eup %4630  ;;  %v2559_v29 = vadd.f32 1.0, %v4629_v52  ;;  %v2879_v26 = vpack.c.bf16 %v2795_v32, %v2791_v3  ;;  %v2053_v1 = vadd.f32 %v6746_v36, %v6223_v51  ;;  %v1862_v33 = vadd.f32 %v8008_v31, %v6230_v42 }
 0x2df   :  { %v4633_v23 = vpop.eup %4632  ;;  %v2561_v57 = vadd.f32 1.0, %v4631_v56  ;;  %3464 = vmatprep.mubr.bf16.mxu1 %v2882_v54  ;;  %v2881_v40 = vpack.c.bf16 %v2797_v21, %v2793_v2  ;;  %v7345_v30 = vmul.f32 0.5, %v1860_v46  ;;  %v2311_v60 = vmul.f32 0.70710677, %v1860_v46 }
 0x2e0   :  { %v4635_v17 = vpop.eup %4634  ;;  %v7348_v37 = vmul.f32 %v2559_v29, %v7281_v45  ;;  %v2560_v16 = vadd.f32 1.0, %v4633_v23  ;;  %3304 = vmatmul.mubr.bf16.gmra.mrb[168].mxu0 %v2879_v26  ;;  %v7350_v39 = vmul.f32 0.5, %v2053_v1  ;;  %v2313_v14 = vmul.f32 0.70710677, %v2053_v1  ;;  %v8012_v29 = vld [vmem:[#allocation33_spill] sm:$0xff]  ;;  %v8014_v23 = vld [vmem:[#allocation128_spill] sm:$0xff] }
 0x2e1   :  { %v7353_v36 = vmul.f32 %v2561_v57, %v7283_v25  ;;  %v2562_v11 = vadd.f32 1.0, %v4635_v17  ;;  %3465 = vmatmul.mubr.bf16.gmra.mrb[168].mxu1 %v2881_v40  ;;  %4644 = verf.f32 %v2311_v60  ;;  %v7355_v5 = vmul.f32 0.5, %v1862_v33 }
 0x2e2   :  { %v4637_v20 = vpop.eup %4636  ;;  %v7358_v4 = vmul.f32 %v2560_v16, %v7285_v12  ;;  %4646 = verf.f32 %v2313_v14  ;;  %v2312_v45 = vmul.f32 0.70710677, %v1862_v33  ;;  %v2055_v44 = vadd.f32 %v8009_v63, %v6243_v43  ;;  %v8016_v63 = vld [vmem:[#allocation129_spill] sm:$0xff] }
 0x2e3   :  { %v4639_v55 = vpop.eup %4638  ;;  %v7363_v9 = vmul.f32 %v2562_v11, %v7290_v58  ;;  %v2563_v25 = vadd.f32 1.0, %v4637_v20  ;;  %v1864_v3 = vadd.f32 %v8010_v50, %v6219_v47  ;;  %v2057_v32 = vadd.f32 %v8011_v59, %v6223_v51  ;;  %v8015_v11 = vld [vmem:[#allocation134_spill] sm:$0xff]  ;;  %v8018_v50 = vld [vmem:[#allocation127_spill] sm:$0xff] }
 0x2e4   :  { %v2565_v8 = vadd.f32 1.0, %v4639_v55  ;;  %4648 = verf.f32 %v2312_v45  ;;  %v7369_v12 = vmul.f32 0.5, %v2055_v44  ;;  %v2314_v2 = vmul.f32 0.70710677, %v2055_v44  ;;  %v8017_v44 = vld [vmem:[#allocation135_spill] sm:$0xff]  ;;  %v8019_v59 = vld [vmem:[#allocation130_spill] sm:$0xff] }
 0x2e5   :  { %v7372_v52 = vmul.f32 %v2563_v25, %v7302_v6  ;;  %v7374_v54 = vmul.f32 0.5, %v1864_v3  ;;  %v2315_v35 = vmul.f32 0.70710677, %v1864_v3  ;;  %v7376_v58 = vmul.f32 0.5, %v2057_v32  ;;  %v8013_v6 = vld [vmem:[#allocation26_spill] sm:$0xff] }
 0x2e6   :  { %v4641_v21 = vpop.eup %4640  ;;  %v7379_v46 = vmul.f32 %v2565_v8, %v7307_v22  ;;  %4650 = verf.f32 %v2314_v2  ;;  %v2317_v56 = vmul.f32 0.70710677, %v2057_v32  ;;  %v1866_v26 = vadd.f32 %v8012_v29, %v6230_v42  ;;  %v8020_v2 = vld [vmem:[#allocation76_spill] sm:$0xff]  ;;  %v8022_v29 = vld [vmem:[#allocation30_spill] sm:$0xff] }
 0x2e7   :  { %v4643_v1 = vpop.eup %4642  ;;  %v2564_v31 = vadd.f32 1.0, %v4641_v21  ;;  %4652 = verf.f32 %v2315_v35  ;;  %v2059_v33 = vadd.f32 %v8013_v6, %v6243_v43  ;;  %v2800_v57 = vadd.f32 %v7214_v38, %v8014_v23  ;;  %v8021_v21 = vld [vmem:[#allocation133_spill] sm:$0xff] }
 0x2e8   :  { %v2566_v40 = vadd.f32 1.0, %v4643_v1  ;;  %4654 = verf.f32 %v2317_v56  ;;  %v7387_v60 = vmul.f32 0.5, %v1866_v26  ;;  %v2316_v22 = vmul.f32 0.70710677, %v1866_v26 }
 0x2e9   :  { %v7390_v17 = vmul.f32 %v2564_v31, %v7323_v10  ;;  %v7392_v16 = vmul.f32 0.5, %v2059_v33  ;;  %v2318_v14 = vmul.f32 0.70710677, %v2059_v33  ;;  %v2804_v20 = vadd.f32 %v7246_v61, %v8015_v11 }
 0x2ea   :  { %v7397_v45 = vmul.f32 %v2566_v40, %v7325_v28  ;;  %4656 = verf.f32 %v2316_v22  ;;  %v2802_v38 = vadd.f32 %v7219_v53, %v8016_v63  ;;  %v2806_v55 = vadd.f32 %v7253_v15, %v8017_v44 }
 0x2eb   :  { %v4645_v25 = vpop.eup %4644  ;;  %4658 = verf.f32 %v2318_v14  ;;  %v2884_v10 = vpack.c.bf16 %v2804_v20, %v2800_v57  ;;  %v2799_v3 = vadd.f32 %v7204_v27, %v8018_v50  ;;  %v2803_v32 = vadd.f32 %v7228_v41, %v8019_v59  ;;  %v8023_v27 = vld [vmem:[#allocation27_spill] sm:$0xff]  ;;  %v8026_v59 = vld [vmem:[#allocation90_spill] sm:$0xff] }
 0x2ec   :  { %v4647_v61 = vpop.eup %4646  ;;  %v2567_v8 = vadd.f32 1.0, %v4645_v25  ;;  %v2886_v28 = vpack.c.bf16 %v2806_v55, %v2802_v38  ;;  %v2801_v35 = vadd.f32 %v7209_v0, %v8020_v2  ;;  %v2805_v53 = vadd.f32 %v7235_v62, %v8021_v21  ;;  %v8024_v0 = vld [vmem:[#allocation31_spill] sm:$0xff]  ;;  %v8025_v62 = vld [vmem:[#allocation145_spill] sm:$0xff] }
 0x2ed   :  { %v2569_v56 = vadd.f32 1.0, %v4647_v61  ;;  %3311 = vmatprep.mubr.bf16.mxu0 %v2884_v10  ;;  %v2883_v15 = vpack.c.bf16 %v2803_v32, %v2799_v3  ;;  %v1870_v26 = vadd.f32 %v8022_v29, %v6219_v47  ;;  %v2063_v1 = vadd.f32 %v8023_v27, %v6223_v51 }
 0x2ee   :  { %v4649_v31 = vpop.eup %4648  ;;  %v7416_v41 = vmul.f32 %v2567_v8, %v7345_v30  ;;  %3472 = vmatprep.mubr.bf16.mxu1 %v2886_v28  ;;  %v2885_v6 = vpack.c.bf16 %v2805_v53, %v2801_v35  ;;  %v1872_v33 = vadd.f32 %v8024_v0, %v6230_v42  ;;  %v2065_v23 = vadd.f32 %v8025_v62, %v6243_v43  ;;  %v8027_v28 = vld [vmem:[#allocation147_spill] sm:$0xff] }
 0x2ef   :  { %v7423_v57 = vmul.f32 %v2569_v56, %v7350_v39  ;;  %v2568_v40 = vadd.f32 1.0, %v4649_v31  ;;  %3312 = vmatmul.mubr.bf16.gmra.mrb[172].mxu0 %v2883_v15  ;;  %v7425_v22 = vmul.f32 0.5, %v1870_v26  ;;  %v2319_v14 = vmul.f32 0.70710677, %v1870_v26 }
 0x2f0   :  { %v4651_v11 = vpop.eup %4650  ;;  %3473 = vmatmul.mubr.bf16.gmra.mrb[172].mxu1 %v2885_v6  ;;  %v7427_v30 = vmul.f32 0.5, %v2063_v1  ;;  %v2321_v20 = vmul.f32 0.70710677, %v2063_v1  ;;  %v7429_v63 = vmul.f32 0.5, %v1872_v33  ;;  %v2320_v38 = vmul.f32 0.70710677, %v1872_v33 }
 0x2f1   :  { %v4653_v44 = vpop.eup %4652  ;;  %v7432_v55 = vmul.f32 %v2568_v40, %v7355_v5  ;;  %v2570_v25 = vadd.f32 1.0, %v4651_v11  ;;  %4660 = verf.f32 %v2319_v14  ;;  %v7434_v39 = vmul.f32 0.5, %v2065_v23  ;;  %v8030_v6 = vld [vmem:[#allocation139_spill] sm:$0xff] }
 0x2f2   :  { %v4655_v10 = vpop.eup %4654  ;;  %v2571_v50 = vadd.f32 1.0, %v4653_v44  ;;  %4662 = verf.f32 %v2321_v20  ;;  %v2322_v3 = vmul.f32 0.70710677, %v2065_v23  ;;  %v1874_v32 = vadd.f32 %v8026_v59, %v6219_v47  ;;  %v8032_v20 = vld [vmem:[#allocation141_spill] sm:$0xff]  ;;  %v8037_v59 = vld [vmem:[#allocation143_spill] sm:$0xff] }
 0x2f3   :  { %v7439_v61 = vmul.f32 %v2570_v25, %v7369_v12  ;;  %v2573_v8 = vadd.f32 1.0, %v4655_v10  ;;  %4664 = verf.f32 %v2320_v38  ;;  %v2067_v5 = vadd.f32 %v8027_v28, %v6223_v51  ;;  %v8028_v51 = vld [vmem:[#allocation148_spill] sm:$0xff]  ;;  %v8036_v25 = vld [vmem:[#allocation137_spill] sm:$0xff] }
 0x2f4   :  { %v4657_v2 = vpop.eup %4656  ;;  %v7444_v35 = vmul.f32 %v2571_v50, %v7374_v54  ;;  %4666 = verf.f32 %v2322_v3  ;;  %v7446_v21 = vmul.f32 0.5, %v1874_v32  ;;  %v2323_v53 = vmul.f32 0.70710677, %v1874_v32  ;;  %v8029_v54 = vld [vmem:[#allocation149_spill] sm:$0xff]  ;;  %v8038_v32 = vld [vmem:[#allocation152_spill] sm:$0xff] }
 0x2f5   :  { %v4659_v56 = vpop.eup %4658  ;;  %v7449_v15 = vmul.f32 %v2573_v8, %v7376_v58  ;;  %v2572_v47 = vadd.f32 1.0, %v4657_v2  ;;  %v7451_v12 = vmul.f32 0.5, %v2067_v5  ;;  %v2325_v29 = vmul.f32 0.70710677, %v2067_v5  ;;  %v8031_v58 = vld [vmem:[#allocation144_spill] sm:$0xff] }
 0x2f6   :  { %v2574_v26 = vadd.f32 1.0, %v4659_v56  ;;  %4668 = verf.f32 %v2323_v53  ;;  %v1876_v27 = vadd.f32 %v8028_v51, %v6230_v42  ;;  %v2069_v1 = vadd.f32 %v8029_v54, %v6243_v43 }
 0x2f7   :  { %v2700_v31 = vmul.f32 %v2572_v47, %v7387_v60  ;;  %4670 = verf.f32 %v2325_v29  ;;  %v2808_v0 = vadd.f32 %v7288_v34, %v8030_v6  ;;  %v2812_v33 = vadd.f32 %v7314_v18, %v8031_v58  ;;  %v8033_v60 = vld [vmem:[#allocation146_spill] sm:$0xff]  ;;  %v8034_v34 = vld [vmem:[#allocation83_spill] sm:$0xff]  ;;  %v8041_v29 = vld [vmem:[#allocation161_spill] sm:$0xff] }
 0x2f8   :  { %v2702_v62 = vmul.f32 %v2574_v26, %v7392_v16  ;;  %v7463_v23 = vmul.f32 0.5, %v1876_v27  ;;  %v2324_v40 = vmul.f32 0.70710677, %v1876_v27  ;;  %v7465_v14 = vmul.f32 0.5, %v2069_v1  ;;  %v8035_v18 = vld [vmem:[#allocation142_spill] sm:$0xff] }
 0x2f9   :  { %v2326_v42 = vmul.f32 0.70710677, %v2069_v1  ;;  %v2888_v11 = vpack.c.bf16 %v2812_v33, %v2808_v0  ;;  %v2810_v43 = vadd.f32 %v7295_v7, %v8032_v20  ;;  %v2814_v38 = vadd.f32 %v7321_v24, %v8033_v60  ;;  %v8044_v33 = vld [vmem:[#allocation151_spill] sm:$0xff]  ;;  %v8046_v20 = vld [vmem:[#allocation165_spill] sm:$0xff] }
 0x2fa   :  { %4672 = verf.f32 %v2324_v40  ;;  %v2807_v44 = vadd.f32 %v7272_v19, %v8034_v34  ;;  %v2811_v16 = vadd.f32 %v7300_v13, %v8035_v18  ;;  %v2809_v10 = vadd.f32 %v7279_v48, %v8036_v25  ;;  %v8039_v19 = vld [vmem:[#allocation160_spill] sm:$0xff]  ;;  %v8040_v13 = vld [vmem:[#allocation153_spill] sm:$0xff] }
 0x2fb   :  { %v4661_v50 = vpop.eup %4660  ;;  %4674 = verf.f32 %v2326_v42  ;;  %3319 = vmatprep.mubr.bf16.mxu0 %v2888_v11  ;;  %v2890_v3 = vpack.c.bf16 %v2814_v38, %v2810_v43  ;;  %v2813_v7 = vadd.f32 %v7305_v49, %v8037_v59  ;;  %v2816_v24 = vadd.f32 %v7358_v4, %v8038_v32  ;;  %v8042_v49 = vld [vmem:[#allocation150_spill] sm:$0xff] }
 0x2fc   :  { %v4663_v8 = vpop.eup %4662  ;;  %v2575_v28 = vadd.f32 1.0, %v4661_v50  ;;  %v2887_v5 = vpack.c.bf16 %v2811_v16, %v2807_v44  ;;  %v2820_v2 = vadd.f32 %v7390_v17, %v8039_v19  ;;  %v2818_v53 = vadd.f32 %v7363_v9, %v8040_v13  ;;  %v8043_v17 = vld [vmem:[#allocation154_spill] sm:$0xff]  ;;  %v8049_v16 = vld [vmem:[#allocation175_spill] sm:$0xff] }
 0x2fd   :  { %v4665_v48 = vpop.eup %4664  ;;  %v2577_v56 = vadd.f32 1.0, %v4663_v8  ;;  %3480 = vmatprep.mubr.bf16.mxu1 %v2890_v3  ;;  %v2889_v47 = vpack.c.bf16 %v2813_v7, %v2809_v10  ;;  %v2822_v26 = vadd.f32 %v7397_v45, %v8041_v29  ;;  %v2815_v51 = vadd.f32 %v7348_v37, %v8042_v49  ;;  %v8047_v38 = vld [vmem:[#allocation174_spill] sm:$0xff]  ;;  %v8051_v3 = vld [vmem:[#allocation17_spill] sm:$0xff]  ;;  %v8056_v13 = vld [vmem:[#allocation179_spill] sm:$0xff] }
 0x2fe   :  { %v4667_v4 = vpop.eup %4666  ;;  %v2703_v27 = vmul.f32 %v2575_v28, %v7425_v22  ;;  %v2576_v54 = vadd.f32 1.0, %v4665_v48  ;;  %3320 = vmatmul.mubr.bf16.gmra.mrb[176].mxu0 %v2887_v5  ;;  %v2892_v1 = vpack.c.bf16 %v2820_v2, %v2816_v24  ;;  %v2819_v6 = vadd.f32 %v7372_v52, %v8043_v17  ;;  %v8045_v22 = vld [vmem:[#allocation157_spill] sm:$0xff]  ;;  %v8048_v44 = vld [vmem:[#allocation170_spill] sm:$0xff]  ;;  %v8053_v24 = vld [vmem:[#allocation171_spill] sm:$0xff] }
 0x2ff   :  { %v2705_v9 = vmul.f32 %v2577_v56, %v7427_v30  ;;  %v2578_v0 = vadd.f32 1.0, %v4667_v4  ;;  %3481 = vmatmul.mubr.bf16.gmra.mrb[176].mxu1 %v2889_v47  ;;  %v2894_v58 = vpack.c.bf16 %v2822_v26, %v2818_v53  ;;  %v2817_v45 = vadd.f32 %v7353_v36, %v8044_v33  ;;  %v8050_v10 = vld [vmem:[#allocation98_spill] sm:$0xff]  ;;  %v8058_v47 = vld [vmem:[#allocation107_spill] sm:$0xff]  ;;  %v8059_v29 = vld [vmem:[#allocation101_spill] sm:$0xff] }
 0x300   :  { %v4669_v40 = vpop.eup %4668  ;;  %v2704_v37 = vmul.f32 %v2576_v54, %v7429_v63  ;;  %3327 = vmatprep.mubr.bf16.mxu0 %v2892_v1  ;;  %v2891_v42 = vpack.c.bf16 %v2819_v6, %v2815_v51  ;;  %v2821_v11 = vadd.f32 %v7379_v46, %v8045_v22  ;;  %v2824_v43 = vadd.f32 %v7432_v55, %v8046_v20  ;;  %v8052_v59 = vld [vmem:[#allocation162_spill] sm:$0xff]  ;;  %v8062_v54 = vld [vmem:[#allocation176_spill] sm:$0xff]  ;;  %v8063_v1 = vld [vmem:[#allocation191_spill] sm:$0xff] }
 0x301   :  { %v4671_v52 = vpop.eup %4670  ;;  %v2706_v30 = vmul.f32 %v2578_v0, %v7434_v39  ;;  %v2579_v60 = vadd.f32 1.0, %v4669_v40  ;;  %3488 = vmatprep.mubr.bf16.mxu1 %v2894_v58  ;;  %v2828_v34 = vadd.f32 %v2700_v31, %v8047_v38  ;;  %v2826_v36 = vadd.f32 %v7439_v61, %v8048_v44  ;;  %v8060_v26 = vld [vmem:[#allocation190_spill] sm:$0xff] }
 0x302   :  { %v2581_v18 = vadd.f32 1.0, %v4671_v52  ;;  %v2893_v63 = vpack.c.bf16 %v2821_v11, %v2817_v45  ;;  %v2830_v25 = vadd.f32 %v2702_v62, %v8049_v16  ;;  %v2823_v46 = vadd.f32 %v7416_v41, %v8050_v10  ;;  %v8054_v62 = vld [vmem:[#allocation108_spill] sm:$0xff]  ;;  %v8061_v51 = vld [vmem:[#allocation194_spill] sm:$0xff]  ;;  %v7530_v52 = vld [vmem:[%s7586_s7] ss:$0 sm:$0xff]  ;;  %s4828_s7 = smov [#allocation12]  }
 0x303   :  { %v2707_v50 = vmul.f32 %v2579_v60, %v7446_v21  ;;  %v2896_v55 = vpack.c.bf16 %v2828_v34, %v2824_v43  ;;  %v2827_v39 = vadd.f32 %v7444_v35, %v8051_v3  ;;  %v2825_v7 = vadd.f32 %v7423_v57, %v8052_v59  ;;  %v8055_v21 = vld [vmem:[#allocation184_spill] sm:$0xff]  ;;  %v8057_v57 = vld [vmem:[#allocation185_spill] sm:$0xff]  ;;  %s3688_s30 = sshll.u32 %s4828_s7, 4  ;;  %s3689_s30 = int_to_ptr.vmem [resolvable:$true] %s3688_s30 }
 0x304   :  { %v4673_v31 = vpop.eup %4672  ;;  %v2709_v32 = vmul.f32 %v2581_v18, %v7451_v12  ;;  %v2898_v61 = vpack.c.bf16 %v2830_v25, %v2826_v36  ;;  %v2829_v8 = vadd.f32 %v7449_v15, %v8053_v24  ;;  %v2832_v28 = vadd.f32 %v2704_v37, %v8054_v62  ;;  %s4786_s1 = scalar_lea.vmem %s3689_s30, 4096  ;;  %p4791_p13 = scmp.lt.s32.totalorder %s3689_s30, %s3689_s30 }
 0x305   :  { %v4675_v5 = vpop.eup %4674  ;;  %v2580_v41 = vadd.f32 1.0, %v4673_v31  ;;  %v2895_v19 = vpack.c.bf16 %v2827_v39, %v2823_v46  ;;  %v2834_v2 = vadd.f32 %v2706_v30, %v8055_v21  ;;  %v2831_v53 = vadd.f32 %v2703_v27, %v8056_v13  ;;  %p4787_p12 = scmp.ne.s32.totalorder %s3689_s30, %s4786_s1  ;;  %p4792_p0 = scmp.lt.s32.totalorder %s4786_s1, %s4786_s1 }
 0x306   :  { %v2582_v35 = vadd.f32 1.0, %v4675_v5  ;;  %3328 = vmatmul.mubr.bf16.gmra.mrb[180].mxu0 %v2891_v42  ;;  %v2897_v48 = vpack.c.bf16 %v2829_v8, %v2825_v7  ;;  %v2835_v56 = vadd.f32 %v2707_v50, %v8057_v57  ;;  %v2833_v12 = vadd.f32 %v2705_v9, %v8058_v47 }
 0x307   :  { %v1420_v49 = vmul.f32 %v8060_v26, %v8059_v29  ;;  %v2708_v15 = vmul.f32 %v2580_v41, %v7463_v23  ;;  %3489 = vmatmul.mubr.bf16.gmra.mrb[180].mxu1 %v2893_v63  ;;  %3335 = vmatprep.mubr.bf16.mxu0 %v2896_v55  ;;  %v2837_v4 = vadd.f32 %v2709_v32, %v8061_v51  ;;  %p4793_p1 = por %p4792_p0, %p4791_p13 }
 0x308   :  { %v1422_v17 = vmul.f32 %v8063_v1, %v8062_v54  ;;  %v2710_v27 = vmul.f32 %v2582_v35, %v7465_v14  ;;  %3496 = vmatprep.mubr.bf16.mxu1 %v2898_v61  ;;  %v2899_v6 = vpack.c.bf16 %v2835_v56, %v2831_v53 }
 0x309   :  { %v2836_v0 = vadd.f32 %v2708_v15, %v1420_v49  ;;  %v2901_v58 = vpack.c.bf16 %v2837_v4, %v2833_v12  ;;  %p4794_p2 = pnand %p4793_p1, %p4787_p12 }
 0x30a   :  { %v2838_v33 = vadd.f32 %v2710_v27, %v1422_v17 }
 0x30b   :  { %v2900_v9 = vpack.c.bf16 %v2836_v0, %v2832_v28 }
 0x30c   :  { %v2902_v45 = vpack.c.bf16 %v2838_v33, %v2834_v2 }
 0x30e   :  { %3336 = vmatmul.mubr.bf16.gmra.mrb[184].mxu0 %v2895_v19 }
 0x30f   :  { %3497 = vmatmul.mubr.bf16.gmra.mrb[184].mxu1 %v2897_v48  ;;  %3343 = vmatprep.mubr.bf16.mxu0 %v2900_v9 }
 0x310   :  { %3504 = vmatprep.mubr.bf16.mxu1 %v2902_v45 }
 0x316   :  { %3344 = vmatmul.mubr.bf16.gmra.mrb[188].mxu0 %v2899_v6 }
 0x317   :  { %3505 = vmatmul.mubr.bf16.gmra.mrb[188].mxu1 %v2901_v58 }
 0x31d   :  { %v3815_v23 = vpop.f32.mrb[128].mxu0 }
 0x31e   :  { %v3816_v37 = vpop.f32.mrb[129].mxu0 }
 0x31f   :  { %v3927_v40 = vpop.f32.mrb[128].mxu1  ;;  %v3817_v42 = vadd.f32 %v3816_v37, %v3815_v23  ;;  %v3818_v11 = vpop.f32.mrb[130].mxu0 }
 0x320   :  { %v3928_v22 = vpop.f32.mrb[129].mxu1  ;;  %v3819_v43 = vpop.f32.mrb[131].mxu0 }
 0x321   :  { %v3929_v14 = vadd.f32 %v3928_v22, %v3927_v40  ;;  %v3930_v20 = vpop.f32.mrb[130].mxu1  ;;  %v3820_v30 = vadd.f32 %v3819_v43, %v3818_v11 }
 0x322   :  { %v3931_v60 = vpop.f32.mrb[131].mxu1 }
 0x323   :  { %v3387_v38 = vadd.f32 %v3929_v14, %v3817_v42  ;;  %v3932_v34 = vadd.f32 %v3931_v60, %v3930_v20 }
 0x325   :  { %v3619_v44 = vadd.f32 %v7530_v52, %v3387_v38  ;;  %v3390_v36 = vadd.f32 %v3932_v34, %v3820_v30 }
 0x327   :  { %3651 = vst [vmem:[#allocation12] sm:$0xff] %v3619_v44  ;;  %v3620_v18 = vadd.f32 %v7530_v52, %v3390_v36 }
 0x329   :  { %3652 = vst [vmem:[#allocation12 + $0x8] sm:$0xff] %v3620_v18 }
 0x32b   :  { %v3821_v63 = vpop.f32.mrb[132].mxu0 }
 0x32c   :  { %v3822_v25 = vpop.f32.mrb[133].mxu0 }
 0x32d   :  { %v3933_v16 = vpop.f32.mrb[132].mxu1  ;;  %v3823_v10 = vadd.f32 %v3822_v25, %v3821_v63  ;;  %v3824_v50 = vpop.f32.mrb[134].mxu0 }
 0x32e   :  { %v3934_v46 = vpop.f32.mrb[133].mxu1  ;;  %v3825_v39 = vpop.f32.mrb[135].mxu0 }
 0x32f   :  { %v3935_v55 = vadd.f32 %v3934_v46, %v3933_v16  ;;  %v3936_v3 = vpop.f32.mrb[134].mxu1  ;;  %v3826_v59 = vadd.f32 %v3825_v39, %v3824_v50 }
 0x330   :  { %v3937_v7 = vpop.f32.mrb[135].mxu1 }
 0x331   :  { %v3395_v31 = vadd.f32 %v3935_v55, %v3823_v10  ;;  %v3938_v32 = vadd.f32 %v3937_v7, %v3936_v3 }
 0x333   :  { %v3621_v61 = vadd.f32 %v7530_v52, %v3395_v31  ;;  %v3398_v24 = vadd.f32 %v3938_v32, %v3826_v59 }
 0x335   :  { %3653 = vst [vmem:[#allocation12 + $0x10] sm:$0xff] %v3621_v61  ;;  %v3622_v8 = vadd.f32 %v7530_v52, %v3398_v24 }
 0x337   :  { %3654 = vst [vmem:[#allocation12 + $0x18] sm:$0xff] %v3622_v8 }
 0x33a   :  { %v3827_v62 = vpop.f32.mrb[136].mxu0 }
 0x33b   :  { %v3939_v28 = vpop.f32.mrb[136].mxu1  ;;  %v3828_v5 = vpop.f32.mrb[137].mxu0 }
 0x33c   :  { %v3829_v41 = vadd.f32 %v3828_v5, %v3827_v62  ;;  %v3940_v19 = vpop.f32.mrb[137].mxu1  ;;  %v3830_v21 = vpop.f32.mrb[138].mxu0 }
 0x33d   :  { %v3941_v2 = vadd.f32 %v3940_v19, %v3939_v28  ;;  %v3942_v13 = vpop.f32.mrb[138].mxu1  ;;  %v3831_v53 = vpop.f32.mrb[139].mxu0 }
 0x33e   :  { %v3832_v35 = vadd.f32 %v3831_v53, %v3830_v21  ;;  %v3943_v48 = vpop.f32.mrb[139].mxu1 }
 0x33f   :  { %v3403_v57 = vadd.f32 %v3941_v2, %v3829_v41  ;;  %v3944_v56 = vadd.f32 %v3943_v48, %v3942_v13 }
 0x341   :  { %v3623_v47 = vadd.f32 %v7530_v52, %v3403_v57  ;;  %v3406_v12 = vadd.f32 %v3944_v56, %v3832_v35 }
 0x343   :  { %3655 = vst [vmem:[#allocation12 + $0x20] sm:$0xff] %v3623_v47  ;;  %v3624_v29 = vadd.f32 %v7530_v52, %v3406_v12 }
 0x345   :  { %3656 = vst [vmem:[#allocation12 + $0x28] sm:$0xff] %v3624_v29 }
 0x349   :  { %v3833_v26 = vpop.f32.mrb[140].mxu0 }
 0x34a   :  { %v3945_v49 = vpop.f32.mrb[140].mxu1  ;;  %v3834_v15 = vpop.f32.mrb[141].mxu0 }
 0x34b   :  { %v3835_v51 = vadd.f32 %v3834_v15, %v3833_v26  ;;  %v3946_v4 = vpop.f32.mrb[141].mxu1  ;;  %v3836_v54 = vpop.f32.mrb[142].mxu0 }
 0x34c   :  { %v3947_v1 = vadd.f32 %v3946_v4, %v3945_v49  ;;  %v3948_v17 = vpop.f32.mrb[142].mxu1  ;;  %v3837_v27 = vpop.f32.mrb[143].mxu0 }
 0x34d   :  { %v3838_v6 = vadd.f32 %v3837_v27, %v3836_v54  ;;  %v3949_v0 = vpop.f32.mrb[143].mxu1 }
 0x34e   :  { %v3411_v58 = vadd.f32 %v3947_v1, %v3835_v51  ;;  %v3950_v33 = vadd.f32 %v3949_v0, %v3948_v17 }
 0x350   :  { %v3625_v9 = vadd.f32 %v7530_v52, %v3411_v58  ;;  %v3414_v45 = vadd.f32 %v3950_v33, %v3838_v6 }
 0x352   :  { %3657 = vst [vmem:[#allocation12 + $0x30] sm:$0xff] %v3625_v9  ;;  %v3626_v23 = vadd.f32 %v7530_v52, %v3414_v45 }
 0x354   :  { %3658 = vst [vmem:[#allocation12 + $0x38] sm:$0xff] %v3626_v23 }
 0x359   :  { %v3839_v40 = vpop.f32.mrb[144].mxu0 }
 0x35a   :  { %v3951_v37 = vpop.f32.mrb[144].mxu1  ;;  %v3840_v42 = vpop.f32.mrb[145].mxu0 }
 0x35b   :  { %v3841_v22 = vadd.f32 %v3840_v42, %v3839_v40  ;;  %v3952_v11 = vpop.f32.mrb[145].mxu1  ;;  %v3842_v14 = vpop.f32.mrb[146].mxu0 }
 0x35c   :  { %v3953_v20 = vadd.f32 %v3952_v11, %v3951_v37  ;;  %v3954_v43 = vpop.f32.mrb[146].mxu1  ;;  %v3843_v30 = vpop.f32.mrb[147].mxu0 }
 0x35d   :  { %v3844_v60 = vadd.f32 %v3843_v30, %v3842_v14  ;;  %v3955_v38 = vpop.f32.mrb[147].mxu1 }
 0x35e   :  { %v3419_v34 = vadd.f32 %v3953_v20, %v3841_v22  ;;  %v3956_v44 = vadd.f32 %v3955_v38, %v3954_v43 }
 0x360   :  { %v3627_v36 = vadd.f32 %v7530_v52, %v3419_v34  ;;  %v3422_v18 = vadd.f32 %v3956_v44, %v3844_v60 }
 0x362   :  { %3659 = vst [vmem:[#allocation12 + $0x40] sm:$0xff] %v3627_v36  ;;  %v3628_v63 = vadd.f32 %v7530_v52, %v3422_v18 }
 0x364   :  { %3660 = vst [vmem:[#allocation12 + $0x48] sm:$0xff] %v3628_v63 }
 0x368   :  { %v3845_v16 = vpop.f32.mrb[148].mxu0 }
 0x369   :  { %v3957_v25 = vpop.f32.mrb[148].mxu1  ;;  %v3846_v10 = vpop.f32.mrb[149].mxu0 }
 0x36a   :  { %v3847_v46 = vadd.f32 %v3846_v10, %v3845_v16  ;;  %v3958_v50 = vpop.f32.mrb[149].mxu1  ;;  %v3848_v55 = vpop.f32.mrb[150].mxu0 }
 0x36b   :  { %v3959_v3 = vadd.f32 %v3958_v50, %v3957_v25  ;;  %v3960_v39 = vpop.f32.mrb[150].mxu1  ;;  %v3849_v59 = vpop.f32.mrb[151].mxu0 }
 0x36c   :  { %v3850_v7 = vadd.f32 %v3849_v59, %v3848_v55  ;;  %v3961_v31 = vpop.f32.mrb[151].mxu1 }
 0x36d   :  { %v3427_v32 = vadd.f32 %v3959_v3, %v3847_v46  ;;  %v3962_v61 = vadd.f32 %v3961_v31, %v3960_v39 }
 0x36f   :  { %v3629_v24 = vadd.f32 %v7530_v52, %v3427_v32  ;;  %v3430_v8 = vadd.f32 %v3962_v61, %v3850_v7 }
 0x371   :  { %3661 = vst [vmem:[#allocation12 + $0x50] sm:$0xff] %v3629_v24  ;;  %v3630_v62 = vadd.f32 %v7530_v52, %v3430_v8 }
 0x373   :  { %3662 = vst [vmem:[#allocation12 + $0x58] sm:$0xff] %v3630_v62 }
 0x377   :  { %v3851_v28 = vpop.f32.mrb[152].mxu0 }
 0x378   :  { %v3963_v5 = vpop.f32.mrb[152].mxu1  ;;  %v3852_v41 = vpop.f32.mrb[153].mxu0 }
 0x379   :  { %v3853_v19 = vadd.f32 %v3852_v41, %v3851_v28  ;;  %v3964_v21 = vpop.f32.mrb[153].mxu1  ;;  %v3854_v2 = vpop.f32.mrb[154].mxu0 }
 0x37a   :  { %v3965_v13 = vadd.f32 %v3964_v21, %v3963_v5  ;;  %v3966_v53 = vpop.f32.mrb[154].mxu1  ;;  %v3855_v35 = vpop.f32.mrb[155].mxu0 }
 0x37b   :  { %v3856_v48 = vadd.f32 %v3855_v35, %v3854_v2  ;;  %v3967_v57 = vpop.f32.mrb[155].mxu1 }
 0x37c   :  { %v3435_v56 = vadd.f32 %v3965_v13, %v3853_v19  ;;  %v3968_v47 = vadd.f32 %v3967_v57, %v3966_v53 }
 0x37e   :  { %v3631_v12 = vadd.f32 %v7530_v52, %v3435_v56  ;;  %v3438_v29 = vadd.f32 %v3968_v47, %v3856_v48 }
 0x380   :  { %3663 = vst [vmem:[#allocation12 + $0x60] sm:$0xff] %v3631_v12  ;;  %v3632_v26 = vadd.f32 %v7530_v52, %v3438_v29 }
 0x382   :  { %3664 = vst [vmem:[#allocation12 + $0x68] sm:$0xff] %v3632_v26 }
 0x386   :  { %v3857_v49 = vpop.f32.mrb[156].mxu0 }
 0x387   :  { %v3969_v15 = vpop.f32.mrb[156].mxu1  ;;  %v3858_v51 = vpop.f32.mrb[157].mxu0 }
 0x388   :  { %v3859_v4 = vadd.f32 %v3858_v51, %v3857_v49  ;;  %v3970_v54 = vpop.f32.mrb[157].mxu1  ;;  %v3860_v1 = vpop.f32.mrb[158].mxu0 }
 0x389   :  { %v3971_v17 = vadd.f32 %v3970_v54, %v3969_v15  ;;  %v3972_v27 = vpop.f32.mrb[158].mxu1  ;;  %v3861_v6 = vpop.f32.mrb[159].mxu0 }
 0x38a   :  { %v3862_v0 = vadd.f32 %v3861_v6, %v3860_v1  ;;  %v3973_v58 = vpop.f32.mrb[159].mxu1 }
 0x38b   :  { %v3443_v33 = vadd.f32 %v3971_v17, %v3859_v4  ;;  %v3974_v9 = vadd.f32 %v3973_v58, %v3972_v27 }
 0x38d   :  { %v3633_v45 = vadd.f32 %v7530_v52, %v3443_v33  ;;  %v3446_v23 = vadd.f32 %v3974_v9, %v3862_v0 }
 0x38f   :  { %3665 = vst [vmem:[#allocation12 + $0x70] sm:$0xff] %v3633_v45  ;;  %v3634_v40 = vadd.f32 %v7530_v52, %v3446_v23 }
 0x391   :  { %3666 = vst [vmem:[#allocation12 + $0x78] sm:$0xff] %v3634_v40 }
 0x395   :  { %v3863_v37 = vpop.f32.mrb[160].mxu0 }
 0x396   :  { %v3975_v42 = vpop.f32.mrb[160].mxu1  ;;  %v3864_v22 = vpop.f32.mrb[161].mxu0 }
 0x397   :  { %v3865_v11 = vadd.f32 %v3864_v22, %v3863_v37  ;;  %v3976_v14 = vpop.f32.mrb[161].mxu1  ;;  %v3866_v20 = vpop.f32.mrb[162].mxu0 }
 0x398   :  { %v3977_v43 = vadd.f32 %v3976_v14, %v3975_v42  ;;  %v3978_v30 = vpop.f32.mrb[162].mxu1  ;;  %v3867_v60 = vpop.f32.mrb[163].mxu0 }
 0x399   :  { %v3868_v38 = vadd.f32 %v3867_v60, %v3866_v20  ;;  %v3979_v34 = vpop.f32.mrb[163].mxu1 }
 0x39a   :  { %v3451_v44 = vadd.f32 %v3977_v43, %v3865_v11  ;;  %v3980_v36 = vadd.f32 %v3979_v34, %v3978_v30 }
 0x39c   :  { %v3635_v18 = vadd.f32 %v7530_v52, %v3451_v44  ;;  %v3454_v63 = vadd.f32 %v3980_v36, %v3868_v38 }
 0x39e   :  { %3667 = vst [vmem:[#allocation12 + $0x80] sm:$0xff] %v3635_v18  ;;  %v3636_v16 = vadd.f32 %v7530_v52, %v3454_v63 }
 0x3a0   :  { %3668 = vst [vmem:[#allocation12 + $0x88] sm:$0xff] %v3636_v16 }
 0x3a4   :  { %v3869_v25 = vpop.f32.mrb[164].mxu0 }
 0x3a5   :  { %v3981_v10 = vpop.f32.mrb[164].mxu1  ;;  %v3870_v46 = vpop.f32.mrb[165].mxu0 }
 0x3a6   :  { %v3871_v50 = vadd.f32 %v3870_v46, %v3869_v25  ;;  %v3982_v55 = vpop.f32.mrb[165].mxu1  ;;  %v3872_v3 = vpop.f32.mrb[166].mxu0 }
 0x3a7   :  { %v3983_v39 = vadd.f32 %v3982_v55, %v3981_v10  ;;  %v3984_v59 = vpop.f32.mrb[166].mxu1  ;;  %v3873_v7 = vpop.f32.mrb[167].mxu0 }
 0x3a8   :  { %v3874_v31 = vadd.f32 %v3873_v7, %v3872_v3  ;;  %v3985_v32 = vpop.f32.mrb[167].mxu1 }
 0x3a9   :  { %v3459_v61 = vadd.f32 %v3983_v39, %v3871_v50  ;;  %v3986_v24 = vadd.f32 %v3985_v32, %v3984_v59 }
 0x3ab   :  { %v3637_v8 = vadd.f32 %v7530_v52, %v3459_v61  ;;  %v3462_v62 = vadd.f32 %v3986_v24, %v3874_v31 }
 0x3ad   :  { %3669 = vst [vmem:[#allocation12 + $0x90] sm:$0xff] %v3637_v8  ;;  %v3638_v28 = vadd.f32 %v7530_v52, %v3462_v62 }
 0x3af   :  { %3670 = vst [vmem:[#allocation12 + $0x98] sm:$0xff] %v3638_v28 }
 0x3b3   :  { %v3875_v5 = vpop.f32.mrb[168].mxu0 }
 0x3b4   :  { %v3987_v41 = vpop.f32.mrb[168].mxu1  ;;  %v3876_v19 = vpop.f32.mrb[169].mxu0 }
 0x3b5   :  { %v3877_v21 = vadd.f32 %v3876_v19, %v3875_v5  ;;  %v3988_v2 = vpop.f32.mrb[169].mxu1  ;;  %v3878_v13 = vpop.f32.mrb[170].mxu0 }
 0x3b6   :  { %v3989_v53 = vadd.f32 %v3988_v2, %v3987_v41  ;;  %v3990_v35 = vpop.f32.mrb[170].mxu1  ;;  %v3879_v48 = vpop.f32.mrb[171].mxu0 }
 0x3b7   :  { %v3880_v57 = vadd.f32 %v3879_v48, %v3878_v13  ;;  %v3991_v56 = vpop.f32.mrb[171].mxu1 }
 0x3b8   :  { %v3467_v47 = vadd.f32 %v3989_v53, %v3877_v21  ;;  %v3992_v12 = vadd.f32 %v3991_v56, %v3990_v35 }
 0x3ba   :  { %v3639_v29 = vadd.f32 %v7530_v52, %v3467_v47  ;;  %v3470_v26 = vadd.f32 %v3992_v12, %v3880_v57 }
 0x3bc   :  { %3671 = vst [vmem:[#allocation12 + $0xa0] sm:$0xff] %v3639_v29  ;;  %v3640_v49 = vadd.f32 %v7530_v52, %v3470_v26 }
 0x3be   :  { %3672 = vst [vmem:[#allocation12 + $0xa8] sm:$0xff] %v3640_v49 }
 0x3c2   :  { %v3881_v15 = vpop.f32.mrb[172].mxu0 }
 0x3c3   :  { %v3993_v51 = vpop.f32.mrb[172].mxu1  ;;  %v3882_v4 = vpop.f32.mrb[173].mxu0 }
 0x3c4   :  { %v3883_v54 = vadd.f32 %v3882_v4, %v3881_v15  ;;  %v3994_v1 = vpop.f32.mrb[173].mxu1  ;;  %v3884_v17 = vpop.f32.mrb[174].mxu0 }
 0x3c5   :  { %v3995_v27 = vadd.f32 %v3994_v1, %v3993_v51  ;;  %v3996_v6 = vpop.f32.mrb[174].mxu1  ;;  %v3885_v0 = vpop.f32.mrb[175].mxu0 }
 0x3c6   :  { %v3886_v58 = vadd.f32 %v3885_v0, %v3884_v17  ;;  %v3997_v33 = vpop.f32.mrb[175].mxu1 }
 0x3c7   :  { %v3475_v9 = vadd.f32 %v3995_v27, %v3883_v54  ;;  %v3998_v45 = vadd.f32 %v3997_v33, %v3996_v6 }
 0x3c9   :  { %v3641_v23 = vadd.f32 %v7530_v52, %v3475_v9  ;;  %v3478_v40 = vadd.f32 %v3998_v45, %v3886_v58 }
 0x3cb   :  { %3673 = vst [vmem:[#allocation12 + $0xb0] sm:$0xff] %v3641_v23  ;;  %v3642_v37 = vadd.f32 %v7530_v52, %v3478_v40 }
 0x3cd   :  { %3674 = vst [vmem:[#allocation12 + $0xb8] sm:$0xff] %v3642_v37 }
 0x3d1   :  { %v3887_v42 = vpop.f32.mrb[176].mxu0 }
 0x3d2   :  { %v3999_v22 = vpop.f32.mrb[176].mxu1  ;;  %v3888_v11 = vpop.f32.mrb[177].mxu0 }
 0x3d3   :  { %v3889_v14 = vadd.f32 %v3888_v11, %v3887_v42  ;;  %v4000_v20 = vpop.f32.mrb[177].mxu1  ;;  %v3890_v43 = vpop.f32.mrb[178].mxu0 }
 0x3d4   :  { %v4001_v30 = vadd.f32 %v4000_v20, %v3999_v22  ;;  %v4002_v60 = vpop.f32.mrb[178].mxu1  ;;  %v3891_v38 = vpop.f32.mrb[179].mxu0 }
 0x3d5   :  { %v3892_v34 = vadd.f32 %v3891_v38, %v3890_v43  ;;  %v4003_v44 = vpop.f32.mrb[179].mxu1 }
 0x3d6   :  { %v3483_v36 = vadd.f32 %v4001_v30, %v3889_v14  ;;  %v4004_v18 = vadd.f32 %v4003_v44, %v4002_v60 }
 0x3d8   :  { %v3643_v63 = vadd.f32 %v7530_v52, %v3483_v36  ;;  %v3486_v16 = vadd.f32 %v4004_v18, %v3892_v34 }
 0x3d9   :  { %v3893_v25 = vpop.f32.mrb[180].mxu0 }
 0x3da   :  { %3675 = vst [vmem:[#allocation12 + $0xc0] sm:$0xff] %v3643_v63  ;;  %v3644_v10 = vadd.f32 %v7530_v52, %v3486_v16  ;;  %v4005_v46 = vpop.f32.mrb[180].mxu1  ;;  %v3894_v50 = vpop.f32.mrb[181].mxu0 }
 0x3db   :  { %v3895_v55 = vadd.f32 %v3894_v50, %v3893_v25  ;;  %v4006_v3 = vpop.f32.mrb[181].mxu1  ;;  %v3896_v39 = vpop.f32.mrb[182].mxu0 }
 0x3dc   :  { %3676 = vst [vmem:[#allocation12 + $0xc8] sm:$0xff] %v3644_v10  ;;  %v4007_v59 = vadd.f32 %v4006_v3, %v4005_v46  ;;  %v4008_v7 = vpop.f32.mrb[182].mxu1  ;;  %v3897_v31 = vpop.f32.mrb[183].mxu0 }
 0x3dd   :  { %v3898_v32 = vadd.f32 %v3897_v31, %v3896_v39  ;;  %v4009_v61 = vpop.f32.mrb[183].mxu1 }
 0x3de   :  { %v3491_v24 = vadd.f32 %v4007_v59, %v3895_v55  ;;  %v4010_v8 = vadd.f32 %v4009_v61, %v4008_v7 }
 0x3e0   :  { %v3645_v62 = vadd.f32 %v7530_v52, %v3491_v24  ;;  %v3494_v28 = vadd.f32 %v4010_v8, %v3898_v32 }
 0x3e1   :  { %v3899_v5 = vpop.f32.mrb[184].mxu0 }
 0x3e2   :  { %3677 = vst [vmem:[#allocation12 + $0xd0] sm:$0xff] %v3645_v62  ;;  %v3646_v41 = vadd.f32 %v7530_v52, %v3494_v28  ;;  %v4011_v19 = vpop.f32.mrb[184].mxu1  ;;  %v3900_v21 = vpop.f32.mrb[185].mxu0 }
 0x3e3   :  { %v3901_v2 = vadd.f32 %v3900_v21, %v3899_v5  ;;  %v4012_v13 = vpop.f32.mrb[185].mxu1  ;;  %v3902_v53 = vpop.f32.mrb[186].mxu0 }
 0x3e4   :  { %3678 = vst [vmem:[#allocation12 + $0xd8] sm:$0xff] %v3646_v41  ;;  %v4013_v35 = vadd.f32 %v4012_v13, %v4011_v19  ;;  %v4014_v48 = vpop.f32.mrb[186].mxu1  ;;  %v3903_v57 = vpop.f32.mrb[187].mxu0 }
 0x3e5   :  { %v3904_v56 = vadd.f32 %v3903_v57, %v3902_v53  ;;  %v4015_v47 = vpop.f32.mrb[187].mxu1 }
 0x3e6   :  { %v3499_v12 = vadd.f32 %v4013_v35, %v3901_v2  ;;  %v4016_v29 = vadd.f32 %v4015_v47, %v4014_v48 }
 0x3e8   :  { %v3647_v26 = vadd.f32 %v7530_v52, %v3499_v12  ;;  %v3502_v49 = vadd.f32 %v4016_v29, %v3904_v56 }
 0x3e9   :  { %v3905_v15 = vpop.f32.mrb[188].mxu0 }
 0x3ea   :  { %3679 = vst [vmem:[#allocation12 + $0xe0] sm:$0xff] %v3647_v26  ;;  %v3648_v51 = vadd.f32 %v7530_v52, %v3502_v49  ;;  %v4017_v4 = vpop.f32.mrb[188].mxu1  ;;  %v3906_v54 = vpop.f32.mrb[189].mxu0 }
 0x3eb   :  { %v3907_v1 = vadd.f32 %v3906_v54, %v3905_v15  ;;  %v4018_v17 = vpop.f32.mrb[189].mxu1  ;;  %v3908_v27 = vpop.f32.mrb[190].mxu0 }
 0x3ec   :  { %3680 = vst [vmem:[#allocation12 + $0xe8] sm:$0xff] %v3648_v51  ;;  %v4019_v6 = vadd.f32 %v4018_v17, %v4017_v4  ;;  %v4020_v0 = vpop.f32.mrb[190].mxu1  ;;  %v3909_v58 = vpop.f32.mrb[191].mxu0 }
 0x3ed   :  { %v3910_v33 = vadd.f32 %v3909_v58, %v3908_v27  ;;  %v4021_v9 = vpop.f32.mrb[191].mxu1 }
 0x3ee   :  { %v3507_v45 = vadd.f32 %v4019_v6, %v3907_v1  ;;  %v4022_v23 = vadd.f32 %v4021_v9, %v4020_v0 }
 0x3f0   :  { %v3649_v40 = vadd.f32 %v7530_v52, %v3507_v45  ;;  %v3510_v37 = vadd.f32 %v4022_v23, %v3910_v33 }
 0x3f2   :  { %3681 = vst [vmem:[#allocation12 + $0xf0] sm:$0xff] %v3649_v40  ;;  %v3650_v42 = vadd.f32 %v7530_v52, %v3510_v37 }
 0x3f4   :  { %3682 = vst [vmem:[#allocation12 + $0xf8] sm:$0xff] %v3650_v42 }
 0x3f5   :  { %4797 = shalt.err (!%p4794_p2)
}
 0x3f6   :  { %s4798_s12 = scalar_lea.hbm %s7587_s8, 4096 }
 0x3f7   :  { %p4799_p3 = scmp.ne.s32.totalorder %s7587_s8, %s4798_s12  ;;  %p4802_p4 = scmp.lt.u32.totalorder %s4798_s12, %s7587_s8 }
 0x3f9   :  { %p4804_p5 = pnand %p4802_p4, %p4799_p3 }
 0x3fb   :  { %4807 = shalt.err (!%p4804_p5)
}
 0x3fc   :  { %3694 = dma.vmem_to_hbm [thread:$0]  %s3689_s30, 4096, %s7587_s8, [#allocation5], %s4817_s15, %s4817_s15, %s4818_s16  }
 0x3fd   :  { %4814 = dma.done.wait [#allocation5], 4096  }
 0x3fe   :  { %4815 = vsyncadd [#allocation5], 4294963200 }
 0x3ff   :  { %3698 = vsyncpa [#allocation4], 1 }
 0x400   :  { %3699 = vsyncpa [#allocation7], 1 }
 0x401   :  { %3700 = vsyncpa [#allocation10], 1 }
 0x402   :  { %3701 = vsyncpa [#allocation5], 1 }

</bundles_post_ra>
